<compile_context>
chip_gen: v7x
topology: tpu7x:2x2x1
jax: 0.10.0
libtpu: 0.0.40
codegen_flags: <defaults>
</compile_context>

<pallas_src>
import jax
import jax.numpy as jnp
import numpy as np
from jax.experimental import pallas as pl
from jax.experimental.pallas import tpu as pltpu


# ----------------------------- kernels ------------------------------------

def _mlp_pe_kernel(x_ref, e2_ref, phase_ref, w1x_ref, w1sc_ref, b1_ref,
                   w2_ref, o_ref):
    """Fused: PE -> [sin|cos] (single EUP pass) -> Linear(+bias) -> ReLU
    -> Linear(no bias)."""
    x = x_ref[...].astype(jnp.float32)                        # (TM, in_dim)
    # pts2[:, :pe_dim] = x*2**f,  pts2[:, pe_dim:] = x*2**f + pi/2
    pts2 = (jnp.dot(x, e2_ref[...], preferred_element_type=jnp.float32)
            + phase_ref[...])
    trig = jnp.sin(pts2)                 # == [sin(pts), cos(pts)] in one pass
    # concat([x, sin, cos]) @ W1  ==  x @ W1x + [sin|cos] @ W1sc
    h = (jnp.dot(x, w1x_ref[...], preferred_element_type=jnp.float32)
         + jnp.dot(trig, w1sc_ref[...], preferred_element_type=jnp.float32)
         + b1_ref[...])
    h = jnp.maximum(h, 0.0)                                   # ReLU
    out = jnp.dot(h, w2_ref[...], preferred_element_type=jnp.float32)
    o_ref[...] = out.astype(o_ref.dtype)


def _mlp_nope_kernel(x_ref, w1_ref, b1_ref, w2_ref, o_ref):
    """Fused MLP for the pe == 0 case."""
    x = x_ref[...].astype(jnp.float32)
    h = jnp.dot(x, w1_ref[...], preferred_element_type=jnp.float32) + b1_ref[...]
    h = jnp.maximum(h, 0.0)
    out = jnp.dot(h, w2_ref[...], preferred_element_type=jnp.float32)
    o_ref[...] = out.astype(o_ref.dtype)


# ----------------------------- wrapper -------------------------------------

def _round_up(x, m):
    return (x + m - 1) // m * m


def mlp_mixer_forward(x, w1, b1, w2, *, pe, tile_m=2048):
    """x: (N, in_dim) f32.  w1: (in_dim + 2*in_dim*pe, hidden), b1: (hidden,),
    w2: (hidden, out_dim).  Returns (N, out_dim)."""
    n, in_dim = x.shape
    hidden = w1.shape[1]
    out_dim = w2.shape[1]

    # Row tile: as large as requested, but keep >= 2 grid steps when N allows
    # (v7x has 2 TensorCores; the parallel grid axis is what feeds them).
    tile = max(8, min(tile_m, _round_up(max(pl.cdiv(n, 2), 8), 8)))
    n_pad = _round_up(n, tile)
    if n_pad != n:
        x = jnp.pad(x, ((0, n_pad - n), (0, 0)))   # masked tail via padding
    grid = (n_pad // tile,)

    b1_2d = b1.reshape(1, hidden)
    out_shape = jax.ShapeDtypeStruct((n_pad, out_dim), x.dtype)
    full = lambda i: (0, 0)  # weights: single full block, resident in VMEM

    compiler_params = pltpu.CompilerParams(
        dimension_semantics=("parallel",),
        # Tiles are 128-lane padded in VMEM (real use is 8-32x logical bytes);
        # at tile_m=2048 the double-buffered I/O + f32 temporaries is ~12 MiB.
        # 48 MiB leaves headroom on every generation (v5e/v6e 128 MiB,
        # v7x 64 MiB physical) without letting the compiler shrink buffering.
        vmem_limit_bytes=48 * 1024 * 1024,
    )

    if pe > 0:
        pe_dim = in_dim * pe
        assert w1.shape[0] == in_dim + 2 * pe_dim
        # Expansion matrix E: (in_dim, pe_dim), E[d, d*pe + f] = 2**f
        freq = 2.0 ** jnp.arange(pe, dtype=jnp.float32)
        e = jnp.zeros((in_dim, pe_dim), jnp.float32)
        rows = jnp.repeat(jnp.arange(in_dim), pe)
        cols = jnp.arange(pe_dim)
        e = e.at[rows, cols].set(jnp.tile(freq, in_dim))
        # Duplicate E so one matmul produces [pts, pts]; a constant pi/2 phase
        # on the second half turns a single sin() into [sin(pts), cos(pts)].
        e2 = jnp.concatenate([e, e], axis=1)                    # (in_dim, 2*pe_dim)
        phase = jnp.concatenate([jnp.zeros((1, pe_dim), jnp.float32),
                                 jnp.full((1, pe_dim), np.float32(np.pi / 2))],
                                axis=1)                         # (1, 2*pe_dim)
        # Split W1 by feature group: x rows vs the stacked [sin|cos] rows.
        w1x = w1[:in_dim]                                       # (in_dim, hidden)
        w1sc = w1[in_dim:]                                      # (2*pe_dim, hidden)

        pe_dim2 = 2 * pe_dim
        cost = pl.CostEstimate(
            flops=2 * n_pad * (in_dim * pe_dim2
                               + (in_dim + pe_dim2) * hidden
                               + hidden * out_dim),
            transcendentals=n_pad * pe_dim2,
            bytes_accessed=4 * (n_pad * (in_dim + out_dim)
                                + w1.size + b1.size + w2.size),
        )

        out = pl.pallas_call(
            _mlp_pe_kernel,
            out_shape=out_shape,
            grid_spec=pltpu.PrefetchScalarGridSpec(
                num_scalar_prefetch=0,
                grid=grid,
                in_specs=[
                    pl.BlockSpec((tile, in_dim), lambda i: (i, 0)),
                    pl.BlockSpec((in_dim, pe_dim2), full),
                    pl.BlockSpec((1, pe_dim2), full),
                    pl.BlockSpec((in_dim, hidden), full),
                    pl.BlockSpec((pe_dim2, hidden), full),
                    pl.BlockSpec((1, hidden), full),
                    pl.BlockSpec((hidden, out_dim), full),
                ],
                out_specs=pl.BlockSpec((tile, out_dim), lambda i: (i, 0)),
            ),
            compiler_params=compiler_params,
            cost_estimate=cost,
        )(x, e2, phase, w1x, w1sc, b1_2d, w2)
    else:
        cost = pl.CostEstimate(
            flops=2 * n_pad * (in_dim * hidden + hidden * out_dim),
            transcendentals=0,
            bytes_accessed=4 * (n_pad * (in_dim + out_dim)
                                + w1.size + b1.size + w2.size),
        )
        out = pl.pallas_call(
            _mlp_nope_kernel,
            out_shape=out_shape,
            grid_spec=pltpu.PrefetchScalarGridSpec(
                num_scalar_prefetch=0,
                grid=grid,
                in_specs=[
                    pl.BlockSpec((tile, in_dim), lambda i: (i, 0)),
                    pl.BlockSpec((in_dim, hidden), full),
                    pl.BlockSpec((1, hidden), full),
                    pl.BlockSpec((hidden, out_dim), full),
                ],
                out_specs=pl.BlockSpec((tile, out_dim), lambda i: (i, 0)),
            ),
            compiler_params=compiler_params,
            cost_estimate=cost,
        )(x, w1, b1_2d, w2)

    return out[:n] if n_pad != n else out


# TODO(synk): kernel implements the default num_layers=2 configuration; deeper
# configs would chain additional hidden matmuls inside the kernel the same way.


# ----------------------------- reference + main -----------------------------

def _reference(x, w1, b1, w2, pe):
    """Pure-JAX replica of the PyTorch MLPMixer.forward (eval mode)."""
    h = x
    if pe > 0:
        freq = 2.0 ** jnp.arange(pe, dtype=jnp.float32)
        pts = (h[..., None] * freq).reshape(h.shape[:-1] + (pe * h.shape[-1],))
        h = jnp.concatenate([h, jnp.sin(pts), jnp.cos(pts)], axis=-1)
    h = jnp.maximum(h @ w1 + b1, 0.0)   # layer 0: bias=True, ReLU
    return h @ w2                        # layer 1 (last): bias=False, no act


if __name__ == "__main__":
    # MLPMixer(in_dim=4, out_dim=16, num_layers=2, hidden_dim=32, pe=2)
    N, in_dim, pe, hidden, out_dim = 256, 4, 2, 32, 16
    feat = in_dim + 2 * in_dim * pe  # = 20

    key = jax.random.PRNGKey(0)
    kx, k1, kb, k2 = jax.random.split(key, 4)
    x = jax.random.uniform(kx, (N, in_dim), jnp.float32, -1.0, 1.0)
    # Deterministic synthetic parameters (PyTorch Linear-ish scale).
    w1 = jax.random.uniform(k1, (feat, hidden), jnp.float32,
                            -1.0, 1.0) / np.sqrt(feat)
    b1 = jax.random.uniform(kb, (hidden,), jnp.float32,
                            -1.0, 1.0) / np.sqrt(feat)
    w2 = jax.random.uniform(k2, (hidden, out_dim), jnp.float32,
                            -1.0, 1.0) / np.sqrt(hidden)

    # pe > 0 path.
    out = jax.block_until_ready(mlp_mixer_forward(x, w1, b1, w2, pe=pe))
    ref = _reference(x, w1, b1, w2, pe)
    np.testing.assert_allclose(np.asarray(out), np.asarray(ref),
                               rtol=1e-4, atol=1e-5)

    # Non-tile-multiple N (exercises the padded tail).
    x2 = jax.random.uniform(jax.random.PRNGKey(1), (200, in_dim),
                            jnp.float32, -1.0, 1.0)
    out2 = jax.block_until_ready(mlp_mixer_forward(x2, w1, b1, w2, pe=pe))
    ref2 = _reference(x2, w1, b1, w2, pe)
    np.testing.assert_allclose(np.asarray(out2), np.asarray(ref2),
                               rtol=1e-4, atol=1e-5)

    # pe == 0 path.
    w1n = jax.random.uniform(k1, (in_dim, hidden), jnp.float32,
                             -1.0, 1.0) / np.sqrt(in_dim)
    out3 = jax.block_until_ready(mlp_mixer_forward(x, w1n, b1, w2, pe=0))
    ref3 = _reference(x, w1n, b1, w2, 0)
    np.testing.assert_allclose(np.asarray(out3), np.asarray(ref3),
                               rtol=1e-4, atol=1e-5)

    print("KERNEL_OK")
</pallas_src>

<mosaic_0001>
module attributes {stable_mosaic.version = 11 : i64} {
  func.func @_mlp_pe_kernel(%arg0: i32, %arg1: memref<128x4xf32, #tpu.memory_space<vmem>>, %arg2: memref<4x16xf32, #tpu.memory_space<vmem>>, %arg3: memref<1x16xf32, #tpu.memory_space<vmem>>, %arg4: memref<4x32xf32, #tpu.memory_space<vmem>>, %arg5: memref<16x32xf32, #tpu.memory_space<vmem>>, %arg6: memref<1x32xf32, #tpu.memory_space<vmem>>, %arg7: memref<32x16xf32, #tpu.memory_space<vmem>>, %arg8: memref<128x16xf32, #tpu.memory_space<vmem>>) attributes {dimension_semantics = [#tpu.dimension_semantics<parallel>], iteration_bounds = array<i64: 2>, scalar_prefetch = 0 : i64, scratch_operands = 0 : i64, tpu.core_type = #tpu.core_type<tc>, window_params = [{transform_indices = @transform_0, window_bounds = array<i64: 128, 4>}, {pipeline_mode = #tpu.pipeline_mode<synchronous>, transform_indices = @transform_1, window_bounds = array<i64: 4, 16>}, {pipeline_mode = #tpu.pipeline_mode<synchronous>, transform_indices = @transform_2, window_bounds = array<i64: 1, 16>}, {pipeline_mode = #tpu.pipeline_mode<synchronous>, transform_indices = @transform_3, window_bounds = array<i64: 4, 32>}, {pipeline_mode = #tpu.pipeline_mode<synchronous>, transform_indices = @transform_4, window_bounds = array<i64: 16, 32>}, {pipeline_mode = #tpu.pipeline_mode<synchronous>, transform_indices = @transform_5, window_bounds = array<i64: 1, 32>}, {pipeline_mode = #tpu.pipeline_mode<synchronous>, transform_indices = @transform_6, window_bounds = array<i64: 32, 16>}, {transform_indices = @transform_7, window_bounds = array<i64: 128, 16>}]} {
    %c0 = arith.constant 0 : index
    %c0_0 = arith.constant 0 : index
    %0 = vector.load %arg1[%c0, %c0_0] : memref<128x4xf32, #tpu.memory_space<vmem>>, vector<128x4xf32>
    %c0_1 = arith.constant 0 : index
    %c0_2 = arith.constant 0 : index
    %1 = vector.load %arg2[%c0_1, %c0_2] : memref<4x16xf32, #tpu.memory_space<vmem>>, vector<4x16xf32>
    %cst = arith.constant dense<0.000000e+00> : vector<128x16xf32>
    %2 = tpu.matmul %0, %1, %cst {dimension_numbers = #tpu.dot_dimension_numbers<[1], [0], [0], [1], [0, 0, 1, 1], [], []>} : vector<128x4xf32>, vector<4x16xf32>, vector<128x16xf32> -> vector<128x16xf32>
    %c0_3 = arith.constant 0 : index
    %c0_4 = arith.constant 0 : index
    %3 = vector.load %arg3[%c0_3, %c0_4] : memref<1x16xf32, #tpu.memory_space<vmem>>, vector<1x16xf32>
    %4 = vector.broadcast %3 : vector<1x16xf32> to vector<128x16xf32>
    %5 = arith.addf %2, %4 : vector<128x16xf32>
    %6 = math.sin %5 : vector<128x16xf32>
    %c0_5 = arith.constant 0 : index
    %c0_6 = arith.constant 0 : index
    %7 = vector.load %arg4[%c0_5, %c0_6] : memref<4x32xf32, #tpu.memory_space<vmem>>, vector<4x32xf32>
    %cst_7 = arith.constant dense<0.000000e+00> : vector<128x32xf32>
    %8 = tpu.matmul %0, %7, %cst_7 {dimension_numbers = #tpu.dot_dimension_numbers<[1], [0], [0], [1], [0, 0, 1, 1], [], []>} : vector<128x4xf32>, vector<4x32xf32>, vector<128x32xf32> -> vector<128x32xf32>
    %c0_8 = arith.constant 0 : index
    %c0_9 = arith.constant 0 : index
    %9 = vector.load %arg5[%c0_8, %c0_9] : memref<16x32xf32, #tpu.memory_space<vmem>>, vector<16x32xf32>
    %cst_10 = arith.constant dense<0.000000e+00> : vector<128x32xf32>
    %10 = tpu.matmul %6, %9, %cst_10 {dimension_numbers = #tpu.dot_dimension_numbers<[1], [0], [0], [1], [0, 0, 1, 1], [], []>} : vector<128x16xf32>, vector<16x32xf32>, vector<128x32xf32> -> vector<128x32xf32>
    %11 = arith.addf %8, %10 : vector<128x32xf32>
    %c0_11 = arith.constant 0 : index
    %c0_12 = arith.constant 0 : index
    %12 = vector.load %arg6[%c0_11, %c0_12] : memref<1x32xf32, #tpu.memory_space<vmem>>, vector<1x32xf32>
    %13 = vector.broadcast %12 : vector<1x32xf32> to vector<128x32xf32>
    %14 = arith.addf %11, %13 : vector<128x32xf32>
    %cst_13 = arith.constant 0.000000e+00 : f32
    %15 = vector.broadcast %cst_13 : f32 to vector<128x32xf32>
    %16 = arith.maximumf %14, %15 : vector<128x32xf32>
    %c0_14 = arith.constant 0 : index
    %c0_15 = arith.constant 0 : index
    %17 = vector.load %arg7[%c0_14, %c0_15] : memref<32x16xf32, #tpu.memory_space<vmem>>, vector<32x16xf32>
    %cst_16 = arith.constant dense<0.000000e+00> : vector<128x16xf32>
    %18 = tpu.matmul %16, %17, %cst_16 {dimension_numbers = #tpu.dot_dimension_numbers<[1], [0], [0], [1], [0, 0, 1, 1], [], []>} : vector<128x32xf32>, vector<32x16xf32>, vector<128x16xf32> -> vector<128x16xf32>
    %c0_17 = arith.constant 0 : index
    %c0_18 = arith.constant 0 : index
    %19 = vector.load %arg8[%c0_17, %c0_18] : memref<128x16xf32, #tpu.memory_space<vmem>>, vector<128x16xf32>
    tpu.vector_store %arg8[%c0_17, %c0_18], %18 {strides = array<i32>} : memref<128x16xf32, #tpu.memory_space<vmem>>, vector<128x16xf32>,
    return
  }
  func.func @transform_0(%arg0: i32) -> (i32, i32) {
    %c0_i32 = arith.constant 0 : i32
    %c0_i32_0 = arith.constant 0 : i32
    return %arg0, %c0_i32 : i32, i32
  }
  func.func @transform_1(%arg0: i32) -> (i32, i32) {
    %c0_i32 = arith.constant 0 : i32
    %c0_i32_0 = arith.constant 0 : i32
    %c0_i32_1 = arith.constant 0 : i32
    return %c0_i32, %c0_i32_0 : i32, i32
  }
  func.func @transform_2(%arg0: i32) -> (i32, i32) {
    %c0_i32 = arith.constant 0 : i32
    %c0_i32_0 = arith.constant 0 : i32
    %c0_i32_1 = arith.constant 0 : i32
    return %c0_i32, %c0_i32_0 : i32, i32
  }
  func.func @transform_3(%arg0: i32) -> (i32, i32) {
    %c0_i32 = arith.constant 0 : i32
    %c0_i32_0 = arith.constant 0 : i32
    %c0_i32_1 = arith.constant 0 : i32
    return %c0_i32, %c0_i32_0 : i32, i32
  }
  func.func @transform_4(%arg0: i32) -> (i32, i32) {
    %c0_i32 = arith.constant 0 : i32
    %c0_i32_0 = arith.constant 0 : i32
    %c0_i32_1 = arith.constant 0 : i32
    return %c0_i32, %c0_i32_0 : i32, i32
  }
  func.func @transform_5(%arg0: i32) -> (i32, i32) {
    %c0_i32 = arith.constant 0 : i32
    %c0_i32_0 = arith.constant 0 : i32
    %c0_i32_1 = arith.constant 0 : i32
    return %c0_i32, %c0_i32_0 : i32, i32
  }
  func.func @transform_6(%arg0: i32) -> (i32, i32) {
    %c0_i32 = arith.constant 0 : i32
    %c0_i32_0 = arith.constant 0 : i32
    %c0_i32_1 = arith.constant 0 : i32
    return %c0_i32, %c0_i32_0 : i32, i32
  }
  func.func @transform_7(%arg0: i32) -> (i32, i32) {
    %c0_i32 = arith.constant 0 : i32
    %c0_i32_0 = arith.constant 0 : i32
    return %arg0, %c0_i32 : i32, i32
  }
}

</mosaic_0001>

<bundles_post_ra>
// kernel: tpu_custom_call.1
= control target key start
LH: loop header
LB: loop body
LE: loop exit
PB: predicated region body
PF: predicated region fallthrough
CT: control target
= control target key end

     0   :  { %s3392_s24 = smov 0   ;;  %s5184_s0 = inlined_call_operand.vmem [shape: f32[256,4], index: 0, kind: input, shape index: {}]   ;;  %s5185_s1 = inlined_call_operand.vmem [shape: f32[4,16], index: 1, kind: input, shape index: {}]   ;;  %s5186_s2 = inlined_call_operand.vmem [shape: f32[1,16], index: 2, kind: input, shape index: {}]   ;;  %s5187_s3 = inlined_call_operand.vmem [shape: f32[4,32], index: 3, kind: input, shape index: {}]   ;;  %s5188_s4 = inlined_call_operand.vmem [shape: f32[16,32], index: 4, kind: input, shape index: {}]   ;;  %s5189_s5 = inlined_call_operand.vmem [shape: f32[1,32], index: 5, kind: input, shape index: {}]   ;;  %s5190_s6 = inlined_call_operand.vmem [shape: f32[32,16], index: 6, kind: input, shape index: {}]   ;;  %s5191_s7 = inlined_call_operand.vmem [shape: f32[256,16], index: 7, kind: output, shape index: {}]  }
   0x1 LB: > { %s2822_s25 = sadd.s32 4294967295, %s3344_s24   ;;  %p2826_p0 = scmp.ge.s32.totalorder %s3344_s24, 1  ;;  %s3344_s24 = sphi %s3392_s24, %s17_s24  }
   0x2   : > { %p238_p1 = scmp.lt.s32.totalorder %s3344_s24, 3 }
   0x4   : > { %p239_p2 = pnand %p2826_p0, %p238_p1 }
   0x6   : > { %242 = sbr.rel (%p239_p2) target bundleno = 1121 (0x461), region = 48 }
   0xd   : > { %v298_v0 = vld [vmem:[%s5185_s1] sm:$0xf]  ;;  %vm5277_vm0 = vcmask 1043456   ;;  %s2827_s28 = sshll.u32 %s2822_s25, 4  ;;  %vm5252_vm1 = vcmask 31744  }
   0xe   : > { %3037 = vmatprep.subr.msk.mxu0 %vm5277_vm0, %v298_v0  ;;  %p271_p3 = scmp.lt.s32.totalorder %s2827_s28, 31  ;;  %v3450_v17 = vld [vmem:[%s5186_s2] ss:$0 sm:$0xff]  ;;  %v5202_v48 = vmov 683565275  }
   0xf   : > { %3038 = vmatpush3.msk.msra.mxu0 %vm5277_vm0, %v298_v0  ;;  %v5200_v50 = vmov 2475754826   ;;  %v5197_v55 = vmov 2131351028   ;;  %v5213_v58 = vmov 2102212464  }
  0x10   : > { %s5531_s28 = smov (!%p271_p3, %s2827_s28), 31  ;;  %v5215_v61 = vmov 920167782   ;;  %v5204_v0 = vmov 1326507024  }
  0x11   : > { %s2828_s29 = sshll.u32 %s5531_s28, 3 }
  0x12   : > { %s3413_s9 = scalar_lea.vmem %s5184_s0, %s2828_s29  ;;  %s5147_s16 = scalar_lea.vmem %s5191_s7, %s2828_s29 }
  0x13   : > { %v282_v1 = vld [vmem:[%s3413_s9] sm:$0xff]  ;;  %v283_v2 = vld [vmem:[%s3413_s9 + $0x8] sm:$0xff]  ;;  %v284_v3 = vld [vmem:[%s3413_s9 + $0x10] sm:$0xff] }
  0x14   : > { %3039 = vmatprep.mubr.msk.f32.mxu0 %vm5252_vm1, %v282_v1  ;;  %v285_v4 = vld [vmem:[%s3413_s9 + $0x18] sm:$0xff]  ;;  %v286_v5 = vld [vmem:[%s3413_s9 + $0x20] sm:$0xff]  ;;  %v287_v6 = vld [vmem:[%s3413_s9 + $0x28] sm:$0xff] }
  0x15   : > { %3040 = vmatmul.mubr.msk.f32.vlgmr.msra.gmra.mrb[0].mxu0 %vm5252_vm1, %v283_v2  ;;  %v288_v7 = vld [vmem:[%s3413_s9 + $0x30] sm:$0xff]  ;;  %v289_v8 = vld [vmem:[%s3413_s9 + $0x38] sm:$0xff]  ;;  %v290_v9 = vld [vmem:[%s3413_s9 + $0x40] sm:$0xff] }
  0x16   : > { %3042 = vmatprep.mubr.msk.f32.mxu0 %vm5252_vm1, %v284_v3  ;;  %v291_v10 = vld [vmem:[%s3413_s9 + $0x48] sm:$0xff]  ;;  %v292_v11 = vld [vmem:[%s3413_s9 + $0x50] sm:$0xff]  ;;  %v293_v12 = vld [vmem:[%s3413_s9 + $0x58] sm:$0xff] }
  0x17   : > { %v294_v13 = vld [vmem:[%s3413_s9 + $0x60] sm:$0xff]  ;;  %v295_v14 = vld [vmem:[%s3413_s9 + $0x68] sm:$0xff]  ;;  %v296_v15 = vld [vmem:[%s3413_s9 + $0x70] sm:$0xff] }
  0x18   : > { %v297_v16 = vld [vmem:[%s3413_s9 + $0x78] sm:$0xff] }
  0x19   : > { %3043 = vmatmul.mubr.msk.f32.gmra.mrb[2].mxu0 %vm5252_vm1, %v285_v4 }
  0x1a   : > { %3045 = vmatprep.mubr.msk.f32.mxu0 %vm5252_vm1, %v286_v5 }
  0x1d   : > { %3046 = vmatmul.mubr.msk.f32.gmra.mrb[4].mxu0 %vm5252_vm1, %v287_v6 }
  0x1e   : > { %3048 = vmatprep.mubr.msk.f32.mxu0 %vm5252_vm1, %v288_v7 }
  0x21   : > { %3049 = vmatmul.mubr.msk.f32.gmra.mrb[6].mxu0 %vm5252_vm1, %v289_v8 }
  0x22   : > { %3051 = vmatprep.mubr.msk.f32.mxu0 %vm5252_vm1, %v290_v9 }
  0x25   : > { %3052 = vmatmul.mubr.msk.f32.gmra.mrb[8].mxu0 %vm5252_vm1, %v291_v10 }
  0x26   : > { %3054 = vmatprep.mubr.msk.f32.mxu0 %vm5252_vm1, %v292_v11 }
  0x29   : > { %3055 = vmatmul.mubr.msk.f32.gmra.mrb[10].mxu0 %vm5252_vm1, %v293_v12 }
  0x2a   : > { %3057 = vmatprep.mubr.msk.f32.mxu0 %vm5252_vm1, %v294_v13 }
  0x2d   : > { %3058 = vmatmul.mubr.msk.f32.gmra.mrb[12].mxu0 %vm5252_vm1, %v295_v14 }
  0x2e   : > { %3060 = vmatprep.mubr.msk.f32.mxu0 %vm5252_vm1, %v296_v15 }
  0x31   : > { %3061 = vmatmul.mubr.msk.f32.gmra.mrb[14].mxu0 %vm5252_vm1, %v297_v16 }
  0xe8   : > { %v3041_v18 = vpop.f32.mrb[0].mxu0 }
  0xe9   : > { %v3453_v19 = vadd.f32 %v3041_v18, %v3450_v17  ;;  %v3455_v20 = vpop.f32.mrb[1].mxu0 }
  0xeb   : > { %5301 = vst [vmem:[#allocation2_spill] sm:$0xff] %v3453_v19  ;;  %v5196_v21 = vand.u32 2147483647, %v3453_v19  ;;  %v611_v22 = vand.u32 2139095040, %v3453_v19 }
  0xec   : > { %v3044_v23 = vpop.f32.mrb[2].mxu0 }
  0xed   : > { %v612_v24 = vshrl.u32 %v611_v22, 23  ;;  %v3460_v25 = vadd.f32 %v3044_v23, %v3450_v17  ;;  %v435_v26 = vpop.f32.mrb[3].mxu0  ;;  %v615_v28 = vand.u32 8388607, %v5196_v21 }
  0xee   : > { %v3465_v29 = vadd.f32 %v3450_v17, %v435_v26  ;;  %v3499_v26 = vadd.f32 %v3450_v17, %v3455_v20 }
  0xef   : > { %5302 = vst [vmem:[#allocation3_spill] sm:$0xff] %v3460_v25  ;;  %v2853_v27 = vadd.s32 4294967169, %v612_v24  ;;  %v819_v30 = vand.u32 2139095040, %v3460_v25  ;;  %v616_v35 = vor.u32 8388608, %v615_v28  ;;  %v5195_v36 = vand.u32 2147483647, %v3460_v25 }
  0xf0   : > { %5303 = vst [vmem:[#allocation4_spill] sm:$0xff] %v3465_v29  ;;  %v3468_v31 = vpop.f32.mrb[4].mxu0  ;;  %v715_v37 = vand.u32 2139095040, %v3465_v29 }
  0xf1   : > { %v618_v32 = vadd.s32 1, %v2853_v27  ;;  %v820_v33 = vshrl.u32 %v819_v30, 23  ;;  %v3470_v34 = vpop.f32.mrb[5].mxu0  ;;  %v3478_v44 = vshll.u32 %v616_v35, 8  ;;  %v823_v45 = vand.u32 8388607, %v5195_v36 }
  0xf2   : > { %v716_v46 = vshrl.u32 %v715_v37, 23 }
  0xf3   : > { %vm619_vm2 = vcmp.gt.s32.totalorder %v618_v32, 0  ;;  %v2861_v39 = vadd.s32 4294967169, %v820_v33  ;;  %v824_v27 = vor.u32 8388608, %v823_v45 }
  0xf4   : > { %v620_v38 = vsel %vm619_vm2, %v618_v32, 0  ;;  %v3474_v40 = vpop.f32.mrb[6].mxu0  ;;  %v2857_v5 = vadd.s32 4294967169, %v716_v46 }
  0xf5   : > { %v622_v41 = vand.u32 31, %v620_v38  ;;  %v3476_v42 = vpop.f32.mrb[7].mxu0  ;;  %v621_v47 = vshrl.u32 %v620_v38, 5  ;;  %v826_v52 = vadd.s32 1, %v2861_v39  ;;  %v507_v39 = vand.u32 2139095040, %v3499_v26 }
  0xf6   : > { %v722_v38 = vadd.s32 1, %v2857_v5  ;;  %v3515_v46 = vshll.u32 %v824_v27, 8 }
  0xf7   : > { %v623_v43 = vsub.s32 32, %v622_v41  ;;  %v625_v49 = vshll.u32 %v5202_v48, %v622_v41  ;;  %v628_v51 = vshll.u32 %v5200_v50, %v622_v41  ;;  %v631_v57 = vshll.u32 %v5197_v55, %v622_v41 }
  0xf8   : > { %v3484_v53 = vpop.f32.mrb[8].mxu0  ;;  %v634_v60 = vshll.u32 %v5213_v58, %v622_v41  ;;  %v637_v63 = vshll.u32 %v5215_v61, %v622_v41  ;;  %vm640_vm3 = vcmp.lt.s32.totalorder %v621_v47, 1  ;;  %vm643_vm4 = vcmp.lt.s32.totalorder %v621_v47, 4 }
  0xf9   : > { %v626_v54 = vshrl.u32 %v5200_v50, %v623_v43  ;;  %v629_v56 = vshrl.u32 %v5197_v55, %v623_v43  ;;  %v632_v59 = vshrl.u32 %v5213_v58, %v623_v43  ;;  %v635_v62 = vshrl.u32 %v5215_v61, %v623_v43  ;;  %v3494_v8 = vpop.f32.mrb[9].mxu0 }
  0xfa   : > { %v638_v1 = vshrl.u32 %v5204_v0, %v623_v43  ;;  %v624_v9 = vshrl.u32 %v5202_v48, %v623_v43  ;;  %vm641_vm5 = vcmp.lt.s32.totalorder %v621_v47, 2  ;;  %vm642_vm6 = vcmp.lt.s32.totalorder %v621_v47, 3 }
  0xfb   : > { %v627_v2 = vor.u32 %v626_v54, %v625_v49  ;;  %v630_v3 = vor.u32 %v629_v56, %v628_v51  ;;  %v633_v4 = vor.u32 %v632_v59, %v631_v57  ;;  %v636_v6 = vor.u32 %v635_v62, %v634_v60 }
  0xfc   : > { %v639_v7 = vor.u32 %v638_v1, %v637_v63  ;;  %vm827_vm7 = vcmp.gt.s32.totalorder %v826_v52, 0  ;;  %vm723_vm9 = vcmp.gt.s32.totalorder %v722_v38, 0  ;;  %v3535_v27 = vpop.f32.mrb[10].mxu0 }
  0xfd   : > { %v645_v10 = vsel %vm643_vm4, %v633_v4, 2102212464  ;;  %v648_v11 = vsel %vm640_vm3, %v627_v2, %v630_v3  ;;  %v652_v12 = vsel %vm640_vm3, %v630_v3, %v633_v4  ;;  %v649_v13 = vsel %vm643_vm4, %v636_v6, 920167782 }
  0xfe   : > { %v653_v14 = vsel %vm643_vm4, %v639_v7, 1326507024  ;;  %v644_v15 = vsel %vm640_vm3, %v624_v9, %v627_v2  ;;  %v646_v16 = vsel %vm642_vm6, %v630_v3, %v645_v10  ;;  %v650_v18 = vsel %vm642_vm6, %v633_v4, %v649_v13 }
  0xff   : > { %v654_v22 = vsel %vm642_vm6, %v636_v6, %v653_v14  ;;  %v651_v23 = vsel %vm641_vm5, %v648_v11, %v650_v18  ;;  %v647_v35 = vsel %vm641_vm5, %v644_v15, %v646_v16  ;;  %v828_v37 = vsel %vm827_vm7, %v826_v52, 0 }
 0x100   : > { %v655_v24 = vsel %vm641_vm5, %v652_v12, %v654_v22  ;;  %v3506_v32 = vmul.u32.u64.low %v3478_v44, %v651_v23  ;;  %v3507_v33 = vmul.u32.u64.high %v3478_v44, %v651_v23, %v3506_v32  ;;  %v829_v41 = vshrl.u32 %v828_v37, 5 }
 0x101   : > { %v3502_v28 = vmul.u32.u64.low %v3478_v44, %v655_v24  ;;  %v3503_v30 = vmul.u32.u64.high %v3478_v44, %v655_v24, %v3502_v28  ;;  %v830_v43 = vand.u32 31, %v828_v37  ;;  %v663_v20 = vmul.u32 %v3478_v44, %v647_v35 }
 0x102   : > { %v666_v45 = vadd.s32 1, %v3507_v33  ;;  %vm848_vm10 = vcmp.lt.s32.totalorder %v829_v41, 1  ;;  %vm849_vm11 = vcmp.lt.s32.totalorder %v829_v41, 2  ;;  %vm850_vm12 = vcmp.lt.s32.totalorder %v829_v41, 3 }
 0x103   : > { %vm665_vm8 = vc.u32 %v3503_v30, %v3506_v32  ;;  %v831_v47 = vsub.s32 32, %v830_v43  ;;  %v833_v49 = vshll.u32 %v5202_v48, %v830_v43  ;;  %v836_v51 = vshll.u32 %v5200_v50, %v830_v43 }
 0x104   : > { %v667_v52 = vsel %vm665_vm8, %v666_v45, %v3507_v33  ;;  %v839_v54 = vshll.u32 %v5197_v55, %v830_v43  ;;  %v842_v56 = vshll.u32 %v5213_v58, %v830_v43  ;;  %v845_v44 = vshll.u32 %v5215_v61, %v830_v43 }
 0x105   : > { %v668_v57 = vadd.s32 %v667_v52, %v663_v20  ;;  %v834_v59 = vshrl.u32 %v5200_v50, %v831_v47  ;;  %v837_v60 = vshrl.u32 %v5197_v55, %v831_v47  ;;  %v832_v62 = vshrl.u32 %v5202_v48, %v831_v47 }
 0x106   : > { %v840_v63 = vshrl.u32 %v5213_v58, %v831_v47  ;;  %v843_v1 = vshrl.u32 %v5215_v61, %v831_v47  ;;  %v846_v2 = vshrl.u32 %v5204_v0, %v831_v47  ;;  %vm851_vm13 = vcmp.lt.s32.totalorder %v829_v41, 4 }
 0x107   : > { %v669_v3 = vadd.s32 536870912, %v668_v57  ;;  %v835_v4 = vor.u32 %v834_v59, %v833_v49  ;;  %v838_v5 = vor.u32 %v837_v60, %v836_v51  ;;  %v724_v24 = vsel %vm723_vm9, %v722_v38, 0 }
 0x108   : > { %v841_v6 = vor.u32 %v840_v63, %v839_v54  ;;  %v844_v7 = vor.u32 %v843_v1, %v842_v56  ;;  %v847_v9 = vor.u32 %v846_v2, %v845_v44  ;;  %v5193_v37 = vand.u32 2147483647, %v3465_v29 }
 0x109   : > { %v3529_v10 = vshrl.u32 %v669_v3, 30  ;;  %v852_v11 = vsel %vm848_vm10, %v832_v62, %v835_v4  ;;  %v856_v12 = vsel %vm848_vm10, %v835_v4, %v838_v5  ;;  %v726_v38 = vand.u32 31, %v724_v24 }
 0x10a   : > { %v853_v13 = vsel %vm851_vm13, %v841_v6, 2102212464  ;;  %v857_v14 = vsel %vm851_vm13, %v844_v7, 920167782  ;;  %v860_v15 = vsel %vm848_vm10, %v838_v5, %v841_v6  ;;  %v861_v16 = vsel %vm851_vm13, %v847_v9, 1326507024 }
 0x10b   : > { %5304 = vst [vmem:[#allocation5_spill] sm:$0xff] %v3529_v10  ;;  %v854_v18 = vsel %vm850_vm12, %v838_v5, %v853_v13  ;;  %v858_v22 = vsel %vm850_vm12, %v841_v6, %v857_v14  ;;  %v862_v23 = vsel %vm850_vm12, %v844_v7, %v861_v16  ;;  %v671_v28 = vshll.u32 %v3529_v10, 30 }
 0x10c   : > { %v859_v33 = vsel %vm849_vm11, %v856_v12, %v858_v22  ;;  %v863_v35 = vsel %vm849_vm11, %v860_v15, %v862_v23  ;;  %v855_v45 = vsel %vm849_vm11, %v852_v11, %v854_v18  ;;  %v508_v51 = vshrl.u32 %v507_v39, 23 }
 0x10d   : > { %v3542_v43 = vmul.u32.u64.low %v3515_v46, %v863_v35  ;;  %v3543_v20 = vmul.u32.u64.high %v3515_v46, %v863_v35, %v3542_v43  ;;  %v3547_v47 = vmul.u32.u64.low %v3515_v46, %v859_v33  ;;  %v3548_v49 = vmul.u32.u64.high %v3515_v46, %v859_v33, %v3547_v47 }
 0x10e   : > { %v3551_v52 = vsub.s32 %v668_v57, %v671_v28  ;;  %v719_v54 = vand.u32 8388607, %v5193_v37  ;;  %v725_v56 = vshrl.u32 %v724_v24, 5  ;;  %v727_v44 = vsub.s32 32, %v726_v38 }
 0x10f   : > { %v871_v59 = vmul.u32 %v3515_v46, %v855_v45  ;;  %vm873_vm14 = vc.u32 %v3543_v20, %v3547_v47  ;;  %v729_v41 = vshll.u32 %v5202_v48, %v726_v38  ;;  %v732_v60 = vshll.u32 %v5200_v50, %v726_v38 }
 0x110   : > { %v874_v62 = vadd.s32 1, %v3548_v49  ;;  %v730_v39 = vshrl.u32 %v5200_v50, %v727_v44  ;;  %v733_v57 = vshrl.u32 %v5197_v55, %v727_v44  ;;  %v735_v63 = vshll.u32 %v5197_v55, %v726_v38 }
 0x111   : > { %v736_v1 = vshrl.u32 %v5213_v58, %v727_v44  ;;  %v738_v2 = vshll.u32 %v5213_v58, %v726_v38  ;;  %v739_v46 = vshrl.u32 %v5215_v61, %v727_v44  ;;  %v741_v3 = vshll.u32 %v5215_v61, %v726_v38 }
 0x112   : > { %v875_v4 = vsel %vm873_vm14, %v874_v62, %v3548_v49  ;;  %v731_v5 = vor.u32 %v730_v39, %v729_v41  ;;  %v734_v6 = vor.u32 %v733_v57, %v732_v60  ;;  %v742_v7 = vshrl.u32 %v5204_v0, %v727_v44 }
 0x113   : > { %v876_v9 = vadd.s32 %v875_v4, %v871_v59  ;;  %v720_v11 = vor.u32 8388608, %v719_v54  ;;  %v737_v12 = vor.u32 %v736_v1, %v735_v63  ;;  %v740_v13 = vor.u32 %v739_v46, %v738_v2 }
 0x114   : > { %v674_v14 = vsub.s32 0, %v3551_v52  ;;  %v743_v15 = vor.u32 %v742_v7, %v741_v3  ;;  %vm744_vm15 = vcmp.lt.s32.totalorder %v725_v56, 1  ;;  %vm747_vm2 = vcmp.lt.s32.totalorder %v725_v56, 4 }
 0x115   : > { %v877_v16 = vadd.s32 536870912, %v876_v9  ;;  %vm746_vm3 = vcmp.lt.s32.totalorder %v725_v56, 3  ;;  %v752_v18 = vsel %vm744_vm15, %v731_v5, %v734_v6  ;;  %v753_v22 = vsel %vm747_vm2, %v740_v13, 920167782 }
 0x116   : > { %vm745_vm4 = vcmp.lt.s32.totalorder %v725_v56, 2  ;;  %v754_v23 = vsel %vm746_vm3, %v737_v12, %v753_v22  ;;  %v3575_v24 = vadd.f32 %v3468_v31, %v3450_v17  ;;  %v728_v33 = vshrl.u32 %v5202_v48, %v727_v44 }
 0x117   : > { %v3577_v28 = vshrl.u32 %v877_v16, 30  ;;  %v749_v35 = vsel %vm747_vm2, %v737_v12, 2102212464  ;;  %v756_v43 = vsel %vm744_vm15, %v734_v6, %v737_v12  ;;  %v2849_v45 = vadd.s32 4294967169, %v508_v51 }
 0x118   : > { %5305 = vst [vmem:[#allocation6_spill] sm:$0xff] %v3575_v24  ;;  %v755_v49 = vsel %vm745_vm4, %v752_v18, %v754_v23  ;;  %v757_v38 = vsel %vm747_vm2, %v743_v15, 1326507024  ;;  %v760_v54 = vshll.u32 %v720_v11, 8  ;;  %v2854_v59 = vmin.u32 %v674_v14, %v3551_v52 }
 0x119   : > { %5306 = vst [vmem:[#allocation7_spill] sm:$0xff] %v3577_v28  ;;  %v879_v41 = vshll.u32 %v3577_v28, 30  ;;  %v748_v60 = vsel %vm744_vm15, %v728_v33, %v731_v5  ;;  %v758_v31 = vsel %vm746_vm3, %v740_v13, %v757_v38  ;;  %v750_v62 = vsel %vm746_vm3, %v734_v6, %v749_v35  ;;  %v3602_v13 = vpop.f32.mrb[11].mxu0 }
 0x11a   : > { %v759_v44 = vsel %vm745_vm4, %v756_v43, %v758_v31  ;;  %v3588_v39 = vmul.u32.u64.low %v760_v54, %v755_v49  ;;  %v3589_v57 = vmul.u32.u64.high %v760_v54, %v755_v49, %v3588_v39  ;;  %v1027_v63 = vand.u32 2139095040, %v3575_v24 }
 0x11b   : > { %v3592_v51 = vsub.s32 %v876_v9, %v879_v41  ;;  %v3595_v1 = vmul.u32.u64.low %v760_v54, %v759_v44  ;;  %v3596_v2 = vmul.u32.u64.high %v760_v54, %v759_v44, %v3595_v1  ;;  %v514_v46 = vadd.s32 1, %v2849_v45 }
 0x11c   : > { %v751_v4 = vsel %vm745_vm4, %v748_v60, %v750_v62  ;;  %v1028_v5 = vshrl.u32 %v1027_v63, 23  ;;  %v676_v6 = vclz %v2854_v59  ;;  %v770_v7 = vadd.s32 1, %v3589_v57 }
 0x11d   : > { %v882_v3 = vsub.s32 0, %v3592_v51  ;;  %v767_v9 = vmul.u32 %v760_v54, %v751_v4  ;;  %vm769_vm5 = vc.u32 %v3596_v2, %v3588_v39  ;;  %vm515_vm6 = vcmp.gt.s32.totalorder %v514_v46, 0 }
 0x11e   : > { %v2869_v12 = vadd.s32 4294967169, %v1028_v5  ;;  %v771_v14 = vsel %vm769_vm5, %v770_v7, %v3589_v57  ;;  %v3609_v56 = vadd.f32 %v3450_v17, %v3470_v34  ;;  %v2855_v16 = vadd.s32 4294967294, %v676_v6 }
 0x11f   : > { %v2862_v11 = vmin.u32 %v882_v3, %v3592_v51  ;;  %v772_v22 = vadd.s32 %v771_v14, %v767_v9  ;;  %v5192_v23 = vand.u32 2147483647, %v3575_v24  ;;  %v3612_v43 = vsel %vm515_vm6, %v514_v46, 0 }
 0x120   : > { %v1034_v15 = vadd.s32 1, %v2869_v12  ;;  %5307 = vst [vmem:[#allocation8_spill] sm:$0xff] %v3609_v56  ;;  %v923_v49 = vand.u32 2139095040, %v3609_v56  ;;  %vm2856_vm8 = vcmp.lt.s32.totalorder %v2855_v16, 0  ;;  %v3623_v31 = vand.u32 31, %v3612_v43 }
 0x121   : > { %v884_v18 = vclz %v2862_v11  ;;  %v773_v33 = vadd.s32 536870912, %v772_v22  ;;  %v1031_v34 = vand.u32 8388607, %v5192_v23  ;;  %v3620_v60 = vsel %vm2856_vm8, 0, %v2855_v16 }
 0x122   : > { %vm1035_vm7 = vcmp.gt.s32.totalorder %v1034_v15, 0  ;;  %5309 = vst [vmem:[#allocation10_spill] sm:$0xff] %v3623_v31  ;;  %v924_v62 = vshrl.u32 %v923_v49, 23  ;;  %v664_v12 = vadd.s32 %v3506_v32, %v3503_v30  ;;  %v684_v49 = vsub.s32 4294967266, %v3620_v60 }
 0x123   : > { %v1036_v35 = vsel %vm1035_vm7, %v1034_v15, 0  ;;  %v2863_v38 = vadd.s32 4294967294, %v884_v18  ;;  %v3615_v54 = vshrl.u32 %v773_v33, 30  ;;  %v1032_v44 = vor.u32 8388608, %v1031_v34 }
 0x124   : > { %v1038_v45 = vand.u32 31, %v1036_v35  ;;  %v1037_v1 = vshrl.u32 %v1036_v35, 5  ;;  %v2865_v15 = vadd.s32 4294967169, %v924_v62 }
 0x125   : > { %5308 = vst [vmem:[#allocation9_spill] sm:$0xff] %v3615_v54  ;;  %v775_v59 = vshll.u32 %v3615_v54, 30  ;;  %vm2864_vm9 = vcmp.lt.s32.totalorder %v2863_v38, 0 }
 0x126   : > { %v1039_v41 = vsub.s32 32, %v1038_v45  ;;  %v1041_v46 = vshll.u32 %v5202_v48, %v1038_v45  ;;  %v1044_v3 = vshll.u32 %v5200_v50, %v1038_v45  ;;  %v1047_v6 = vshll.u32 %v5197_v55, %v1038_v45 }
 0x127   : > { %v3630_v5 = vsub.s32 %v772_v22, %v775_v59  ;;  %v1050_v7 = vshll.u32 %v5213_v58, %v1038_v45  ;;  %v1053_v33 = vshll.u32 %v5215_v61, %v1038_v45  ;;  %v680_v22 = vsub.s32 32, %v3620_v60 }
 0x128   : > { %v1042_v57 = vshrl.u32 %v5200_v50, %v1039_v41  ;;  %v1045_v63 = vshrl.u32 %v5197_v55, %v1039_v41  ;;  %v1048_v4 = vshrl.u32 %v5213_v58, %v1039_v41  ;;  %v1051_v11 = vshrl.u32 %v5215_v61, %v1039_v41 }
 0x129   : > { %v1054_v35 = vshrl.u32 %v5204_v0, %v1039_v41  ;;  %v3642_v34 = vsel %vm2864_vm9, 0, %v2863_v38  ;;  %v1072_v59 = vshll.u32 %v1032_v44, 8  ;;  %v778_v23 = vsub.s32 0, %v3630_v5 }
 0x12a   : > { %v1043_v9 = vor.u32 %v1042_v57, %v1041_v46  ;;  %v1046_v14 = vor.u32 %v1045_v63, %v1044_v3  ;;  %v1049_v16 = vor.u32 %v1048_v4, %v1047_v6  ;;  %v1052_v18 = vor.u32 %v1051_v11, %v1050_v7 }
 0x12b   : > { %v1055_v30 = vor.u32 %v1054_v35, %v1053_v33  ;;  %vm1056_vm10 = vcmp.lt.s32.totalorder %v1037_v1, 1  ;;  %vm1059_vm11 = vcmp.lt.s32.totalorder %v1037_v1, 4  ;;  %vm1058_vm12 = vcmp.lt.s32.totalorder %v1037_v1, 3 }
 0x12c   : > { %v1064_v32 = vsel %vm1056_vm10, %v1043_v9, %v1046_v14  ;;  %v1065_v62 = vsel %vm1059_vm11, %v1052_v18, 920167782  ;;  %v930_v45 = vadd.s32 1, %v2865_v15  ;;  %vm1057_vm13 = vcmp.lt.s32.totalorder %v1037_v1, 2  ;;  %v3657_v15 = vpop.f32.mrb[12].mxu0 }
 0x12d   : > { %v1061_v57 = vsel %vm1059_vm11, %v1049_v16, 2102212464  ;;  %v1066_v63 = vsel %vm1058_vm12, %v1049_v16, %v1065_v62  ;;  %v1068_v46 = vsel %vm1056_vm10, %v1046_v14, %v1049_v16  ;;  %v892_v38 = vsub.s32 4294967266, %v3642_v34 }
 0x12e   : > { %v1040_v44 = vshrl.u32 %v5202_v48, %v1039_v41  ;;  %v1067_v3 = vsel %vm1057_vm13, %v1064_v32, %v1066_v63  ;;  %v1069_v4 = vsel %vm1059_vm11, %v1055_v30, 1326507024  ;;  %v2858_v6 = vmin.u32 %v778_v23, %v3630_v5 }
 0x12f   : > { %v1070_v7 = vsel %vm1058_vm12, %v1052_v18, %v1069_v4  ;;  %v3653_v11 = vmul.u32.u64.low %v1072_v59, %v1067_v3  ;;  %v3654_v33 = vmul.u32.u64.high %v1072_v59, %v1067_v3, %v3653_v11  ;;  %v1062_v16 = vsel %vm1058_vm12, %v1046_v14, %v1061_v57 }
 0x130   : > { %v1060_v35 = vsel %vm1056_vm10, %v1040_v44, %v1043_v9  ;;  %v1071_v62 = vsel %vm1057_vm13, %v1068_v46, %v1070_v7  ;;  %vm931_vm14 = vcmp.gt.s32.totalorder %v930_v45, 0  ;;  %v682_v41 = vshrl.u32 %v664_v12, %v680_v22 }
 0x131   : > { %v685_v32 = vadd.s32 127, %v684_v49  ;;  %v5194_v30 = vand.u32 2147483647, %v3609_v56  ;;  %v681_v23 = vshll.u32 %v3551_v52, %v3620_v60  ;;  %v932_v3 = vsel %vm931_vm14, %v930_v45, 0 }
 0x132   : > { %v3665_v18 = vmul.u32.u64.low %v1072_v59, %v1071_v62  ;;  %v3666_v63 = vmul.u32.u64.high %v1072_v59, %v1071_v62, %v3665_v18  ;;  %v893_v4 = vadd.s32 127, %v892_v38  ;;  %v780_v37 = vclz %v2858_v6 }
 0x133   : > { %v1063_v9 = vsel %vm1057_vm13, %v1060_v35, %v1062_v16  ;;  %v1082_v14 = vadd.s32 1, %v3654_v33  ;;  %v3671_v57 = vsub.s32 32, %v3623_v31  ;;  %v872_v12 = vadd.s32 %v3547_v47, %v3543_v20 }
 0x134   : > { %v934_v22 = vand.u32 31, %v932_v3  ;;  %v3675_v49 = vor.u32 %v682_v41, %v681_v23  ;;  %v686_v52 = vshll.u32 %v685_v32, 23  ;;  %v927_v60 = vand.u32 8388607, %v5194_v30 }
 0x135   : > { %5310 = vst [vmem:[#allocation11_spill] sm:$0xff] %v3671_v57  ;;  %v3681_v45 = vadd.f32 %v3474_v40, %v3450_v17  ;;  %v888_v1 = vsub.s32 32, %v3642_v34  ;;  %v1079_v46 = vmul.u32 %v1072_v59, %v1063_v9  ;;  %vm1081_vm15 = vc.u32 %v3666_v63, %v3653_v11 }
 0x136   : > { %v935_v38 = vsub.s32 32, %v934_v22  ;;  %v894_v44 = vshll.u32 %v893_v4, 23  ;;  %v2859_v20 = vadd.s32 4294967294, %v780_v37  ;;  %v1083_v47 = vsel %vm1081_vm15, %v1082_v14, %v3654_v33 }
 0x137   : > { %5311 = vst [vmem:[#allocation12_spill] sm:$0xff] %v3681_v45  ;;  %v937_v6 = vshll.u32 %v5202_v48, %v934_v22  ;;  %v1084_v7 = vadd.s32 %v1083_v47, %v1079_v46  ;;  %v940_v16 = vshll.u32 %v5200_v50, %v934_v22  ;;  %v933_v62 = vshrl.u32 %v932_v3, 5 }
 0x138   : > { %v938_v35 = vshrl.u32 %v5200_v50, %v935_v38  ;;  %v941_v40 = vshrl.u32 %v5197_v55, %v935_v38  ;;  %v943_v59 = vshll.u32 %v5197_v55, %v934_v22  ;;  %v944_v41 = vshrl.u32 %v5213_v58, %v935_v38 }
 0x139   : > { %v946_v32 = vshll.u32 %v5213_v58, %v934_v22  ;;  %v1085_v23 = vadd.s32 536870912, %v1084_v7  ;;  %v947_v33 = vshrl.u32 %v5215_v61, %v935_v38  ;;  %v3695_v4 = vor.u32 4788187, %v686_v52 }
 0x13a   : > { %v939_v37 = vor.u32 %v938_v35, %v937_v6  ;;  %v942_v18 = vor.u32 %v941_v40, %v940_v16  ;;  %v945_v9 = vor.u32 %v944_v41, %v943_v59  ;;  %v949_v14 = vshll.u32 %v5215_v61, %v934_v22 }
 0x13b   : > { %v950_v46 = vshrl.u32 %v5204_v0, %v935_v38  ;;  %v890_v47 = vshrl.u32 %v872_v12, %v888_v1  ;;  %v3699_v3 = vshrl.u32 %v1085_v23, 30  ;;  %v928_v30 = vor.u32 8388608, %v927_v60 }
 0x13c   : > { %v948_v36 = vor.u32 %v947_v33, %v946_v32  ;;  %v895_v21 = vor.u32 4788187, %v894_v44  ;;  %vm2860_vm2 = vcmp.lt.s32.totalorder %v2859_v20, 0  ;;  %vm952_vm3 = vcmp.lt.s32.totalorder %v933_v62, 1 }
 0x13d   : > { %5312 = vst [vmem:[#allocation13_spill] sm:$0xff] %v3699_v3  ;;  %v951_v55 = vor.u32 %v950_v46, %v949_v14  ;;  %v1087_v6 = vshll.u32 %v3699_v3, 30  ;;  %vm955_vm4 = vcmp.lt.s32.totalorder %v933_v62, 4  ;;  %v960_v52 = vsel %vm952_vm3, %v939_v37, %v942_v18 }
 0x13e   : > { %v1235_v35 = vand.u32 2139095040, %v3681_v45  ;;  %v936_v22 = vshrl.u32 %v5202_v48, %v935_v38  ;;  %vm954_vm5 = vcmp.lt.s32.totalorder %v933_v62, 3  ;;  %v957_v16 = vsel %vm955_vm4, %v945_v9, 2102212464 }
 0x13f   : > { %v961_v12 = vsel %vm955_vm4, %v948_v36, 920167782  ;;  %v3705_v1 = vsub.s32 %v1084_v7, %v1087_v6  ;;  %vm953_vm6 = vcmp.lt.s32.totalorder %v933_v62, 2  ;;  %v964_v44 = vsel %vm952_vm3, %v942_v18, %v945_v9 }
 0x140   : > { %v962_v60 = vsel %vm954_vm5, %v945_v9, %v961_v12  ;;  %v3708_v40 = vsel %vm2860_vm2, 0, %v2859_v20  ;;  %v965_v41 = vsel %vm955_vm4, %v951_v55, 1326507024  ;;  %v968_v32 = vshll.u32 %v928_v30, 8 }
 0x141   : > { %v963_v59 = vsel %vm953_vm6, %v960_v52, %v962_v60  ;;  %v1090_v23 = vsub.s32 0, %v3705_v1  ;;  %v956_v33 = vsel %vm952_vm3, %v936_v22, %v939_v37  ;;  %v958_v38 = vsel %vm954_vm5, %v942_v18, %v957_v16 }
 0x142   : > { %v966_v14 = vsel %vm954_vm5, %v948_v36, %v965_v41  ;;  %v3714_v7 = vmul.u32.u64.low %v968_v32, %v963_v59  ;;  %v3715_v6 = vmul.u32.u64.high %v968_v32, %v963_v59, %v3714_v7  ;;  %v1236_v12 = vshrl.u32 %v1235_v35, 23 }
 0x143   : > { %v967_v46 = vsel %vm953_vm6, %v964_v44, %v966_v14  ;;  %v889_v20 = vshll.u32 %v3592_v51, %v3642_v34  ;;  %v788_v9 = vsub.s32 4294967266, %v3708_v40  ;;  %v959_v52 = vsel %vm953_vm6, %v956_v33, %v958_v38  ;;  %v3733_v34 = vpop.f32.mrb[13].mxu0 }
 0x144   : > { %v3721_v55 = vmul.u32.u64.low %v968_v32, %v967_v46  ;;  %v3722_v30 = vmul.u32.u64.high %v968_v32, %v967_v46, %v3721_v55  ;;  %v5199_v37 = vand.u32 2147483647, %v3681_v45  ;;  %v2877_v36 = vadd.s32 4294967169, %v1236_v12 }
 0x145   : > { %v3728_v18 = vadd.f32 %v3450_v17, %v3476_v42  ;;  %v688_v22 = vand.u32 2147483647, %v3695_v4  ;;  %v690_v35 = vcvt.s32.f32 %v3675_v49  ;;  %v891_v16 = vor.u32 %v890_v47, %v889_v20 }
 0x146   : > { %v2870_v51 = vmin.u32 %v1090_v23, %v3705_v1  ;;  %v896_v60 = vand.u32 2147483647, %v895_v21  ;;  %v768_v62 = vadd.s32 %v3588_v39, %v3596_v2  ;;  %v978_v44 = vadd.s32 1, %v3715_v6 }
 0x147   : > { %v1242_v59 = vadd.s32 1, %v2877_v36  ;;  %v784_v41 = vsub.s32 32, %v3708_v40  ;;  %v789_v42 = vadd.s32 127, %v788_v9  ;;  %v975_v33 = vmul.u32 %v968_v32, %v959_v52 }
 0x148   : > { %vm977_vm7 = vc.u32 %v3722_v30, %v3714_v7  ;;  %v1239_v4 = vand.u32 8388607, %v5199_v37  ;;  %v1131_v21 = vand.u32 2139095040, %v3728_v18  ;;  %v898_v47 = vcvt.s32.f32 %v891_v16 }
 0x149   : > { %v979_v49 = vsel %vm977_vm7, %v978_v44, %v3715_v6  ;;  %vm1243_vm8 = vcmp.gt.s32.totalorder %v1242_v59, 0  ;;  %v1092_v39 = vclz %v2870_v51  ;;  %v3745_v38 = vmul.f32 %v690_v35, %v688_v22 }
 0x14a   : > { %v980_v2 = vadd.s32 %v979_v49, %v975_v33  ;;  %v1244_v23 = vsel %vm1243_vm8, %v1242_v59, 0  ;;  %v3749_v32 = vshll.u32 %v5213_v58, %v3623_v31  ;;  %v3753_v14 = vshrl.u32 %v5215_v61, %v3671_v57 }
 0x14b   : > { %v1246_v46 = vand.u32 31, %v1244_v23  ;;  %v3755_v6 = vmul.f32 %v898_v47, %v896_v60  ;;  %v785_v12 = vshll.u32 %v3630_v5, %v3708_v40  ;;  %v786_v20 = vshrl.u32 %v768_v62, %v784_v41 }
 0x14c   : > { %v981_v9 = vadd.s32 536870912, %v980_v2  ;;  %v790_v55 = vshll.u32 %v789_v42, 23  ;;  %v1240_v52 = vor.u32 8388608, %v1239_v4  ;;  %v1132_v22 = vshrl.u32 %v1131_v21, 23 }
 0x14d   : > { %v1247_v36 = vsub.s32 32, %v1246_v46  ;;  %v2871_v35 = vadd.s32 4294967294, %v1092_v39  ;;  %v1249_v51 = vshll.u32 %v5202_v48, %v1246_v46  ;;  %v1252_v44 = vshll.u32 %v5200_v50, %v1246_v46 }
 0x14e   : > { %v3759_v16 = vshrl.u32 %v981_v9, 30  ;;  %v5314_v60 = vmov 2131351028   ;;  %v1245_v62 = vshrl.u32 %v1244_v23, 5  ;;  %v1258_v41 = vshll.u32 %v5213_v58, %v1246_v46 }
 0x14f   : > { %v1250_v59 = vshrl.u32 %v5200_v50, %v1247_v36  ;;  %v1253_v33 = vshrl.u32 %v5314_v60, %v1247_v36  ;;  %v1255_v49 = vshll.u32 %v5314_v60, %v1246_v46  ;;  %v1256_v5 = vshrl.u32 %v5213_v58, %v1247_v36 }
 0x150   : > { %5313 = vst [vmem:[#allocation14_spill] sm:$0xff] %v3759_v16  ;;  %v983_v40 = vshll.u32 %v3759_v16, 30  ;;  %v1259_v42 = vshrl.u32 %v5215_v61, %v1247_v36  ;;  %v787_v4 = vor.u32 %v786_v20, %v785_v12  ;;  %v791_v9 = vor.u32 4788187, %v790_v55 }
 0x151   : > { %v1251_v21 = vor.u32 %v1250_v59, %v1249_v51  ;;  %v1254_v47 = vor.u32 %v1253_v33, %v1252_v44  ;;  %v1257_v39 = vor.u32 %v1256_v5, %v1255_v49  ;;  %v5212_v48 = vand.u32 2147483647, %v3728_v18 }
 0x152   : > { %v3770_v37 = vsub.s32 %v980_v2, %v983_v40  ;;  %v1260_v50 = vor.u32 %v1259_v42, %v1258_v41  ;;  %v1261_v0 = vshll.u32 %v5215_v61, %v1246_v46  ;;  %v5315_v3 = vmov 1326507024  }
 0x153   : > { %v1262_v28 = vshrl.u32 %v5315_v3, %v1247_v36  ;;  %v1280_v16 = vshll.u32 %v1240_v52, 8  ;;  %v2873_v23 = vadd.s32 4294967169, %v1132_v22  ;;  %vm2872_vm9 = vcmp.lt.s32.totalorder %v2871_v35, 0 }
 0x154   : > { %vm1264_vm10 = vcmp.lt.s32.totalorder %v1245_v62, 1  ;;  %vm1266_vm11 = vcmp.lt.s32.totalorder %v1245_v62, 3  ;;  %vm1267_vm12 = vcmp.lt.s32.totalorder %v1245_v62, 4  ;;  %v986_v2 = vsub.s32 0, %v3770_v37 }
 0x155   : > { %v1263_v12 = vor.u32 %v1262_v28, %v1261_v0  ;;  %v1269_v20 = vsel %vm1267_vm12, %v1257_v39, 2102212464  ;;  %v1272_v51 = vsel %vm1264_vm10, %v1251_v21, %v1254_v47  ;;  %v1273_v44 = vsel %vm1267_vm12, %v1260_v50, 920167782 }
 0x156   : > { %v5316_v55 = vmov 683565275   ;;  %vm1265_vm13 = vcmp.lt.s32.totalorder %v1245_v62, 2  ;;  %v1274_v33 = vsel %vm1266_vm11, %v1257_v39, %v1273_v44  ;;  %v3778_v46 = vsel %vm2872_vm9, 0, %v2871_v35 }
 0x157   : > { %v1248_v59 = vshrl.u32 %v5316_v55, %v1247_v36  ;;  %v1275_v52 = vsel %vm1265_vm13, %v1272_v51, %v1274_v33  ;;  %v1276_v22 = vsel %vm1264_vm10, %v1254_v47, %v1257_v39  ;;  %v1277_v49 = vsel %vm1267_vm12, %v1263_v12, 1326507024 }
 0x158   : > { %v1270_v40 = vsel %vm1266_vm11, %v1254_v47, %v1269_v20  ;;  %v1278_v0 = vsel %vm1266_vm11, %v1260_v50, %v1277_v49  ;;  %v1135_v28 = vand.u32 8388607, %v5212_v48  ;;  %v1138_v35 = vadd.s32 1, %v2873_v23  ;;  %v3795_v47 = vpop.f32.mrb[14].mxu0 }
 0x159   : > { %v1268_v5 = vsel %vm1264_vm10, %v1248_v59, %v1251_v21  ;;  %v1279_v41 = vsel %vm1265_vm13, %v1276_v22, %v1278_v0  ;;  %v3786_v36 = vmul.u32.u64.low %v1280_v16, %v1275_v52  ;;  %v3787_v42 = vmul.u32.u64.high %v1280_v16, %v1275_v52, %v3786_v36 }
 0x15a   : > { %v1100_v44 = vsub.s32 4294967266, %v3778_v46  ;;  %v2866_v39 = vmin.u32 %v986_v2, %v3770_v37  ;;  %v3792_v12 = vmul.u32.u64.low %v1280_v16, %v1279_v41  ;;  %v3793_v21 = vmul.u32.u64.high %v1280_v16, %v1279_v41, %v3792_v12 }
 0x15b   : > { %v3798_v50 = vshrl.u32 %v3612_v43, 5  ;;  %v3802_v20 = vshll.u32 %v5215_v61, %v3623_v31  ;;  %v3806_v51 = vshrl.u32 %v5315_v3, %v3671_v57  ;;  %vm1139_vm14 = vcmp.gt.s32.totalorder %v1138_v35, 0 }
 0x15c   : > { %v3810_v23 = vor.u32 %v3753_v14, %v3749_v32  ;;  %v792_v2 = vand.u32 2147483647, %v791_v9  ;;  %v1271_v59 = vsel %vm1265_vm13, %v1268_v5, %v1270_v40  ;;  %v1140_v33 = vsel %vm1139_vm14, %v1138_v35, 0 }
 0x15d   : > { %v1096_v22 = vsub.s32 32, %v3778_v46  ;;  %v1290_v49 = vadd.s32 1, %v3787_v42  ;;  %v794_v0 = vcvt.s32.f32 %v787_v4  ;;  %v1101_v41 = vadd.s32 127, %v1100_v44 }
 0x15e   : > { %5317 = vst [vmem:[#allocation15_spill] sm:$0xff] %v3810_v23  ;;  %v988_v12 = vclz %v2866_v39  ;;  %v1136_v48 = vor.u32 8388608, %v1135_v28  ;;  %v1080_v32 = vadd.s32 %v3653_v11, %v3666_v63  ;;  %v1287_v14 = vmul.u32 %v1280_v16, %v1271_v59 }
 0x15f   : > { %vm1289_vm15 = vc.u32 %v3793_v21, %v3786_v36  ;;  %v1142_v62 = vand.u32 31, %v1140_v33  ;;  %v3821_v9 = vmul.f32 %v794_v0, %v792_v2  ;;  %v1097_v5 = vshll.u32 %v3705_v1, %v3778_v46 }
 0x160   : > { %v1291_v40 = vsel %vm1289_vm15, %v1290_v49, %v3787_v42  ;;  %v3828_v4 = vadd.f32 %v3484_v53, %v3450_v17  ;;  %v1098_v28 = vshrl.u32 %v1080_v32, %v1096_v22  ;;  %v1141_v44 = vshrl.u32 %v1140_v33, 5 }
 0x161   : > { %v1292_v35 = vadd.s32 %v1291_v40, %v1287_v14  ;;  %v1143_v11 = vsub.s32 32, %v1142_v62  ;;  %v1102_v63 = vshll.u32 %v1101_v41, 23  ;;  %v3830_v16 = vadd.s32 4294967294, %v988_v12 }
 0x162   : > { %v1145_v39 = vshll.u32 %v5316_v55, %v1142_v62  ;;  %v3833_v2 = vshll.u32 %v1136_v48, 8  ;;  %v5318_v0 = vmov 2475754826   ;;  %v1151_v17 = vshll.u32 %v5314_v60, %v1142_v62 }
 0x163   : > { %v1293_v59 = vadd.s32 536870912, %v1292_v35  ;;  %v1146_v1 = vshrl.u32 %v5318_v0, %v1143_v11  ;;  %v1148_v46 = vshll.u32 %v5318_v0, %v1142_v62  ;;  %v1149_v42 = vshrl.u32 %v5314_v60, %v1143_v11 }
 0x164   : > { %v1152_v53 = vshrl.u32 %v5213_v58, %v1143_v11  ;;  %v1154_v33 = vshll.u32 %v5213_v58, %v1142_v62  ;;  %v1155_v22 = vshrl.u32 %v5215_v61, %v1143_v11  ;;  %vm5280_vm2 = vcmp.lt.s32.totalorder %v3453_v19, 0 }
 0x165   : > { %v3843_v49 = vshrl.u32 %v1293_v59, 30  ;;  %v1147_v48 = vor.u32 %v1146_v1, %v1145_v39  ;;  %v1150_v41 = vor.u32 %v1149_v42, %v1148_v46  ;;  %vm1160_vm3 = vcmp.lt.s32.totalorder %v1141_v44, 1 }
 0x166   : > { %vm5266_vm4 = vcmp.lt.s32.totalorder %v3460_v25, 0  ;;  %v1153_v12 = vor.u32 %v1152_v53, %v1151_v17  ;;  %v1156_v32 = vor.u32 %v1155_v22, %v1154_v33  ;;  %v1157_v14 = vshll.u32 %v5215_v61, %v1142_v62 }
 0x167   : > { %5319 = vst [vmem:[#allocation16_spill] sm:$0xff] %v3843_v49  ;;  %v1158_v40 = vshrl.u32 %v5315_v3, %v1143_v11  ;;  %v1295_v52 = vshll.u32 %v3843_v49, 30  ;;  %vm1162_vm5 = vcmp.lt.s32.totalorder %v1141_v44, 3  ;;  %vm1163_vm6 = vcmp.lt.s32.totalorder %v1141_v44, 4 }
 0x168   : > { %v1168_v58 = vsel %vm1160_vm3, %v1147_v48, %v1150_v41  ;;  %v5320_v59 = vand.u32 2147483647, %v3453_v19  ;;  %v5321_v39 = vmov 0  ;;  %v1144_v1 = vshrl.u32 %v5316_v55, %v1143_v11 }
 0x169   : > { %v1159_v46 = vor.u32 %v1158_v40, %v1157_v14  ;;  %v1165_v42 = vsel %vm1163_vm6, %v1153_v12, 2102212464  ;;  %v1169_v17 = vsel %vm1163_vm6, %v1156_v32, 920167782  ;;  %v3857_v62 = vsub.s32 %v1292_v35, %v1295_v52 }
 0x16a   : > { %vm3852_vm7 = vcmp.le.f32.partialorder %v5320_v59, 0.7853982  ;;  %vm1161_vm8 = vcmp.lt.s32.totalorder %v1141_v44, 2  ;;  %v1170_v53 = vsel %vm1162_vm5, %v1153_v12, %v1169_v17  ;;  %v1172_v33 = vsel %vm1160_vm3, %v1150_v41, %v1153_v12 }
 0x16b   : > { %v5322_v39 = vsel %vm3852_vm7, 4294967295, %v5321_v39  ;;  %v5324_v22 = vand.u32 2147483647, %v3460_v25  ;;  %v5325_v61 = vmov 0  ;;  %v1164_v59 = vsel %vm1160_vm3, %v1144_v1, %v1147_v48 }
 0x16c   : > { %5323 = vst [vmem:[#allocation17_spill] sm:$0xff] %v5322_v39  ;;  %v1166_v11 = vsel %vm1162_vm5, %v1150_v41, %v1165_v42  ;;  %v1171_v14 = vsel %vm1161_vm8, %v1168_v58, %v1170_v53  ;;  %v1173_v40 = vsel %vm1163_vm6, %v1159_v46, 1326507024  ;;  %vm5267_vm10 = vcmp.lt.s32.totalorder %v3465_v29, 0  ;;  %v3883_v58 = vld [vmem:[%s5186_s2] ss:$0 sm:$0xff] }
 0x16d   : > { %vm3863_vm9 = vcmp.le.f32.partialorder %v5324_v22, 0.7853982  ;;  %v1298_v52 = vsub.s32 0, %v3857_v62  ;;  %v1174_v35 = vsel %vm1162_vm5, %v1156_v32, %v1173_v40  ;;  %v1103_v22 = vor.u32 4788187, %v1102_v63  ;;  %v3889_v32 = vpop.f32.mrb[15].mxu0 }
 0x16e   : > { %v5326_v61 = vsel %vm3863_vm9, 4294967295, %v5325_v61  ;;  %v3874_v12 = vmul.u32.u64.low %v3833_v2, %v1171_v14  ;;  %v3875_v17 = vmul.u32.u64.high %v3833_v2, %v1171_v14, %v3874_v12  ;;  %v1175_v43 = vsel %vm1161_vm8, %v1172_v33, %v1174_v35 }
 0x16f   : > { %5327 = vst [vmem:[#allocation18_spill] sm:$0xff] %v5326_v61  ;;  %v1443_v48 = vand.u32 2139095040, %v3828_v4  ;;  %v3887_v41 = vadd.f32 %v3883_v58, %v3494_v8  ;;  %v1099_v1 = vor.u32 %v1098_v28, %v1097_v5  ;;  %v2878_v46 = vmin.u32 %v1298_v52, %v3857_v62 }
 0x170   : > { %v3893_v63 = vmul.u32.u64.low %v3833_v2, %v1175_v43  ;;  %v3894_v42 = vmul.u32.u64.high %v3833_v2, %v1175_v43, %v3893_v63  ;;  %v5328_v53 = vxor.u32 2147483648, %v3745_v38  ;;  %v5329_v8 = vand.u32 2147483647, %v3465_v29 }
 0x171   : > { %v5330_v40 = vmov 0  ;;  %v1167_v5 = vsel %vm1161_vm8, %v1164_v59, %v1166_v11  ;;  %v1444_v28 = vshrl.u32 %v1443_v48, 23  ;;  %v5333_v43 = vxor.u32 2147483648, %v3755_v6 }
 0x172   : > { %v693_v33 = vsel %vm5280_vm2, %v5328_v53, %v3745_v38  ;;  %vm3905_vm11 = vcmp.le.f32.partialorder %v5329_v8, 0.7853982  ;;  %vm2868_vm12 = vcmp.lt.s32.totalorder %v3830_v16, 0  ;;  %v1300_v38 = vclz %v2878_v46 }
 0x173   : > { %v5331_v40 = vsel %vm3905_vm11, 4294967295, %v5330_v40  ;;  %v901_v52 = vsel %vm5266_vm4, %v5333_v43, %v3755_v6  ;;  %v1186_v35 = vadd.s32 1, %v3875_v17  ;;  %v796_v63 = vxor.u32 2147483648, %v3821_v9 }
 0x174   : > { %5332 = vst [vmem:[#allocation19_spill] sm:$0xff] %v5331_v40  ;;  %v1104_v53 = vand.u32 2147483647, %v1103_v22  ;;  %v2885_v8 = vadd.s32 4294967169, %v1444_v28  ;;  %v1339_v14 = vand.u32 2139095040, %v3887_v41  ;;  %v696_v44 = vsel %vm3852_vm7, %v3453_v19, %v693_v33 }
 0x175   : > { %v1106_v59 = vcvt.s32.f32 %v1099_v1  ;;  %v1183_v11 = vmul.u32 %v3833_v2, %v1167_v5  ;;  %vm1185_vm13 = vc.u32 %v3894_v42, %v3874_v12  ;;  %v3926_v6 = vsel %vm2868_vm12, 0, %v3830_v16 }
 0x176   : > { %v1187_v48 = vsel %vm1185_vm13, %v1186_v35, %v3875_v17  ;;  %v1450_v46 = vadd.s32 1, %v2885_v8  ;;  %v1340_v22 = vshrl.u32 %v1339_v14, 23  ;;  %vm539_vm14 = vcmp.lt.s32.totalorder %v3798_v50, 4 }
 0x177   : > { %v904_v28 = vsel %vm3863_vm9, %v3460_v25, %v901_v52  ;;  %v2879_v33 = vadd.s32 4294967294, %v1300_v38  ;;  %v1188_v1 = vadd.s32 %v1187_v48, %v1183_v11  ;;  %3255 = vcosq.f32 %v696_v44 }
 0x178   : > { %v797_v2 = vsel %vm5267_vm10, %v796_v63, %v3821_v9  ;;  %v3936_v5 = vmul.f32 %v1106_v59, %v1104_v53  ;;  %vm1451_vm15 = vcmp.gt.s32.totalorder %v1450_v46, 0  ;;  %3257 = vsinq.f32 %v696_v44 }
 0x179   : > { %v996_v16 = vsub.s32 4294967266, %v3926_v6  ;;  %v1189_v17 = vadd.s32 536870912, %v1188_v1  ;;  %v5217_v14 = vand.u32 2147483647, %v3828_v4  ;;  %v3943_v43 = vsel %vm539_vm14, %v3810_v23, 920167782 }
 0x17a   : > { %5334 = vst [vmem:[#allocation20_spill] sm:$0xff] %v3943_v43  ;;  %3259 = vcosq.f32 %v904_v28  ;;  %v1452_v52 = vsel %vm1451_vm15, %v1450_v46, 0  ;;  %v2881_v38 = vadd.s32 4294967169, %v1340_v22  ;;  %v3948_v9 = vsel %vm3905_vm11, %v3465_v29, %v797_v2 }
 0x17b   : > { %3261 = vsinq.f32 %v904_v28  ;;  %vm2880_vm3 = vcmp.lt.s32.totalorder %v2879_v33, 0  ;;  %v3950_v35 = vshrl.u32 %v1189_v17, 30  ;;  %v976_v53 = vadd.s32 %v3714_v7, %v3722_v30 }
 0x17c   : > { %v992_v8 = vsub.s32 32, %v3926_v6  ;;  %v1454_v44 = vand.u32 31, %v1452_v52  ;;  %v993_v59 = vshll.u32 %v3770_v37, %v3926_v6  ;;  %v997_v11 = vadd.s32 127, %v996_v16 }
 0x17d   : > { %5335 = vst [vmem:[#allocation21_spill] sm:$0xff] %v3950_v35  ;;  %v1191_v48 = vshll.u32 %v3950_v35, 30  ;;  %v1447_v46 = vand.u32 8388607, %v5217_v14  ;;  %v3961_v22 = vsel %vm2880_vm3, 0, %v2879_v33  ;;  %v1346_v17 = vadd.s32 1, %v2881_v38 }
 0x17e   : > { %v1455_v28 = vsub.s32 32, %v1454_v44  ;;  %v3966_v7 = vshrl.u32 %v1452_v52, 5  ;;  %v1457_v30 = vshll.u32 %v5316_v55, %v1454_v44  ;;  %v1460_v37 = vshll.u32 %v5318_v0, %v1454_v44 }
 0x17f   : > { %v3964_v63 = vsub.s32 %v1188_v1, %v1191_v48  ;;  %v1463_v14 = vshll.u32 %v5314_v60, %v1454_v44  ;;  %v5336_v33 = vmov 2102212464   ;;  %v5337_v1 = vmov 920167782  }
 0x180   : > { %v1458_v6 = vshrl.u32 %v5318_v0, %v1455_v28  ;;  %v1461_v16 = vshrl.u32 %v5314_v60, %v1455_v28  ;;  %v1464_v49 = vshrl.u32 %v5336_v33, %v1455_v28  ;;  %v1466_v38 = vshll.u32 %v5336_v33, %v1454_v44 }
 0x181   : > { %v1194_v35 = vsub.s32 0, %v3964_v63  ;;  %v1467_v48 = vshrl.u32 %v5337_v1, %v1455_v28  ;;  %v1469_v52 = vshll.u32 %v5337_v1, %v1454_v44  ;;  %v3978_v2 = vpop.eup %3255  ;;  %v1470_v29 = vshrl.u32 %v5315_v3, %v1455_v28 }
 0x182   : > { %5338 = vst [vmem:[#allocation22_spill] sm:$0xff] %v3978_v2  ;;  %v1459_v61 = vor.u32 %v1458_v6, %v1457_v30  ;;  %v1462_v25 = vor.u32 %v1461_v16, %v1460_v37  ;;  %v1465_v40 = vor.u32 %v1464_v49, %v1463_v14  ;;  %v3981_v39 = vpop.eup %3257  ;;  %v994_v54 = vshrl.u32 %v976_v53, %v992_v8 }
 0x183   : > { %5339 = vst [vmem:[#allocation23_spill] sm:$0xff] %v3981_v39  ;;  %v998_v19 = vshll.u32 %v997_v11, 23  ;;  %v2874_v10 = vmin.u32 %v1194_v35, %v3964_v63  ;;  %v1468_v23 = vor.u32 %v1467_v48, %v1466_v38  ;;  %v1308_v31 = vsub.s32 4294967266, %v3961_v22 }
 0x184   : > { %v3984_v43 = vpop.eup %3259  ;;  %v1448_v57 = vor.u32 8388608, %v1447_v46  ;;  %v1471_v44 = vor.u32 %v1470_v29, %v1469_v52  ;;  %v5341_v2 = vand.u32 2147483647, %v3887_v41  ;;  %vm1472_vm5 = vcmp.lt.s32.totalorder %v3966_v7, 1 }
 0x185   : > { %5340 = vst [vmem:[#allocation24_spill] sm:$0xff] %v3984_v43  ;;  %v3989_v37 = vpop.eup %3261  ;;  %vm1474_vm6 = vcmp.lt.s32.totalorder %v3966_v7, 3  ;;  %vm1475_vm8 = vcmp.lt.s32.totalorder %v3966_v7, 4  ;;  %vm1347_vm12 = vcmp.gt.s32.totalorder %v1346_v17, 0  ;;  %v1480_v49 = vsel %vm1472_vm5, %v1459_v61, %v1462_v25 }
 0x186   : > { %v1343_v30 = vand.u32 8388607, %v5341_v2  ;;  %5342 = vst [vmem:[#allocation25_spill] sm:$0xff] %v3989_v37  ;;  %v1481_v14 = vsel %vm1475_vm8, %v1468_v23, 920167782  ;;  %v1484_v35 = vsel %vm1472_vm5, %v1462_v25, %v1465_v40  ;;  %v3998_v53 = vor.u32 %v994_v54, %v993_v59 }
 0x187   : > { %v1485_v29 = vsel %vm1475_vm8, %v1471_v44, 1326507024  ;;  %v4000_v8 = vor.u32 4788187, %v998_v19  ;;  %v1196_v11 = vclz %v2874_v10  ;;  %v1482_v46 = vsel %vm1474_vm6, %v1465_v40, %v1481_v14 }
 0x188   : > { %vm1473_vm13 = vcmp.lt.s32.totalorder %v3966_v7, 2  ;;  %v1477_v2 = vsel %vm1475_vm8, %v1465_v40, 2102212464  ;;  %v1486_v6 = vsel %vm1474_vm6, %v1468_v23, %v1485_v29  ;;  %v1488_v16 = vshll.u32 %v1448_v57, 8 }
 0x189   : > { %v1456_v38 = vshrl.u32 %v5316_v55, %v1455_v28  ;;  %v1483_v48 = vsel %vm1473_vm13, %v1480_v49, %v1482_v46  ;;  %v1487_v19 = vsel %vm1473_vm13, %v1484_v35, %v1486_v6  ;;  %v1348_v10 = vsel %vm1347_vm12, %v1346_v17, 0 }
 0x18a   : > { %v4013_v54 = vadd.s32 127, %v1308_v31  ;;  %v4015_v59 = vmul.u32.u64.low %v1488_v16, %v1487_v19  ;;  %v4016_v52 = vmul.u32.u64.high %v1488_v16, %v1487_v19, %v4015_v59  ;;  %v1344_v40 = vor.u32 8388608, %v1343_v30 }
 0x18b   : > { %v4020_v23 = vadd.s32 %v3786_v36, %v3793_v21  ;;  %v2875_v57 = vadd.s32 4294967294, %v1196_v11  ;;  %v1476_v28 = vsel %vm1472_vm5, %v1456_v38, %v1459_v61  ;;  %v1478_v44 = vsel %vm1474_vm6, %v1462_v25, %v1477_v2 }
 0x18c   : > { %v4027_v17 = vmul.u32.u64.low %v1488_v16, %v1483_v48  ;;  %v4028_v31 = vmul.u32.u64.high %v1488_v16, %v1483_v48, %v4027_v17  ;;  %v1350_v14 = vand.u32 31, %v1348_v10  ;;  %v1304_v35 = vsub.s32 32, %v3961_v22 }
 0x18d   : > { %v4035_v36 = vadd.f32 %v3883_v58, %v3535_v27  ;;  %v4039_v61 = vadd.f32 %v3883_v58, %v3602_v13  ;;  %v1310_v25 = vshll.u32 %v4013_v54, 23  ;;  %v1479_v21 = vsel %vm1473_vm13, %v1476_v28, %v1478_v44 }
 0x18e   : > { %v1351_v29 = vsub.s32 32, %v1350_v14  ;;  %v4044_v11 = vshll.u32 %v1344_v40, 8  ;;  %vm2876_vm15 = vcmp.lt.s32.totalorder %v2875_v57, 0  ;;  %vm1497_vm3 = vc.u32 %v4016_v52, %v4027_v17 }
 0x18f   : > { %v1349_v46 = vshrl.u32 %v1348_v10, 5  ;;  %v1353_v27 = vshll.u32 %v5316_v55, %v1350_v14  ;;  %v1498_v2 = vadd.s32 1, %v4028_v31  ;;  %v1356_v6 = vshll.u32 %v5318_v0, %v1350_v14 }
 0x190   : > { %v1354_v13 = vshrl.u32 %v5318_v0, %v1351_v29  ;;  %v1357_v38 = vshrl.u32 %v5314_v60, %v1351_v29  ;;  %v1495_v7 = vmul.u32 %v1488_v16, %v1479_v21  ;;  %v1359_v48 = vshll.u32 %v5314_v60, %v1350_v14 }
 0x191   : > { %v1360_v19 = vshrl.u32 %v5336_v33, %v1351_v29  ;;  %v1362_v54 = vshll.u32 %v5336_v33, %v1350_v14  ;;  %v1499_v59 = vsel %vm1497_vm3, %v1498_v2, %v4028_v31  ;;  %v1363_v28 = vshrl.u32 %v5337_v1, %v1351_v29 }
 0x192   : > { %v1355_v10 = vor.u32 %v1354_v13, %v1353_v27  ;;  %v1358_v40 = vor.u32 %v1357_v38, %v1356_v6  ;;  %v4059_v44 = vsel %vm2876_vm15, 0, %v2875_v57  ;;  %v1500_v49 = vadd.s32 %v1499_v59, %v1495_v7 }
 0x193   : > { %v1361_v30 = vor.u32 %v1360_v19, %v1359_v48  ;;  %v1651_v43 = vand.u32 2139095040, %v4035_v36  ;;  %vm5253_vm5 = vcmp.lt.s32.totalorder %v3575_v24, 0  ;;  %v1364_v16 = vor.u32 %v1363_v28, %v1362_v54 }
 0x194   : > { %v1365_v21 = vshll.u32 %v5337_v1, %v1350_v14  ;;  %v1366_v37 = vshrl.u32 %v5315_v3, %v1351_v29  ;;  %vm1368_vm6 = vcmp.lt.s32.totalorder %v1349_v46, 1  ;;  %v1501_v31 = vadd.s32 536870912, %v1500_v49 }
 0x195   : > { %v1352_v27 = vshrl.u32 %v5316_v55, %v1351_v29  ;;  %vm1370_vm8 = vcmp.lt.s32.totalorder %v1349_v46, 3  ;;  %vm1371_vm12 = vcmp.lt.s32.totalorder %v1349_v46, 4  ;;  %v1376_v13 = vsel %vm1368_vm6, %v1355_v10, %v1358_v40 }
 0x196   : > { %v1367_v2 = vor.u32 %v1366_v37, %v1365_v21  ;;  %v1373_v57 = vsel %vm1371_vm12, %v1361_v30, 2102212464  ;;  %v1377_v6 = vsel %vm1371_vm12, %v1364_v16, 920167782  ;;  %v1204_v38 = vsub.s32 4294967266, %v4059_v44 }
 0x197   : > { %v4067_v7 = vshrl.u32 %v1501_v31, 30  ;;  %vm1369_vm13 = vcmp.lt.s32.totalorder %v1349_v46, 2  ;;  %v1378_v48 = vsel %vm1370_vm8, %v1361_v30, %v1377_v6  ;;  %v1372_v14 = vsel %vm1368_vm6, %v1352_v27, %v1355_v10 }
 0x198   : > { %v1379_v19 = vsel %vm1369_vm13, %v1376_v13, %v1378_v48  ;;  %v1380_v54 = vsel %vm1368_vm6, %v1358_v40, %v1361_v30  ;;  %v1381_v59 = vsel %vm1371_vm12, %v1367_v2, 1326507024  ;;  %v1374_v28 = vsel %vm1370_vm8, %v1358_v40, %v1373_v57 }
 0x199   : > { %5343 = vst [vmem:[#allocation26_spill] sm:$0xff] %v4067_v7  ;;  %v1503_v29 = vshll.u32 %v4067_v7, 30  ;;  %v1382_v37 = vsel %vm1370_vm8, %v1364_v16, %v1381_v59  ;;  %v1652_v21 = vshrl.u32 %v1651_v43, 23  ;;  %v5344_v39 = vand.u32 2147483647, %v3575_v24 }
 0x19a   : > { %v5345_v31 = vmov 0  ;;  %v1306_v6 = vshrl.u32 %v4020_v23, %v1304_v35  ;;  %v1383_v10 = vsel %vm1369_vm13, %v1380_v54, %v1382_v37  ;;  %v1311_v2 = vor.u32 4788187, %v1310_v25 }
 0x19b   : > { %vm4076_vm15 = vcmp.le.f32.partialorder %v5344_v39, 0.7853982  ;;  %v4083_v30 = vmul.u32.u64.low %v4044_v11, %v1379_v19  ;;  %v4084_v27 = vmul.u32.u64.high %v4044_v11, %v1379_v19, %v4083_v30  ;;  %v4087_v40 = vsub.s32 %v1500_v49, %v1503_v29 }
 0x19c   : > { %v5346_v31 = vsel %vm4076_vm15, 4294967295, %v5345_v31  ;;  %v4090_v43 = vmul.u32.u64.low %v4044_v11, %v1383_v10  ;;  %v4091_v16 = vmul.u32.u64.high %v4044_v11, %v1383_v10, %v4090_v43  ;;  %v1305_v39 = vshll.u32 %v3857_v62, %v3961_v22 }
 0x19d   : > { %5347 = vst [vmem:[#allocation27_spill] sm:$0xff] %v5346_v31  ;;  %v1205_v57 = vadd.s32 127, %v1204_v38  ;;  %v1375_v23 = vsel %vm1369_vm13, %v1372_v14, %v1374_v28  ;;  %v2893_v35 = vadd.s32 4294967169, %v1652_v21  ;;  %v5348_v13 = vxor.u32 2147483648, %v3936_v5 }
 0x19e   : > { %v1506_v49 = vsub.s32 0, %v4087_v40  ;;  %v5244_v25 = vand.u32 2147483647, %v4035_v36  ;;  %v1547_v19 = vand.u32 2139095040, %v4039_v61  ;;  %v5349_v54 = vand.u32 2147483647, %v4000_v8 }
 0x19f   : > { %v1109_v48 = vsel %vm5253_vm5, %v5348_v13, %v3936_v5  ;;  %v5350_v62 = vcvt.s32.f32 %v3998_v53  ;;  %v1307_v46 = vor.u32 %v1306_v6, %v1305_v39  ;;  %v1394_v38 = vadd.s32 1, %v4084_v27 }
 0x1a0   : > { %v1658_v14 = vadd.s32 1, %v2893_v35  ;;  %v1312_v59 = vand.u32 2147483647, %v1311_v2  ;;  %v2886_v29 = vmin.u32 %v1506_v49, %v4087_v40  ;;  %v1391_v5 = vmul.u32 %v4044_v11, %v1375_v23 }
 0x1a1   : > { %v1003_v22 = vmul.f32 %v5350_v62, %v5349_v54  ;;  %vm1393_vm3 = vc.u32 %v4091_v16, %v4083_v30  ;;  %v1200_v28 = vsub.s32 32, %v4059_v44  ;;  %v1206_v37 = vshll.u32 %v1205_v57, 23 }
 0x1a2   : > { %v1395_v8 = vsel %vm1393_vm3, %v1394_v38, %v4084_v27  ;;  %vm1659_vm6 = vcmp.gt.s32.totalorder %v1658_v14, 0  ;;  %vm5254_vm8 = vcmp.lt.s32.totalorder %v3609_v56, 0  ;;  %v1655_v21 = vand.u32 8388607, %v5244_v25 }
 0x1a3   : > { %v1396_v53 = vadd.s32 %v1395_v8, %v1391_v5  ;;  %v1660_v6 = vsel %vm1659_vm6, %v1658_v14, 0  ;;  %v1548_v10 = vshrl.u32 %v1547_v19, 23  ;;  %v1314_v2 = vcvt.s32.f32 %v1307_v46 }
 0x1a4   : > { %v1184_v11 = vadd.s32 %v3874_v12, %v3894_v42  ;;  %v1508_v43 = vclz %v2886_v29  ;;  %v1662_v39 = vand.u32 31, %v1660_v6  ;;  %3263 = vcosq.f32 %v3948_v9 }
 0x1a5   : > { %v4124_v27 = vsel %vm4076_vm15, %v3575_v24, %v1109_v48  ;;  %v1004_v57 = vxor.u32 2147483648, %v1003_v22  ;;  %v1397_v23 = vadd.s32 536870912, %v1396_v53  ;;  %v4126_v35 = vmul.f32 %v1314_v2, %v1312_v59 }
 0x1a6   : > { %v1201_v13 = vshll.u32 %v3964_v63, %v4059_v44  ;;  %v1202_v49 = vshrl.u32 %v1184_v11, %v1200_v28  ;;  %v1663_v19 = vsub.s32 32, %v1662_v39  ;;  %v4130_v54 = vor.u32 4788187, %v1206_v37 }
 0x1a7   : > { %v4132_v12 = vshrl.u32 %v1397_v23, 30  ;;  %v1656_v42 = vor.u32 8388608, %v1655_v21  ;;  %v2889_v62 = vadd.s32 4294967169, %v1548_v10  ;;  %v2887_v46 = vadd.s32 4294967294, %v1508_v43 }
 0x1a8   : > { %v1661_v38 = vshrl.u32 %v1660_v6, 5  ;;  %v1666_v48 = vshrl.u32 %v5318_v0, %v1663_v19  ;;  %v1669_v14 = vshrl.u32 %v5314_v60, %v1663_v19  ;;  %v1665_v29 = vshll.u32 %v5316_v55, %v1662_v39 }
 0x1a9   : > { %5351 = vst [vmem:[#allocation28_spill] sm:$0xff] %v4132_v12  ;;  %v1399_v59 = vshll.u32 %v4132_v12, 30  ;;  %v1668_v63 = vshll.u32 %v5318_v0, %v1662_v39  ;;  %v1671_v44 = vshll.u32 %v5314_v60, %v1662_v39  ;;  %v1672_v5 = vshrl.u32 %v5336_v33, %v1663_v19 }
 0x1aa   : > { %v1674_v28 = vshll.u32 %v5336_v33, %v1662_v39  ;;  %v1675_v37 = vshrl.u32 %v5337_v1, %v1663_v19  ;;  %v1677_v8 = vshll.u32 %v5337_v1, %v1662_v39  ;;  %v1667_v6 = vor.u32 %v1666_v48, %v1665_v29 }
 0x1ab   : > { %v4144_v21 = vsub.s32 %v1396_v53, %v1399_v59  ;;  %v1670_v10 = vor.u32 %v1669_v14, %v1668_v63  ;;  %v1678_v2 = vshrl.u32 %v5315_v3, %v1663_v19  ;;  %v1005_v11 = vsel %vm5254_vm8, %v1004_v57, %v1003_v22 }
 0x1ac   : > { %v1316_v43 = vxor.u32 2147483648, %v4126_v35  ;;  %v1673_v23 = vor.u32 %v1672_v5, %v1671_v44  ;;  %v1676_v25 = vor.u32 %v1675_v37, %v1674_v28  ;;  %v1203_v7 = vor.u32 %v1202_v49, %v1201_v13 }
 0x1ad   : > { %v1208_v12 = vand.u32 2147483647, %v4130_v54  ;;  %v1402_v31 = vsub.s32 0, %v4144_v21  ;;  %v1679_v24 = vor.u32 %v1678_v2, %v1677_v8  ;;  %v5352_v53 = vand.u32 2147483647, %v3609_v56 }
 0x1ae   : > { %v5353_v39 = vmov 0  ;;  %vm1680_vm13 = vcmp.lt.s32.totalorder %v1661_v38, 1  ;;  %v1696_v48 = vshll.u32 %v1656_v42, 8  ;;  %v1554_v57 = vadd.s32 1, %v2889_v62  ;;  %v4159_v14 = vpop.eup %3263 }
 0x1af   : > { %vm4154_vm12 = vcmp.le.f32.partialorder %v5352_v53, 0.7853982  ;;  %5356 = vst [vmem:[#allocation30_spill] sm:$0xff] %v4159_v14  ;;  %vm2888_vm3 = vcmp.lt.s32.totalorder %v2887_v46, 0  ;;  %vm1682_vm6 = vcmp.lt.s32.totalorder %v1661_v38, 3  ;;  %vm1683_vm1 = vcmp.lt.s32.totalorder %v1661_v38, 4 }
 0x1b0   : > { %v5354_v39 = vsel %vm4154_vm12, 4294967295, %v5353_v39  ;;  %v1688_v13 = vsel %vm1680_vm13, %v1667_v6, %v1670_v10  ;;  %v1685_v49 = vsel %vm1683_vm1, %v1673_v23, 2102212464  ;;  %v1689_v54 = vsel %vm1683_vm1, %v1676_v25, 920167782 }
 0x1b1   : > { %5355 = vst [vmem:[#allocation29_spill] sm:$0xff] %v5354_v39  ;;  %v1692_v59 = vsel %vm1680_vm13, %v1670_v10, %v1673_v23  ;;  %v1693_v29 = vsel %vm1683_vm1, %v1679_v24, 1326507024  ;;  %v2882_v63 = vmin.u32 %v1402_v31, %v4144_v21  ;;  %v1664_v44 = vshrl.u32 %v5316_v55, %v1663_v19 }
 0x1b2   : > { %vm1681_vm5 = vcmp.lt.s32.totalorder %v1661_v38, 2  ;;  %v1690_v42 = vsel %vm1682_vm6, %v1673_v23, %v1689_v54  ;;  %v4166_v62 = vsel %vm2888_vm3, 0, %v2887_v46  ;;  %v1694_v28 = vsel %vm1682_vm6, %v1676_v25, %v1693_v29 }
 0x1b3   : > { %v1691_v5 = vsel %vm1681_vm5, %v1688_v13, %v1690_v42  ;;  %vm1555_vm8 = vcmp.gt.s32.totalorder %v1554_v57, 0  ;;  %v1684_v37 = vsel %vm1680_vm13, %v1664_v44, %v1667_v6  ;;  %v1686_v8 = vsel %vm1682_vm6, %v1670_v10, %v1685_v49 }
 0x1b4   : > { %v1695_v24 = vsel %vm1681_vm5, %v1692_v59, %v1694_v28  ;;  %v1556_v2 = vsel %vm1555_vm8, %v1554_v57, 0  ;;  %v4176_v19 = vmul.u32.u64.low %v1696_v48, %v1691_v5  ;;  %v4177_v22 = vmul.u32.u64.high %v1696_v48, %v1691_v5, %v4176_v19 }
 0x1b5   : > { %v4173_v31 = vmul.u32.u64.low %v1696_v48, %v1695_v24  ;;  %v4174_v53 = vmul.u32.u64.high %v1696_v48, %v1695_v24, %v4173_v31  ;;  %3265 = vsinq.f32 %v3948_v9  ;;  %vm5263_vm1 = vcmp.lt.s32.totalorder %v3681_v45, 0 }
 0x1b6   : > { %v1404_v25 = vclz %v2882_v63  ;;  %v1558_v46 = vand.u32 31, %v1556_v2  ;;  %v1210_v23 = vcvt.s32.f32 %v1203_v7  ;;  %v1512_v6 = vsub.s32 32, %v4166_v62 }
 0x1b7   : > { %v1687_v10 = vsel %vm1681_vm5, %v1684_v37, %v1686_v8  ;;  %v5357_v57 = vand.u32 2147483647, %v4039_v61  ;;  %3267 = vcosq.f32 %v4124_v27  ;;  %v4190_v49 = vsel %vm4154_vm12, %v3609_v56, %v1005_v11 }
 0x1b8   : > { %v4195_v9 = vsel %vm5263_vm1, %v1316_v43, %v4126_v35  ;;  %v1516_v7 = vsub.s32 4294967266, %v4166_v62  ;;  %v4198_v54 = vmul.f32 %v1210_v23, %v1208_v12  ;;  %v1496_v38 = vadd.s32 %v4027_v17, %v4016_v52 }
 0x1b9   : > { %v1551_v13 = vand.u32 8388607, %v5357_v57  ;;  %vm1705_vm5 = vc.u32 %v4174_v53, %v4176_v19  ;;  %v1706_v59 = vadd.s32 1, %v4177_v22  ;;  %v2883_v29 = vadd.s32 4294967294, %v1404_v25 }
 0x1ba   : > { %v1703_v11 = vmul.u32 %v1696_v48, %v1687_v10  ;;  %v1559_v63 = vsub.s32 32, %v1558_v46  ;;  %v4207_v44 = vadd.f32 %v3883_v58, %v3657_v15  ;;  %v1513_v35 = vshll.u32 %v4087_v40, %v4166_v62 }
 0x1bb   : > { %v1514_v12 = vshrl.u32 %v1496_v38, %v1512_v6  ;;  %v1707_v43 = vsel %vm1705_vm5, %v1706_v59, %v4177_v22  ;;  %v1552_v42 = vor.u32 8388608, %v1551_v13  ;;  %v1517_v52 = vadd.s32 127, %v1516_v7 }
 0x1bc   : > { %v1708_v17 = vadd.s32 %v1707_v43, %v1703_v11  ;;  %v1561_v5 = vshll.u32 %v5316_v55, %v1558_v46  ;;  %v1564_v28 = vshll.u32 %v5318_v0, %v1558_v46  ;;  %v1562_v48 = vshrl.u32 %v5318_v0, %v1559_v63 }
 0x1bd   : > { %v1565_v37 = vshrl.u32 %v5314_v60, %v1559_v63  ;;  %v1567_v15 = vshll.u32 %v5314_v60, %v1558_v46  ;;  %v1568_v8 = vshrl.u32 %v5336_v33, %v1559_v63  ;;  %vm2884_vm8 = vcmp.lt.s32.totalorder %v2883_v29, 0 }
 0x1be   : > { %v1709_v40 = vadd.s32 536870912, %v1708_v17  ;;  %v1557_v62 = vshrl.u32 %v1556_v2, 5  ;;  %v1570_v22 = vshll.u32 %v5336_v33, %v1558_v46  ;;  %v1563_v24 = vor.u32 %v1562_v48, %v1561_v5 }
 0x1bf   : > { %v1566_v31 = vor.u32 %v1565_v37, %v1564_v28  ;;  %v1569_v25 = vor.u32 %v1568_v8, %v1567_v15  ;;  %v1571_v23 = vshrl.u32 %v5337_v1, %v1559_v63  ;;  %v4220_v6 = vpop.eup %3265  ;;  %v1518_v10 = vshll.u32 %v1517_v52, 23 }
 0x1c0   : > { %5358 = vst [vmem:[#allocation31_spill] sm:$0xff] %v4220_v6  ;;  %v4222_v57 = vshrl.u32 %v1709_v40, 30  ;;  %v1573_v13 = vshll.u32 %v5337_v1, %v1558_v46  ;;  %v1574_v7 = vshrl.u32 %v5315_v3, %v1559_v63  ;;  %v5360_v38 = vand.u32 2147483647, %v3681_v45 }
 0x1c1   : > { %v5361_v2 = vmov 0  ;;  %v4232_v59 = vsel %vm2884_vm8, 0, %v2883_v29  ;;  %v1572_v11 = vor.u32 %v1571_v23, %v1570_v22  ;;  %v1592_v43 = vshll.u32 %v1552_v42, 8  ;;  %v4235_v28 = vpop.eup %3267 }
 0x1c2   : > { %5359 = vst [vmem:[#allocation32_spill] sm:$0xff] %v4222_v57  ;;  %vm4228_vm13 = vcmp.le.f32.partialorder %v5360_v38, 0.7853982  ;;  %v1859_v5 = vand.u32 2139095040, %v4207_v44  ;;  %5364 = vst [vmem:[#allocation34_spill] sm:$0xff] %v4235_v28  ;;  %v1711_v52 = vshll.u32 %v4222_v57, 30  ;;  %v1575_v48 = vor.u32 %v1574_v7, %v1573_v13 }
 0x1c3   : > { %v5362_v2 = vsel %vm4228_vm13, 4294967295, %v5361_v2  ;;  %vm1576_vm3 = vcmp.lt.s32.totalorder %v1557_v62, 1  ;;  %vm1579_vm6 = vcmp.lt.s32.totalorder %v1557_v62, 4  ;;  %vm1578_vm5 = vcmp.lt.s32.totalorder %v1557_v62, 3 }
 0x1c4   : > { %5363 = vst [vmem:[#allocation33_spill] sm:$0xff] %v5362_v2  ;;  %v1581_v46 = vsel %vm1579_vm6, %v1569_v25, 2102212464  ;;  %v1584_v37 = vsel %vm1576_vm3, %v1563_v24, %v1566_v31  ;;  %v1585_v15 = vsel %vm1579_vm6, %v1572_v11, 920167782  ;;  %v1412_v8 = vsub.s32 4294967266, %v4232_v59 }
 0x1c5   : > { %v1560_v29 = vshrl.u32 %v5316_v55, %v1559_v63  ;;  %vm1577_vm8 = vcmp.lt.s32.totalorder %v1557_v62, 2  ;;  %v1586_v40 = vsel %vm1578_vm5, %v1569_v25, %v1585_v15  ;;  %v4240_v42 = vsub.s32 %v1708_v17, %v1711_v52  ;;  %v2169_v63 = vld [vmem:[%s5188_s4] sm:$0xff]  ;;  %v2170_v17 = vld [vmem:[%s5188_s4 + $0x8] sm:$0xff] }
 0x1c6   : > { %v1587_v22 = vsel %vm1577_vm8, %v1584_v37, %v1586_v40  ;;  %v1588_v23 = vsel %vm1576_vm3, %v1566_v31, %v1569_v25  ;;  %v1589_v38 = vsel %vm1579_vm6, %v1575_v48, 1326507024  ;;  %v1515_v57 = vor.u32 %v1514_v12, %v1513_v35 }
 0x1c7   : > { %v1580_v13 = vsel %vm1576_vm3, %v1560_v29, %v1563_v24  ;;  %v1582_v7 = vsel %vm1578_vm5, %v1566_v31, %v1581_v46  ;;  %v1590_v28 = vsel %vm1578_vm5, %v1572_v11, %v1589_v38  ;;  %v1519_v39 = vor.u32 4788187, %v1518_v10 }
 0x1c8   : > { %v1591_v56 = vsel %vm1577_vm8, %v1588_v23, %v1590_v28  ;;  %v4244_v14 = vmul.u32.u64.low %v1592_v43, %v1587_v22  ;;  %v4245_v6 = vmul.u32.u64.high %v1592_v43, %v1587_v22, %v4244_v14  ;;  %3269 = vsinq.f32 %v4124_v27 }
 0x1c9   : > { %v1413_v35 = vadd.s32 127, %v1412_v8  ;;  %v4255_v12 = vmul.u32.u64.low %v1592_v43, %v1591_v56  ;;  %v4256_v24 = vmul.u32.u64.high %v1592_v43, %v1591_v56, %v4255_v12  ;;  %3271 = vcosq.f32 %v4190_v49 }
 0x1ca   : > { %v1714_v31 = vsub.s32 0, %v4240_v42  ;;  %v1583_v25 = vsel %vm1577_vm8, %v1580_v13, %v1582_v7  ;;  %v1860_v10 = vshrl.u32 %v1859_v5, 23  ;;  %v1320_v11 = vsel %vm4228_vm13, %v3681_v45, %v4195_v9 }
 0x1cb   : > { %v1212_v28 = vxor.u32 2147483648, %v4198_v54  ;;  %v5264_v27 = vand.u32 2147483647, %v4207_v44  ;;  %v3149_v52 = vpack.c.bf16 %v2170_v17, %v2169_v63  ;;  %v1520_v48 = vand.u32 2147483647, %v1519_v39 }
 0x1cc   : > { %v1522_v56 = vcvt.s32.f32 %v1515_v57  ;;  %v1602_v46 = vadd.s32 1, %v4245_v6  ;;  %v2901_v37 = vadd.s32 4294967169, %v1860_v10  ;;  %v1408_v15 = vsub.s32 32, %v4232_v59 }
 0x1cd   : > { %v1414_v62 = vshll.u32 %v1413_v35, 23  ;;  %v1599_v8 = vmul.u32 %v1592_v43, %v1583_v25  ;;  %vm1601_vm3 = vc.u32 %v4256_v24, %v4244_v14  ;;  %3150 = vmatprep.subr.bf16.mxu1 %v3149_v52  ;;  %v2894_v9 = vmin.u32 %v1714_v31, %v4240_v42 }
 0x1ce   : > { %v1603_v5 = vsel %vm1601_vm3, %v1602_v46, %v4245_v6  ;;  %v1866_v29 = vadd.s32 1, %v2901_v37  ;;  %v4275_v39 = vadd.f32 %v3883_v58, %v3733_v34  ;;  %3152 = vmatpush3.bf16.msra.mxu1 %v3149_v52  ;;  %v5365_v57 = vor.u32 %v3806_v51, %v3802_v20 }
 0x1cf   : > { %3273 = vsinq.f32 %v4190_v49  ;;  %v1392_v40 = vadd.s32 %v4083_v30, %v4091_v16  ;;  %v1604_v22 = vadd.s32 %v1603_v5, %v1599_v8  ;;  %vm5265_vm6 = vcmp.lt.s32.totalorder %v3728_v18, 0 }
 0x1d0   : > { %v4282_v43 = vsel %vm539_vm14, %v5365_v57, 1326507024  ;;  %3275 = vcosq.f32 %v1320_v11  ;;  %v4288_v6 = vmul.f32 %v1522_v56, %v1520_v48  ;;  %vm1867_vm5 = vcmp.gt.s32.totalorder %v1866_v29, 0 }
 0x1d1   : > { %v1213_v34 = vsel %vm5265_vm6, %v1212_v28, %v4198_v54  ;;  %v1410_v20 = vshrl.u32 %v1392_v40, %v1408_v15  ;;  %v4293_v51 = vor.u32 4788187, %v1414_v62  ;;  %v1605_v23 = vadd.s32 536870912, %v1604_v22 }
 0x1d2   : > { %v1716_v38 = vclz %v2894_v9  ;;  %v1863_v49 = vand.u32 8388607, %v5264_v27  ;;  %v1868_v30 = vsel %vm1867_vm5, %v1866_v29, 0  ;;  %v1755_v16 = vand.u32 2139095040, %v4275_v39  ;;  %v4298_v13 = vpop.eup %3269 }
 0x1d3   : > { %5366 = vst [vmem:[#allocation35_spill] sm:$0xff] %v4298_v13  ;;  %3277 = vsinq.f32 %v1320_v11  ;;  %v5367_v7 = vand.u32 2147483647, %v3728_v18  ;;  %v5368_v63 = vmov 0  ;;  %v1409_v54 = vshll.u32 %v4144_v21, %v4232_v59  ;;  %v4310_v35 = vpop.eup %3271 }
 0x1d4   : > { %v4308_v17 = vshrl.u32 %v1605_v23, 30  ;;  %v4320_v25 = vadd.s32 %v4176_v19, %v4174_v53  ;;  %v1870_v10 = vand.u32 31, %v1868_v30  ;;  %v4328_v28 = vadd.f32 %v3883_v58, %v3795_v47 }
 0x1d5   : > { %vm4302_vm8 = vcmp.le.f32.partialorder %v5367_v7, 0.7853982  ;;  %v4322_v11 = vor.u32 %v1410_v20, %v1409_v54  ;;  %v2895_v52 = vadd.s32 4294967294, %v1716_v38  ;;  %v1864_v48 = vor.u32 8388608, %v1863_v49 }
 0x1d6   : > { %v5369_v63 = vsel %vm4302_vm8, 4294967295, %v5368_v63  ;;  %5371 = vst [vmem:[#allocation37_spill] sm:$0xff] %v4308_v17  ;;  %v4315_v12 = vsel %vm4302_vm8, %v3728_v18, %v1213_v34  ;;  %v1607_v59 = vshll.u32 %v4308_v17, 30  ;;  %5372 = vst [vmem:[#allocation38_spill] sm:$0xff] %v4328_v28  ;;  %v1871_v56 = vsub.s32 32, %v1870_v10 }
 0x1d7   : > { %5370 = vst [vmem:[#allocation36_spill] sm:$0xff] %v5369_v63  ;;  %v1756_v46 = vshrl.u32 %v1755_v16, 23  ;;  %v1869_v15 = vshrl.u32 %v1868_v30, 5  ;;  %v1873_v53 = vshll.u32 %v5316_v55, %v1870_v10  ;;  %v1876_v19 = vshll.u32 %v5318_v0, %v1870_v10 }
 0x1d8   : > { %v4330_v37 = vsub.s32 %v1604_v22, %v1607_v59  ;;  %v1874_v62 = vshrl.u32 %v5318_v0, %v1871_v56  ;;  %v1877_v8 = vshrl.u32 %v5314_v60, %v1871_v56  ;;  %v1879_v9 = vshll.u32 %v5314_v60, %v1870_v10 }
 0x1d9   : > { %v1880_v47 = vshrl.u32 %v5336_v33, %v1871_v56  ;;  %v4338_v58 = vpop.eup %3273  ;;  %v1882_v29 = vshll.u32 %v5336_v33, %v1870_v10  ;;  %v1883_v57 = vshrl.u32 %v5337_v1, %v1871_v56  ;;  %v1885_v40 = vshll.u32 %v5337_v1, %v1870_v10 }
 0x1da   : > { %v1610_v5 = vsub.s32 0, %v4330_v37  ;;  %v4344_v22 = vpop.eup %3275  ;;  %v1875_v34 = vor.u32 %v1874_v62, %v1873_v53  ;;  %v1878_v20 = vor.u32 %v1877_v8, %v1876_v19  ;;  %v1886_v38 = vshrl.u32 %v5315_v3, %v1871_v56 }
 0x1db   : > { %5373 = vst [vmem:[#allocation39_spill] sm:$0xff] %v4344_v22  ;;  %v1881_v23 = vor.u32 %v1880_v47, %v1879_v9  ;;  %vm2896_vm3 = vcmp.lt.s32.totalorder %v2895_v52, 0  ;;  %v1884_v30 = vor.u32 %v1883_v57, %v1882_v29  ;;  %vm1888_vm5 = vcmp.lt.s32.totalorder %v1869_v15, 1 }
 0x1dc   : > { %v2890_v49 = vmin.u32 %v1610_v5, %v4330_v37  ;;  %v1887_v7 = vor.u32 %v1886_v38, %v1885_v40  ;;  %vm1891_vm1 = vcmp.lt.s32.totalorder %v1869_v15, 4  ;;  %v2897_v54 = vadd.s32 4294967169, %v1756_v46 }
 0x1dd   : > { %v4349_v59 = vpop.eup %3277  ;;  %v1872_v27 = vshrl.u32 %v5316_v55, %v1871_v56  ;;  %vm1890_vm6 = vcmp.lt.s32.totalorder %v1869_v15, 3  ;;  %v1893_v53 = vsel %vm1891_vm1, %v1881_v23, 2102212464  ;;  %v1896_v19 = vsel %vm1888_vm5, %v1875_v34, %v1878_v20 }
 0x1de   : > { %5374 = vst [vmem:[#allocation40_spill] sm:$0xff] %v4349_v59  ;;  %v1612_v10 = vclz %v2890_v49  ;;  %v1897_v62 = vsel %vm1891_vm1, %v1884_v30, 920167782  ;;  %v1900_v8 = vsel %vm1888_vm5, %v1878_v20, %v1881_v23  ;;  %v1901_v9 = vsel %vm1891_vm1, %v1887_v7, 1326507024 }
 0x1df   : > { %v4355_v47 = vsel %vm2896_vm3, 0, %v2895_v52  ;;  %v1898_v29 = vsel %vm1890_vm6, %v1881_v23, %v1897_v62  ;;  %v1904_v57 = vshll.u32 %v1864_v48, 8  ;;  %vm1889_vm4 = vcmp.lt.s32.totalorder %v1869_v15, 2 }
 0x1e0   : > { %v2891_v5 = vadd.s32 4294967294, %v1612_v10  ;;  %v1892_v46 = vsel %vm1888_vm5, %v1872_v27, %v1875_v34  ;;  %v1894_v40 = vsel %vm1890_vm6, %v1878_v20, %v1893_v53  ;;  %v1902_v38 = vsel %vm1890_vm6, %v1884_v30, %v1901_v9 }
 0x1e1   : > { %v1899_v56 = vsel %vm1889_vm4, %v1896_v19, %v1898_v29  ;;  %v1903_v49 = vsel %vm1889_vm4, %v1900_v8, %v1902_v38  ;;  %v1762_v31 = vadd.s32 1, %v2897_v54  ;;  %v1724_v21 = vsub.s32 4294967266, %v4355_v47 }
 0x1e2   : > { %vm2892_vm10 = vcmp.lt.s32.totalorder %v2891_v5, 0  ;;  %v4359_v16 = vmul.u32.u64.low %v1904_v57, %v1903_v49  ;;  %v4360_v22 = vmul.u32.u64.high %v1904_v57, %v1903_v49, %v4359_v16  ;;  %v5375_v52 = vand.u32 2147483647, %v4275_v39 }
 0x1e3   : > { %v1418_v23 = vcvt.s32.f32 %v4322_v11  ;;  %v1895_v48 = vsel %vm1889_vm4, %v1892_v46, %v1894_v40  ;;  %vm1763_vm1 = vcmp.gt.s32.totalorder %v1762_v31, 0  ;;  %v2067_v27 = vand.u32 2139095040, %v4328_v28 }
 0x1e4   : > { %v1759_v7 = vand.u32 8388607, %v5375_v52  ;;  %v4366_v15 = vsel %vm2892_vm10, 0, %v2891_v5  ;;  %v4368_v34 = vmul.u32.u64.low %v1904_v57, %v1899_v56  ;;  %v4369_v20 = vmul.u32.u64.high %v1904_v57, %v1899_v56, %v4368_v34 }
 0x1e5   : > { %v1764_v30 = vsel %vm1763_vm1, %v1762_v31, 0  ;;  %v5376_v54 = vand.u32 2147483647, %v4293_v51  ;;  %v4378_v16 = vadd.s32 %v4244_v14, %v4256_v24  ;;  %v1720_v19 = vsub.s32 32, %v4355_v47  ;;  %v2168_v14 = vld [vmem:[%s5187_s3] sm:$0xf] }
 0x1e6   : > { %v1766_v11 = vand.u32 31, %v1764_v30  ;;  %v1721_v62 = vshll.u32 %v4240_v42, %v4355_v47  ;;  %v1725_v8 = vadd.s32 127, %v1724_v21  ;;  %v1760_v9 = vor.u32 8388608, %v1759_v7  ;;  %3091 = vmatprep.subr.msk.mxu1 %vm5277_vm0, %v2168_v14 }
 0x1e7   : > { %v4374_v10 = vmul.f32 %v1418_v23, %v5376_v54  ;;  %v1620_v31 = vsub.s32 4294967266, %v4366_v15  ;;  %v1911_v5 = vmul.u32 %v1904_v57, %v1895_v48  ;;  %vm1913_vm4 = vc.u32 %v4360_v22, %v4368_v34 }
 0x1e8   : > { %v1767_v51 = vsub.s32 32, %v1766_v11  ;;  %v1914_v24 = vadd.s32 1, %v4369_v20  ;;  %v1765_v29 = vshrl.u32 %v1764_v30, 5  ;;  %v1769_v46 = vshll.u32 %v5316_v55, %v1766_v11 }
 0x1e9   : > { %v2068_v40 = vshrl.u32 %v2067_v27, 23  ;;  %v1772_v21 = vshll.u32 %v5318_v0, %v1766_v11  ;;  %v1775_v47 = vshll.u32 %v5314_v60, %v1766_v11  ;;  %v1778_v57 = vshll.u32 %v5336_v33, %v1766_v11 }
 0x1ea   : > { %v1770_v42 = vshrl.u32 %v5318_v0, %v1767_v51  ;;  %v1915_v38 = vsel %vm1913_vm4, %v1914_v24, %v4369_v20  ;;  %v1773_v56 = vshrl.u32 %v5314_v60, %v1767_v51  ;;  %v1776_v49 = vshrl.u32 %v5336_v33, %v1767_v51 }
 0x1eb   : > { %v1779_v52 = vshrl.u32 %v5337_v1, %v1767_v51  ;;  %v1722_v7 = vshrl.u32 %v4320_v25, %v1720_v19  ;;  %v1916_v23 = vadd.s32 %v1915_v38, %v1911_v5  ;;  %v1781_v27 = vshll.u32 %v5337_v1, %v1766_v11 }
 0x1ec   : > { %v1771_v48 = vor.u32 %v1770_v42, %v1769_v46  ;;  %v1774_v30 = vor.u32 %v1773_v56, %v1772_v21  ;;  %v1777_v54 = vor.u32 %v1776_v49, %v1775_v47  ;;  %v1782_v53 = vshrl.u32 %v5315_v3, %v1767_v51 }
 0x1ed   : > { %v1780_v14 = vor.u32 %v1779_v52, %v1778_v57  ;;  %v1726_v59 = vshll.u32 %v1725_v8, 23  ;;  %v1616_v20 = vsub.s32 32, %v4366_v15  ;;  %v1917_v24 = vadd.s32 536870912, %v1916_v23 }
 0x1ee   : > { %v1800_v17 = vshll.u32 %v1760_v9, 8  ;;  %v1621_v2 = vadd.s32 127, %v1620_v31  ;;  %v1783_v63 = vor.u32 %v1782_v53, %v1781_v27  ;;  %vm1784_vm10 = vcmp.lt.s32.totalorder %v1765_v29, 1 }
 0x1ef   : > { %v2909_v13 = vadd.s32 4294967169, %v2068_v40  ;;  %v4405_v45 = vshrl.u32 %v1917_v24, 30  ;;  %vm1786_vm6 = vcmp.lt.s32.totalorder %v1765_v29, 3  ;;  %vm1787_vm3 = vcmp.lt.s32.totalorder %v1765_v29, 4 }
 0x1f0   : > { %v1792_v25 = vsel %vm1784_vm10, %v1771_v48, %v1774_v30  ;;  %v1789_v11 = vsel %vm1787_vm3, %v1777_v54, 2102212464  ;;  %v1793_v19 = vsel %vm1787_vm3, %v1780_v14, 920167782  ;;  %v1796_v5 = vsel %vm1784_vm10, %v1774_v30, %v1777_v54 }
 0x1f1   : > { %v1797_v46 = vsel %vm1787_vm3, %v1783_v63, 1326507024  ;;  %v1919_v8 = vshll.u32 %v4405_v45, 30  ;;  %v1768_v42 = vshrl.u32 %v5316_v55, %v1767_v51  ;;  %vm1785_vm5 = vcmp.lt.s32.totalorder %v1765_v29, 2 }
 0x1f2   : > { %v1794_v53 = vsel %vm1786_vm6, %v1777_v54, %v1793_v19  ;;  %v4412_v9 = vor.u32 %v1722_v7, %v1721_v62  ;;  %v4414_v31 = vor.u32 4788187, %v1726_v59  ;;  %v1798_v21 = vsel %vm1786_vm6, %v1780_v14, %v1797_v46  ;;  %v3320_v14 = vld [vmem:[%s5186_s2] ss:$0 sm:$0xff] }
 0x1f3   : > { %v1795_v40 = vsel %vm1785_vm5, %v1792_v25, %v1794_v53  ;;  %v4418_v47 = vsub.s32 %v1916_v23, %v1919_v8  ;;  %v1788_v57 = vsel %vm1784_vm10, %v1768_v42, %v1771_v48  ;;  %v1790_v63 = vsel %vm1786_vm6, %v1774_v30, %v1789_v11 }
 0x1f4   : > { %v1799_v38 = vsel %vm1785_vm5, %v1796_v5, %v1798_v21  ;;  %v1618_v51 = vshrl.u32 %v4378_v16, %v1616_v20  ;;  %v2074_v62 = vadd.s32 1, %v2909_v13  ;;  %v1622_v59 = vshll.u32 %v1621_v2, 23 }
 0x1f5   : > { %v4424_v56 = vmul.u32.u64.low %v1800_v17, %v1799_v38  ;;  %v4425_v49 = vmul.u32.u64.high %v1800_v17, %v1799_v38, %v4424_v56  ;;  %v1922_v52 = vsub.s32 0, %v4418_v47  ;;  %v1617_v23 = vshll.u32 %v4330_v37, %v4366_v15 }
 0x1f6   : > { %v4428_v7 = vmul.u32.u64.low %v1800_v17, %v1795_v40  ;;  %v4429_v27 = vmul.u32.u64.high %v1800_v17, %v1795_v40, %v4428_v7  ;;  %v1791_v48 = vsel %vm1785_vm5, %v1788_v57, %v1790_v63  ;;  %v5377_v30 = vand.u32 2147483647, %v4328_v28 }
 0x1f7   : > { %vm2075_vm1 = vcmp.gt.s32.totalorder %v2074_v62, 0  ;;  %v1730_v16 = vcvt.s32.f32 %v4412_v9  ;;  %v2902_v13 = vmin.u32 %v1922_v52, %v4418_v47  ;;  %v4443_v20 = vadd.f32 %v3320_v14, %v3889_v32 }
 0x1f8   : > { %v2071_v54 = vand.u32 8388607, %v5377_v30  ;;  %v2076_v2 = vsel %vm2075_vm1, %v2074_v62, 0  ;;  %v1728_v37 = vand.u32 2147483647, %v4414_v31  ;;  %v4446_v15 = vor.u32 %v1618_v51, %v1617_v23 }
 0x1f9   : > { %vm1809_vm4 = vc.u32 %v4425_v49, %v4428_v7  ;;  %v2078_v29 = vand.u32 31, %v2076_v2  ;;  %v4450_v24 = vor.u32 4788187, %v1622_v59  ;;  %v1924_v25 = vclz %v2902_v13 }
 0x1fa   : > { %v1807_v11 = vmul.u32 %v1800_v17, %v1791_v48  ;;  %v1810_v19 = vadd.s32 1, %v4429_v27  ;;  %v2072_v5 = vor.u32 8388608, %v2071_v54  ;;  %v4453_v46 = vshrl.u32 %v2076_v2, 5 }
 0x1fb   : > { %v2079_v8 = vsub.s32 32, %v2078_v29  ;;  %v2081_v32 = vshll.u32 %v5316_v55, %v2078_v29  ;;  %v2903_v42 = vadd.s32 4294967294, %v1924_v25  ;;  %v2084_v40 = vshll.u32 %v5318_v0, %v2078_v29 }
 0x1fc   : > { %v1811_v53 = vsel %vm1809_vm4, %v1810_v19, %v4429_v27  ;;  %v2087_v21 = vshll.u32 %v5314_v60, %v2078_v29  ;;  %v2090_v38 = vshll.u32 %v5336_v33, %v2078_v29  ;;  %v1626_v48 = vcvt.s32.f32 %v4446_v15 }
 0x1fd   : > { %v1812_v57 = vadd.s32 %v1811_v53, %v1807_v11  ;;  %v2082_v63 = vshrl.u32 %v5318_v0, %v2079_v8  ;;  %v2085_v17 = vshrl.u32 %v5314_v60, %v2079_v8  ;;  %vm2904_vm10 = vcmp.lt.s32.totalorder %v2903_v42, 0 }
 0x1fe   : > { %v2088_v51 = vshrl.u32 %v5336_v33, %v2079_v8  ;;  %v2091_v56 = vshrl.u32 %v5337_v1, %v2079_v8  ;;  %v2094_v62 = vshrl.u32 %v5315_v3, %v2079_v8  ;;  %v1927_v59 = vsel %vm2904_vm10, 0, %v2903_v42 }
 0x1ff   : > { %v1813_v52 = vadd.s32 536870912, %v1812_v57  ;;  %v2083_v27 = vor.u32 %v2082_v63, %v2081_v32  ;;  %v2086_v23 = vor.u32 %v2085_v17, %v2084_v40  ;;  %v1912_v30 = vadd.s32 %v4368_v34, %v4360_v22 }
 0x200   : > { %v1932_v54 = vsub.s32 4294967266, %v1927_v59  ;;  %v1963_v13 = vand.u32 2139095040, %v4443_v20  ;;  %v2089_v14 = vor.u32 %v2088_v51, %v2087_v21  ;;  %v2092_v25 = vor.u32 %v2091_v56, %v2090_v38 }
 0x201   : > { %v4469_v2 = vshrl.u32 %v1813_v52, 30  ;;  %v2093_v11 = vshll.u32 %v5337_v1, %v2078_v29  ;;  %v1624_v19 = vand.u32 2147483647, %v4450_v24  ;;  %vm2096_vm6 = vcmp.lt.s32.totalorder %v4453_v46, 1 }
 0x202   : > { %v1933_v42 = vadd.s32 127, %v1932_v54  ;;  %v2112_v32 = vshll.u32 %v2072_v5, 8  ;;  %vm5278_vm3 = vcmp.lt.s32.totalorder %v3828_v4, 0  ;;  %vm2099_vm5 = vcmp.lt.s32.totalorder %v4453_v46, 4 }
 0x203   : > { %v1815_v15 = vshll.u32 %v4469_v2, 30  ;;  %v2095_v22 = vor.u32 %v2094_v62, %v2093_v11  ;;  %v2104_v34 = vsel %vm2096_vm6, %v2083_v27, %v2086_v23  ;;  %v1928_v53 = vsub.s32 32, %v1927_v59 }
 0x204   : > { %vm2098_vm1 = vcmp.lt.s32.totalorder %v4453_v46, 3  ;;  %v2105_v29 = vsel %vm2099_vm5, %v2092_v25, 920167782  ;;  %v1964_v24 = vshrl.u32 %v1963_v13, 23  ;;  %vm2097_vm4 = vcmp.lt.s32.totalorder %v4453_v46, 2 }
 0x205   : > { %v4482_v40 = vsub.s32 %v1812_v57, %v1815_v15  ;;  %v2101_v5 = vsel %vm2099_vm5, %v2089_v14, 2102212464  ;;  %v2106_v21 = vsel %vm2098_vm1, %v2089_v14, %v2105_v29  ;;  %v1934_v63 = vshll.u32 %v1933_v42, 23 }
 0x206   : > { %v2080_v17 = vshrl.u32 %v5316_v55, %v2079_v8  ;;  %v2107_v38 = vsel %vm2097_vm4, %v2104_v34, %v2106_v21  ;;  %v2108_v51 = vsel %vm2096_vm6, %v2086_v23, %v2089_v14  ;;  %v5378_v57 = vand.u32 2147483647, %v3828_v4 }
 0x207   : > { %vm5279_vm0 = vcmp.lt.s32.totalorder %v3887_v41, 0  ;;  %v1818_v62 = vsub.s32 0, %v4482_v40  ;;  %v2109_v52 = vsel %vm2099_vm5, %v2095_v22, 1326507024  ;;  %v2102_v14 = vsel %vm2098_vm1, %v2086_v23, %v2101_v5 }
 0x208   : > { %vm4496_vm10 = vcmp.le.f32.partialorder %v5378_v57, 0.7853982  ;;  %v4504_v8 = vmul.u32.u64.low %v2112_v32, %v2107_v38  ;;  %v4505_v54 = vmul.u32.u64.high %v2112_v32, %v2107_v38, %v4504_v8  ;;  %v2100_v13 = vsel %vm2096_vm6, %v2080_v17, %v2083_v27 }
 0x209   : > { %v2110_v11 = vsel %vm2098_vm1, %v2092_v25, %v2109_v52  ;;  %v2905_v42 = vadd.s32 4294967169, %v1964_v24  ;;  %v1930_v15 = vshrl.u32 %v1912_v30, %v1928_v53  ;;  %v2898_v34 = vmin.u32 %v1818_v62, %v4482_v40 }
 0x20a   : > { %v2111_v22 = vsel %vm2097_vm4, %v2108_v51, %v2110_v11  ;;  %v5283_v29 = vand.u32 2147483647, %v4443_v20  ;;  %v1929_v21 = vshll.u32 %v4418_v47, %v1927_v59  ;;  %v1935_v17 = vor.u32 4788187, %v1934_v63 }
 0x20b   : > { %v4519_v38 = vmul.u32.u64.low %v2112_v32, %v2111_v22  ;;  %v4520_v57 = vmul.u32.u64.high %v2112_v32, %v2111_v22, %v4519_v38  ;;  %v1970_v27 = vadd.s32 1, %v2905_v42  ;;  %v1820_v23 = vclz %v2898_v34 }
 0x20c   : > { %v2103_v25 = vsel %vm2097_vm4, %v2100_v13, %v2102_v14  ;;  %v2122_v30 = vadd.s32 1, %v4505_v54  ;;  %v5381_v53 = vxor.u32 2147483648, %v4288_v6  ;;  %v1420_v5 = vxor.u32 2147483648, %v4374_v10 }
 0x20d   : > { %v4535_v47 = vmul.f32 %v1730_v16, %v1728_v37  ;;  %vm1971_vm6 = vcmp.gt.s32.totalorder %v1970_v27, 0  ;;  %v4537_v59 = vmul.f32 %v1626_v48, %v1624_v19  ;;  %v1931_v46 = vor.u32 %v1930_v15, %v1929_v21 }
 0x20e   : > { %v1525_v24 = vsel %vm5278_vm3, %v5381_v53, %v4288_v6  ;;  %v2899_v63 = vadd.s32 4294967294, %v1820_v23  ;;  %v1972_v51 = vsel %vm1971_vm6, %v1970_v27, 0  ;;  %3279 = vcosq.f32 %v4315_v12 }
 0x20f   : > { %v2119_v62 = vmul.u32 %v2112_v32, %v2103_v25  ;;  %vm2121_vm5 = vc.u32 %v4520_v57, %v4504_v8  ;;  %v1967_v6 = vand.u32 8388607, %v5283_v29  ;;  %3281 = vsinq.f32 %v4315_v12 }
 0x210   : > { %v1936_v9 = vand.u32 2147483647, %v1935_v17  ;;  %v2123_v31 = vsel %vm2121_vm5, %v2122_v30, %v4505_v54  ;;  %v1974_v16 = vand.u32 31, %v1972_v51  ;;  %v4549_v37 = vsel %vm4496_vm10, %v3828_v4, %v1525_v24 }
 0x211   : > { %v4554_v48 = vsel %vm5279_vm0, %v1420_v5, %v4374_v10  ;;  %vm2900_vm1 = vcmp.lt.s32.totalorder %v2899_v63, 0  ;;  %v2124_v19 = vadd.s32 %v2123_v31, %v2119_v62  ;;  %v1732_v32 = vxor.u32 2147483648, %v4535_v47 }
 0x212   : > { %v1628_v12 = vxor.u32 2147483648, %v4537_v59  ;;  %v1938_v52 = vcvt.s32.f32 %v1931_v46  ;;  %v5284_v54 = vand.u32 2147483647, %v3499_v26  ;;  %v1808_v13 = vadd.s32 %v4428_v7, %v4425_v49 }
 0x213   : > { %v2125_v14 = vadd.s32 536870912, %v2124_v19  ;;  %v1968_v11 = vor.u32 8388608, %v1967_v6  ;;  %v1975_v42 = vsub.s32 32, %v1974_v16  ;;  %v4563_v34 = vsel %vm2900_vm1, 0, %v2899_v63 }
 0x214   : > { %v4561_v15 = vmul.f32 %v1938_v52, %v1936_v9  ;;  %v1973_v10 = vshrl.u32 %v1972_v51, 5  ;;  %v1977_v22 = vshll.u32 %v5316_v55, %v1974_v16  ;;  %v1980_v27 = vshll.u32 %v5318_v0, %v1974_v16 }
 0x215   : > { %v4566_v21 = vshrl.u32 %v2125_v14, 30  ;;  %v1978_v38 = vshrl.u32 %v5318_v0, %v1975_v42  ;;  %v1981_v17 = vshrl.u32 %v5314_v60, %v1975_v42  ;;  %v1983_v49 = vshll.u32 %v5314_v60, %v1974_v16 }
 0x216   : > { %v1984_v7 = vshrl.u32 %v5336_v33, %v1975_v42  ;;  %v1986_v23 = vshll.u32 %v5336_v33, %v1974_v16  ;;  %v1987_v25 = vshrl.u32 %v5337_v1, %v1975_v42  ;;  %v4576_v5 = vshll.u32 %v1968_v11, 8 }
 0x217   : > { %5382 = vst [vmem:[#allocation41_spill] sm:$0xff] %v4566_v21  ;;  %v2127_v30 = vshll.u32 %v4566_v21, 30  ;;  %v1979_v53 = vor.u32 %v1978_v38, %v1977_v22  ;;  %v1982_v24 = vor.u32 %v1981_v17, %v1980_v27  ;;  %v1828_v46 = vsub.s32 4294967266, %v4563_v34 }
 0x218   : > { %v1985_v63 = vor.u32 %v1984_v7, %v1983_v49  ;;  %v1988_v51 = vor.u32 %v1987_v25, %v1986_v23  ;;  %vm1992_vm4 = vcmp.lt.s32.totalorder %v1973_v10, 1  ;;  %v4579_v62 = vpop.eup %3279  ;;  %v1824_v6 = vsub.s32 32, %v4563_v34 }
 0x219   : > { %v4582_v9 = vsub.s32 %v2124_v19, %v2127_v30  ;;  %v1989_v31 = vshll.u32 %v5337_v1, %v1974_v16  ;;  %v1990_v52 = vshrl.u32 %v5315_v3, %v1975_v42  ;;  %v4586_v14 = vpop.eup %3281  ;;  %v1976_v11 = vshrl.u32 %v5316_v55, %v1975_v42 }
 0x21a   : > { %vm1994_vm6 = vcmp.lt.s32.totalorder %v1973_v10, 3  ;;  %vm1995_vm5 = vcmp.lt.s32.totalorder %v1973_v10, 4  ;;  %v2000_v22 = vsel %vm1992_vm4, %v1979_v53, %v1982_v24  ;;  %v1829_v7 = vadd.s32 127, %v1828_v46 }
 0x21b   : > { %v2130_v38 = vsub.s32 0, %v4582_v9  ;;  %v1991_v27 = vor.u32 %v1990_v52, %v1989_v31  ;;  %v1997_v17 = vsel %vm1995_vm5, %v1985_v63, 2102212464  ;;  %v2001_v49 = vsel %vm1995_vm5, %v1988_v51, 920167782 }
 0x21c   : > { %vm1993_vm1 = vcmp.lt.s32.totalorder %v1973_v10, 2  ;;  %v2002_v19 = vsel %vm1994_vm6, %v1985_v63, %v2001_v49  ;;  %v2004_v1 = vsel %vm1992_vm4, %v1982_v24, %v1985_v63  ;;  %v1996_v16 = vsel %vm1992_vm4, %v1976_v11, %v1979_v53 }
 0x21d   : > { %v2910_v3 = vmin.u32 %v2130_v38, %v4582_v9  ;;  %v2003_v42 = vsel %vm1993_vm1, %v2000_v22, %v2002_v19  ;;  %v2005_v23 = vsel %vm1995_vm5, %v1991_v27, 1326507024  ;;  %v1998_v25 = vsel %vm1994_vm6, %v1982_v24, %v1997_v17  ;;  %v5383_v38 = vld [vmem:[#allocation11_spill] sm:$0xff] }
 0x21e   : > { %v2006_v30 = vsel %vm1994_vm6, %v1988_v51, %v2005_v23  ;;  %v4599_v31 = vmul.u32.u64.low %v4576_v5, %v2003_v42  ;;  %v4600_v52 = vmul.u32.u64.high %v4576_v5, %v2003_v42, %v4599_v31  ;;  %v511_v63 = vand.u32 8388607, %v5284_v54  ;;  %v5384_v51 = vld [vmem:[#allocation10_spill] sm:$0xff] }
 0x21f   : > { %v2132_v46 = vclz %v2910_v3  ;;  %v2007_v49 = vsel %vm1993_vm1, %v2004_v1, %v2006_v30  ;;  %v522_v53 = vshrl.u32 %v5318_v0, %v5383_v38  ;;  %v1826_v11 = vshrl.u32 %v1808_v13, %v1824_v6 }
 0x220   : > { %v4609_v22 = vmul.u32.u64.low %v4576_v5, %v2007_v49  ;;  %v4610_v24 = vmul.u32.u64.high %v4576_v5, %v2007_v49, %v4609_v22  ;;  %v521_v27 = vshll.u32 %v5316_v55, %v5384_v51  ;;  %v1999_v19 = vsel %vm1993_vm1, %v1996_v16, %v1998_v25 }
 0x221   : > { %v2911_v17 = vadd.s32 4294967294, %v2132_v46  ;;  %v524_v1 = vshll.u32 %v5318_v0, %v5384_v51  ;;  %v525_v3 = vshrl.u32 %v5314_v60, %v5383_v38  ;;  %v1830_v42 = vshll.u32 %v1829_v7, 23 }
 0x222   : > { %v2018_v23 = vadd.s32 1, %v4600_v52  ;;  %v527_v13 = vshll.u32 %v5314_v60, %v5384_v51  ;;  %v528_v6 = vshrl.u32 %v5336_v33, %v5383_v38  ;;  %v1825_v30 = vshll.u32 %v4482_v40, %v4563_v34 }
 0x223   : > { %vm2912_vm4 = vcmp.lt.s32.totalorder %v2911_v17, 0  ;;  %v523_v10 = vor.u32 %v522_v53, %v521_v27  ;;  %v526_v16 = vor.u32 %v525_v3, %v524_v1  ;;  %v2015_v0 = vmul.u32 %v4576_v5, %v1999_v19 }
 0x224   : > { %v2135_v25 = vsel %vm2912_vm4, 0, %v2911_v17  ;;  %vm2017_vm6 = vc.u32 %v4610_v24, %v4599_v31  ;;  %v529_v7 = vor.u32 %v528_v6, %v527_v13  ;;  %v5385_v46 = vand.u32 2147483647, %v3887_v41  ;;  %v5392_v13 = vld [vmem:[#allocation15_spill] sm:$0xff] }
 0x225   : > { %v1827_v33 = vor.u32 %v1826_v11, %v1825_v30  ;;  %v2140_v49 = vsub.s32 4294967266, %v2135_v25  ;;  %v2019_v40 = vsel %vm2017_vm6, %v2018_v23, %v4600_v52  ;;  %v520_v34 = vshrl.u32 %v5316_v55, %v5383_v38  ;;  %v5388_v38 = vld [vmem:[#allocation20_spill] sm:$0xff] }
 0x226   : > { %vm4631_vm5 = vcmp.le.f32.partialorder %v5385_v46, 0.7853982  ;;  %vm5291_vm1 = vcmp.lt.s32.totalorder %v4035_v36, 0  ;;  %v1831_v5 = vor.u32 4788187, %v1830_v42  ;;  %v2020_v53 = vadd.s32 %v2019_v40, %v2015_v0 }
 0x227   : > { %v512_v22 = vor.u32 8388608, %v511_v63  ;;  %vm536_vm4 = vcmp.lt.s32.totalorder %v3798_v50, 1  ;;  %v2136_v51 = vsub.s32 32, %v2135_v25  ;;  %v2141_v27 = vadd.s32 127, %v2140_v49 }
 0x228   : > { %vm538_vm0 = vcmp.lt.s32.totalorder %v3798_v50, 3  ;;  %v544_v11 = vsel %vm536_vm4, %v523_v10, %v526_v16  ;;  %v2120_v52 = vadd.s32 %v4504_v8, %v4520_v57  ;;  %v2021_v55 = vadd.s32 536870912, %v2020_v53 }
 0x229   : > { %v546_v17 = vsel %vm538_vm0, %v529_v7, %v5388_v38  ;;  %v548_v63 = vsel %vm536_vm4, %v526_v16, %v529_v7  ;;  %v5389_v19 = vand.u32 2147483647, %v4035_v36  ;;  %v1834_v3 = vcvt.s32.f32 %v1827_v33 }
 0x22a   : > { %v2142_v42 = vshll.u32 %v2141_v27, 23  ;;  %vm537_vm2 = vcmp.lt.s32.totalorder %v3798_v50, 2  ;;  %v541_v8 = vsel %vm539_vm14, %v529_v7, 2102212464  ;;  %v4660_v57 = vshrl.u32 %v2021_v55, 30  ;;  %v5397_v50 = vld [vmem:[#allocation5_spill] sm:$0xff] }
 0x22b   : > { %vm4653_vm6 = vcmp.le.f32.partialorder %v5389_v19, 0.7853982  ;;  %v547_v23 = vsel %vm537_vm2, %v544_v11, %v546_v17  ;;  %v550_v6 = vsel %vm538_vm0, %v5392_v13, %v4282_v43  ;;  %v552_v30 = vshll.u32 %v512_v22, 8 }
 0x22c   : > { %v5393_v0 = vand.u32 2147483647, %v4039_v61  ;;  %v1832_v33 = vand.u32 2147483647, %v1831_v5  ;;  %v2138_v49 = vshrl.u32 %v2120_v52, %v2136_v51  ;;  %v540_v7 = vsel %vm536_vm4, %v520_v34, %v523_v10 }
 0x22d   : > { %v551_v40 = vsel %vm537_vm2, %v548_v63, %v550_v6  ;;  %v2023_v27 = vshll.u32 %v4660_v57, 30  ;;  %v542_v43 = vsel %vm538_vm0, %v526_v16, %v541_v8  ;;  %v2137_v55 = vshll.u32 %v4582_v9, %v2135_v25 }
 0x22e   : > { %vm4670_vm3 = vcmp.le.f32.partialorder %v5393_v0, 0.7853982  ;;  %v4681_v22 = vmul.u32.u64.low %v552_v30, %v551_v40  ;;  %v4682_v11 = vmul.u32.u64.high %v552_v30, %v551_v40, %v4681_v22  ;;  %v2143_v38 = vor.u32 4788187, %v2142_v42  ;;  %v5400_v40 = vld [vmem:[#allocation9_spill] sm:$0xff] }
 0x22f   : > { %v4685_v17 = vmul.u32.u64.low %v552_v30, %v547_v23  ;;  %v4686_v5 = vmul.u32.u64.high %v552_v30, %v547_v23, %v4685_v17  ;;  %3283 = vcosq.f32 %v4549_v37  ;;  %v1424_v10 = vsel %vm4631_vm5, %v3887_v41, %v4554_v48 }
 0x230   : > { %vm5281_vm14 = vcmp.lt.s32.totalorder %v4207_v44, 0  ;;  %v4695_v16 = vsub.s32 %v2020_v53, %v2023_v27  ;;  %v1733_v9 = vsel %vm5291_vm1, %v1732_v32, %v4535_v47  ;;  %v1835_v25 = vmul.f32 %v1834_v3, %v1832_v33 }
 0x231   : > { %v2139_v34 = vor.u32 %v2138_v49, %v2137_v55  ;;  %v543_v51 = vsel %vm537_vm2, %v540_v7, %v542_v43  ;;  %3285 = vsinq.f32 %v4549_v37  ;;  %vm5396_vm0 = vcmp.lt.s32.totalorder %v4039_v61, 0 }
 0x232   : > { %v1629_v48 = vsel %vm5396_vm0, %v1628_v12, %v4537_v59  ;;  %v2026_v53 = vsub.s32 0, %v4695_v16  ;;  %vm561_vm4 = vc.u32 %v4682_v11, %v4685_v17  ;;  %v1940_v47 = vxor.u32 2147483648, %v4561_v15 }
 0x233   : > { %v2144_v32 = vand.u32 2147483647, %v2143_v38  ;;  %v562_v52 = vadd.s32 1, %v4686_v5  ;;  %v694_v63 = vsub.s32 4, %v5397_v50  ;;  %3287 = vcosq.f32 %v1424_v10 }
 0x234   : > { %v1736_v37 = vsel %vm4653_vm6, %v4035_v36, %v1733_v9  ;;  %v2906_v19 = vmin.u32 %v2026_v53, %v4695_v16  ;;  %v559_v59 = vmul.u32 %v552_v30, %v543_v51  ;;  %3289 = vsinq.f32 %v1424_v10  ;;  %v5398_v30 = vld [vmem:[#allocation2_spill] sm:$0xff] }
 0x235   : > { %v1836_v12 = vxor.u32 2147483648, %v1835_v25  ;;  %v2146_v3 = vcvt.s32.f32 %v2139_v34  ;;  %v563_v42 = vsel %vm561_vm4, %v562_v52, %v4686_v5  ;;  %v1632_v8 = vsel %vm4670_vm3, %v4039_v61, %v1629_v48 }
 0x236   : > { %vm5290_vm2 = vcmp.lt.s32.totalorder %v4275_v39, 0  ;;  %v2028_v23 = vclz %v2906_v19  ;;  %v564_v13 = vadd.s32 %v563_v42, %v559_v59  ;;  %3291 = vcosq.f32 %v1736_v37  ;;  %v5410_v19 = vld [vmem:[#allocation7_spill] sm:$0xff] }
 0x237   : > { %v1941_v6 = vsel %vm5281_vm14, %v1940_v47, %v4561_v15  ;;  %v2147_v0 = vmul.f32 %v2146_v3, %v2144_v32  ;;  %vm5399_vm0 = vcmp.lt.s32.totalorder %v5398_v30, 0  ;;  %3293 = vsinq.f32 %v1736_v37 }
 0x238   : > { %v695_v33 = vsel %vm5399_vm0, %v694_v63, %v5397_v50  ;;  %v2907_v49 = vadd.s32 4294967294, %v2028_v23  ;;  %v565_v7 = vadd.s32 536870912, %v564_v13  ;;  %v798_v27 = vsub.s32 4, %v5400_v40  ;;  %v5408_v50 = vld [vmem:[#allocation4_spill] sm:$0xff] }
 0x239   : > { %3295 = vcosq.f32 %v1632_v8  ;;  %v5401_v43 = vand.u32 2147483647, %v4207_v44  ;;  %v5402_v22 = vmov 0  ;;  %v1837_v15 = vsel %vm5290_vm2, %v1836_v12, %v1835_v25  ;;  %v4740_v55 = vpop.eup %3283 }
 0x23a   : > { %vm2908_vm0 = vcmp.lt.s32.totalorder %v2907_v49, 0  ;;  %v4745_v5 = vshrl.u32 %v565_v7, 30  ;;  %v697_v9 = vsel %vm3852_vm7, 0, %v695_v33  ;;  %3297 = vsinq.f32 %v1632_v8 }
 0x23b   : > { %vm4734_vm4 = vcmp.le.f32.partialorder %v5401_v43, 0.7853982  ;;  %v5405_v34 = vand.u32 2147483647, %v4275_v39  ;;  %v2148_v25 = vxor.u32 2147483648, %v2147_v0  ;;  %v4755_v48 = vsel %vm2908_vm0, 0, %v2907_v49  ;;  %v4757_v53 = vpop.eup %3285 }
 0x23c   : > { %v5403_v22 = vsel %vm4734_vm4, 4294967295, %v5402_v22  ;;  %v1944_v38 = vsel %vm4734_vm4, %v4207_v44, %v1941_v6  ;;  %v2036_v32 = vsub.s32 4294967266, %v4755_v48  ;;  %v567_v52 = vshll.u32 %v4745_v5, 30 }
 0x23d   : > { %vm4751_vm14 = vcmp.le.f32.partialorder %v5405_v34, 0.7853982  ;;  %vm5409_vm7 = vcmp.lt.s32.totalorder %v5408_v50, 0  ;;  %3299 = vcosq.f32 %v1944_v38  ;;  %v701_v37 = vadd.s32 3, %v697_v9  ;;  %v4768_v12 = vpop.eup %3287 }
 0x23e   : > { %v1840_v47 = vsel %vm4751_vm14, %v4275_v39, %v1837_v15  ;;  %v799_v63 = vsel %vm5409_vm7, %v798_v27, %v5400_v40  ;;  %v902_v59 = vsub.s32 4, %v5410_v19  ;;  %3301 = vsinq.f32 %v1944_v38  ;;  %v4773_v42 = vpop.eup %3289  ;;  %v5417_v15 = vld [vmem:[#allocation23_spill] sm:$0xff] }
 0x23f   : > { %vm5282_vm0 = vcmp.lt.s32.totalorder %v4328_v28, 0  ;;  %v4771_v3 = vsub.s32 %v564_v13, %v567_v52  ;;  %3303 = vcosq.f32 %v1840_v47  ;;  %v2037_v23 = vadd.s32 127, %v2036_v32  ;;  %v5418_v38 = vld [vmem:[#allocation3_spill] sm:$0xff] }
 0x240   : > { %v2149_v8 = vsel %vm5282_vm0, %v2148_v25, %v2147_v0  ;;  %v801_v33 = vsel %vm3905_vm11, 0, %v799_v63  ;;  %3305 = vsinq.f32 %v1840_v47  ;;  %v5412_v49 = vand.u32 2147483647, %v4328_v28  ;;  %v4786_v40 = vpop.eup %3291  ;;  %v5421_v47 = vld [vmem:[#allocation22_spill] sm:$0xff] }
 0x241   : > { %v5413_v7 = vmov 0  ;;  %v570_v13 = vsub.s32 0, %v4771_v3  ;;  %5416 = vst [vmem:[#allocation10_spill] sm:$0xff] %v4786_v40  ;;  %v2032_v27 = vsub.s32 32, %v4755_v48  ;;  %v702_v43 = vand.u32 3, %v701_v37  ;;  %v4793_v9 = vpop.eup %3293 }
 0x242   : > { %vm4781_vm7 = vcmp.le.f32.partialorder %v5412_v49, 0.7853982  ;;  %v705_v0 = vxor.u32 2147483648, %v5417_v15  ;;  %vm5419_vm0 = vcmp.lt.s32.totalorder %v5418_v38, 0  ;;  %5420 = vst [vmem:[#allocation20_spill] sm:$0xff] %v4793_v9  ;;  %v708_v32 = vxor.u32 2147483648, %v5421_v47 }
 0x243   : > { %v5414_v7 = vsel %vm4781_vm7, 4294967295, %v5413_v7  ;;  %v903_v10 = vsel %vm5419_vm0, %v902_v59, %v5410_v19  ;;  %v2152_v34 = vsel %vm4781_vm7, %v4328_v28, %v2149_v8  ;;  %v2850_v25 = vmin.u32 %v570_v13, %v4771_v3  ;;  %v4801_v63 = vpop.eup %3295  ;;  %v5422_v59 = vld [vmem:[#allocation31_spill] sm:$0xff]  ;;  %v5423_v8 = vld [vmem:[#allocation30_spill] sm:$0xff] }
 0x244   : > { %5415 = vst [vmem:[#allocation11_spill] sm:$0xff] %v5414_v7  ;;  %v805_v52 = vadd.s32 3, %v801_v33  ;;  %v2016_v37 = vadd.s32 %v4599_v31, %v4610_v24  ;;  %v2038_v6 = vshll.u32 %v2037_v23, 23  ;;  %v560_v19 = vadd.s32 %v4685_v17, %v4682_v11  ;;  %v5425_v28 = vld [vmem:[#allocation14_spill] sm:$0xff]  ;;  %v4812_v33 = vpop.eup %3297 }
 0x245   : > { %v809_v49 = vxor.u32 2147483648, %v5422_v59  ;;  %v572_v29 = vclz %v2850_v25  ;;  %v812_v54 = vxor.u32 2147483648, %v5423_v8  ;;  %v905_v13 = vsel %vm3863_vm9, 0, %v903_v10 }
 0x246   : > { %v1006_v40 = vsub.s32 4, %v5425_v28  ;;  %3307 = vcosq.f32 %v2152_v34  ;;  %v2034_v9 = vshrl.u32 %v2016_v37, %v2032_v27  ;;  %v5426_v31 = vand.u32 2147483647, %v3499_v26 }
 0x247   : > { %vm704_vm2 = vcmp.eq.s32.totalorder %v702_v43, 0  ;;  %vm707_vm1 = vcmp.eq.s32.totalorder %v702_v43, 2  ;;  %v2851_v11 = vadd.s32 4294967294, %v572_v29  ;;  %v806_v7 = vand.u32 3, %v805_v52  ;;  %v4822_v10 = vpop.eup %3299  ;;  %v5431_v29 = vld [vmem:[#allocation8_spill] sm:$0xff] }
 0x248   : > { %vm4816_vm0 = vcmp.le.f32.partialorder %v5426_v31, 0.7853982  ;;  %v706_v17 = vsel %vm704_vm2, %v5421_v47, %v705_v0  ;;  %v709_v23 = vsel %vm707_vm1, %v708_v32, %v5417_v15  ;;  %5429 = vst [vmem:[#allocation15_spill] sm:$0xff] %v4822_v10  ;;  %v2033_v25 = vshll.u32 %v4695_v16, %v4755_v48  ;;  %v4828_v21 = vpop.eup %3301  ;;  %v5433_v0 = vld [vmem:[#allocation13_spill] sm:$0xff] }
 0x249   : > { %v2039_v27 = vor.u32 4788187, %v2038_v6  ;;  %v590_v37 = vsub.s32 4, %v4745_v5  ;;  %v909_v31 = vadd.s32 3, %v905_v13  ;;  %5430 = vst [vmem:[#allocation5_spill] sm:$0xff] %v4828_v21  ;;  %vm2852_vm11 = vcmp.lt.s32.totalorder %v2851_v11, 0  ;;  %v4834_v32 = vpop.eup %3303 }
 0x24a   : > { %vm703_vm7 = vcmp.lt.s32.totalorder %v702_v43, 2  ;;  %vm5432_vm2 = vcmp.lt.s32.totalorder %v5431_v29, 0  ;;  %v1110_v47 = vsub.s32 4, %v5433_v0  ;;  %5434 = vst [vmem:[#allocation2_spill] sm:$0xff] %v4834_v32  ;;  %3309 = vsinq.f32 %v2152_v34  ;;  %v4836_v6 = vpop.eup %3305 }
 0x24b   : > { %v1007_v15 = vsel %vm5432_vm2, %v1006_v40, %v5425_v28  ;;  %v2035_v16 = vor.u32 %v2034_v9, %v2033_v25  ;;  %v575_v48 = vsel %vm2852_vm11, 0, %v2851_v11  ;;  %v710_v52 = vsel %vm703_vm7, %v706_v17, %v709_v23  ;;  %5435 = vst [vmem:[#allocation9_spill] sm:$0xff] %v4836_v6  ;;  %v5438_v23 = vld [vmem:[#allocation6_spill] sm:$0xff] }
 0x24c   : > { %v576_v10 = vsub.s32 32, %v575_v48  ;;  %v580_v13 = vsub.s32 4294967266, %v575_v48  ;;  %vm808_vm1 = vcmp.eq.s32.totalorder %v806_v7, 0  ;;  %vm811_vm9 = vcmp.eq.s32.totalorder %v806_v7, 2 }
 0x24d   : > { %v2040_v21 = vand.u32 2147483647, %v2039_v27  ;;  %vm5436_vm4 = vcmp.lt.s32.totalorder %v3499_v26, 0  ;;  %vm804_vm2 = vweird.f32 %v5408_v50  ;;  %v910_v28 = vand.u32 3, %v909_v31 }
 0x24e   : > { %v591_v43 = vsel %vm5436_vm4, %v590_v37, %v4745_v5  ;;  %v1009_v34 = vsel %vm4154_vm12, 0, %v1007_v15  ;;  %v577_v9 = vshll.u32 %v4771_v3, %v575_v48  ;;  %v578_v11 = vshrl.u32 %v560_v19, %v576_v10  ;;  %v5440_v5 = vld [vmem:[#allocation25_spill] sm:$0xff]  ;;  %v5441_v19 = vld [vmem:[#allocation24_spill] sm:$0xff] }
 0x24f   : > { %v581_v17 = vadd.s32 127, %v580_v13  ;;  %vm5439_vm7 = vcmp.lt.s32.totalorder %v5438_v23, 0  ;;  %v2042_v32 = vcvt.s32.f32 %v2035_v16  ;;  %v810_v27 = vsel %vm808_vm1, %v5423_v8, %v809_v49  ;;  %v5443_v8 = vld [vmem:[#allocation21_spill] sm:$0xff] }
 0x250   : > { %v1111_v25 = vsel %vm5439_vm7, %v1110_v47, %v5433_v0  ;;  %v813_v6 = vsel %vm811_vm9, %v812_v54, %v5422_v59  ;;  %v913_v37 = vxor.u32 2147483648, %v5440_v5  ;;  %vm5300_vm4 = vcmp.lt.s32.totalorder %v4443_v20, 0  ;;  %v4855_v15 = vpop.eup %3307 }
 0x251   : > { %v579_v31 = vor.u32 %v578_v11, %v577_v9  ;;  %v582_v40 = vshll.u32 %v581_v17, 23  ;;  %v593_v3 = vsel %vm4816_vm0, 0, %v591_v43  ;;  %v916_v10 = vxor.u32 2147483648, %v5441_v19 }
 0x252   : > { %v2043_v48 = vmul.f32 %v2042_v32, %v2040_v21  ;;  %v1013_v0 = vadd.s32 3, %v1009_v34  ;;  %v1113_v49 = vsel %vm4076_vm15, 0, %v1111_v25  ;;  %v1214_v54 = vsub.s32 4, %v5443_v8 }
 0x253   : > { %v583_v59 = vor.u32 4788187, %v582_v40  ;;  %vm5444_vm12 = vweird.f32 %v5398_v30  ;;  %vm807_vm11 = vcmp.lt.s32.totalorder %v806_v7, 2  ;;  %vm912_vm9 = vcmp.eq.s32.totalorder %v910_v28, 0 }
 0x254   : > { %v4862_v16 = vsel %vm5444_vm12, nan, %v710_v52  ;;  %v597_v13 = vadd.s32 3, %v593_v3  ;;  %v814_v43 = vsel %vm807_vm11, %v810_v27, %v813_v6  ;;  %v914_v9 = vsel %vm912_vm9, %v5441_v19, %v913_v37  ;;  %v4866_v17 = vpop.eup %3309  ;;  %v5449_v27 = vld [vmem:[#allocation16_spill] sm:$0xff] }
 0x255   : > { %vm915_vm1 = vcmp.eq.s32.totalorder %v910_v28, 2  ;;  %v584_v11 = vand.u32 2147483647, %v583_v59  ;;  %v586_v21 = vcvt.s32.f32 %v579_v31  ;;  %v1117_v34 = vadd.s32 3, %v1113_v49 }
 0x256   : > { %v917_v32 = vsel %vm915_vm1, %v916_v10, %v5440_v5  ;;  %v5445_v25 = vand.u32 2147483647, %v4443_v20  ;;  %v2044_v7 = vxor.u32 2147483648, %v2043_v48  ;;  %vm908_vm7 = vweird.f32 %v5418_v38 }
 0x257   : > { %v1014_v52 = vand.u32 3, %v1013_v0  ;;  %vm5448_vm12 = vcmp.lt.s32.totalorder %v3728_v18, 0  ;;  %v1318_v37 = vsub.s32 4, %v5449_v27  ;;  %v587_v5 = vmul.f32 %v586_v21, %v584_v11  ;;  %v5450_v0 = vld [vmem:[#allocation12_spill] sm:$0xff] }
 0x258   : > { %vm4870_vm15 = vcmp.le.f32.partialorder %v5445_v25, 0.7853982  ;;  %v1215_v6 = vsel %vm5448_vm12, %v1214_v54, %v5443_v8  ;;  %v4881_v31 = vsel %vm804_vm2, nan, %v814_v43  ;;  %vm911_vm11 = vcmp.lt.s32.totalorder %v910_v28, 2  ;;  %v5452_v54 = vld [vmem:[#allocation35_spill] sm:$0xff] }
 0x259   : > { %v1017_v40 = vxor.u32 2147483648, %v4338_v58  ;;  %v4884_v3 = vand.u32 3, %v597_v13  ;;  %v918_v19 = vsel %vm911_vm11, %v914_v9, %v917_v32  ;;  %v1020_v10 = vxor.u32 2147483648, %v4310_v35  ;;  %v5454_v13 = vld [vmem:[#allocation34_spill] sm:$0xff]  ;;  %v5455_v9 = vld [vmem:[#allocation28_spill] sm:$0xff] }
 0x25a   : > { %vm5451_vm9 = vcmp.lt.s32.totalorder %v5450_v0, 0  ;;  %v588_v49 = vxor.u32 2147483648, %v587_v5  ;;  %v1118_v8 = vand.u32 3, %v1117_v34  ;;  %v1121_v59 = vxor.u32 2147483648, %v5452_v54 }
 0x25b   : > { %v1319_v47 = vsel %vm5451_vm9, %v1318_v37, %v5449_v27  ;;  %v1217_v50 = vsel %vm4302_vm8, 0, %v1215_v6  ;;  %v2045_v28 = vsel %vm5300_vm4, %v2044_v7, %v2043_v48  ;;  %vm1012_vm2 = vweird.f32 %v5431_v29 }
 0x25c   : > { %vm1016_vm1 = vcmp.eq.s32.totalorder %v1014_v52, 0  ;;  %v1124_v43 = vxor.u32 2147483648, %v5454_v13  ;;  %v1422_v21 = vsub.s32 4, %v5455_v9  ;;  %vm5456_vm12 = vcmp.lt.s32.totalorder %v3499_v26, 0 }
 0x25d   : > { %v589_v32 = vsel %vm5456_vm12, %v588_v49, %v587_v5  ;;  %v1018_v34 = vsel %vm1016_vm1, %v4310_v35, %v1017_v40  ;;  %vm1019_vm11 = vcmp.eq.s32.totalorder %v1014_v52, 2  ;;  %v1321_v27 = vsel %vm4228_vm13, 0, %v1319_v47  ;;  %v5459_v5 = vld [vmem:[#allocation26_spill] sm:$0xff] }
 0x25e   : > { %v592_v48 = vsel %vm4816_vm0, %v3499_v26, %v589_v32  ;;  %v1021_v7 = vsel %vm1019_vm11, %v1020_v10, %v4338_v58  ;;  %v1221_v6 = vadd.s32 3, %v1217_v50  ;;  %vm5458_vm8 = vcmp.lt.s32.totalorder %v3887_v41, 0 }
 0x25f   : > { %v1423_v37 = vsel %vm5458_vm8, %v1422_v21, %v5455_v9  ;;  %3311 = vcosq.f32 %v592_v48  ;;  %vm1120_vm9 = vcmp.eq.s32.totalorder %v1118_v8, 0  ;;  %vm1123_vm12 = vcmp.eq.s32.totalorder %v1118_v8, 2  ;;  %v5463_v21 = vld [vmem:[#allocation39_spill] sm:$0xff] }
 0x260   : > { %v1526_v35 = vsub.s32 4, %v5459_v5  ;;  %3313 = vsinq.f32 %v592_v48  ;;  %v1122_v40 = vsel %vm1120_vm9, %v5454_v13, %v1121_v59  ;;  %v1125_v47 = vsel %vm1123_vm12, %v1124_v43, %v5452_v54  ;;  %v5462_v43 = vld [vmem:[#allocation40_spill] sm:$0xff] }
 0x261   : > { %v1325_v49 = vadd.s32 3, %v1321_v27  ;;  %v2048_v58 = vsel %vm4870_vm15, %v4443_v20, %v2045_v28  ;;  %v4918_v24 = vsel %vm908_vm7, nan, %v918_v19  ;;  %vm1015_vm13 = vcmp.lt.s32.totalorder %v1014_v52, 2  ;;  %v5461_v19 = vld [vmem:[#allocation37_spill] sm:$0xff]  ;;  %v5464_v48 = vld [vmem:[#allocation32_spill] sm:$0xff] }
 0x262   : > { %v1425_v10 = vsel %vm4631_vm5, 0, %v1423_v37  ;;  %v1022_v11 = vsel %vm1015_vm13, %v1018_v34, %v1021_v7  ;;  %vm1116_vm0 = vweird.f32 %v5438_v23  ;;  %vm1119_vm1 = vcmp.lt.s32.totalorder %v1118_v8, 2 }
 0x263   : > { %v1222_v59 = vand.u32 3, %v1221_v6  ;;  %vm603_vm11 = vcmp.eq.s32.totalorder %v4884_v3, 2  ;;  %v1126_v54 = vsel %vm1119_vm1, %v1122_v40, %v1125_v47  ;;  %v1225_v50 = vxor.u32 2147483648, %v4586_v14 }
 0x264   : > { %v1228_v28 = vxor.u32 2147483648, %v4579_v62  ;;  %vm5460_vm7 = vcmp.lt.s32.totalorder %v3828_v4, 0  ;;  %3315 = vcosq.f32 %v2048_v58  ;;  %vm600_vm8 = vcmp.eq.s32.totalorder %v4884_v3, 0 }
 0x265   : > { %v1527_v38 = vsel %vm5460_vm7, %v1526_v35, %v5459_v5  ;;  %v1326_v60 = vand.u32 3, %v1325_v49  ;;  %v1429_v52 = vadd.s32 3, %v1425_v10  ;;  %v1630_v13 = vsub.s32 4, %v5461_v19 }
 0x266   : > { %3317 = vsinq.f32 %v2048_v58  ;;  %vm599_vm5 = vcmp.lt.s32.totalorder %v4884_v3, 2  ;;  %v4934_v8 = vsel %vm1012_vm2, nan, %v1022_v11  ;;  %v1329_v9 = vxor.u32 2147483648, %v5462_v43 }
 0x267   : > { %v1332_v32 = vxor.u32 2147483648, %v5463_v21  ;;  %vm596_vm12 = vweird.f32 %v3499_v26  ;;  %v4941_v34 = vsel %vm1116_vm0, nan, %v1126_v54  ;;  %vm1220_vm13 = vweird.f32 %v3728_v18 }
 0x268   : > { %vm1224_vm1 = vcmp.eq.s32.totalorder %v1222_v59, 0  ;;  %vm1227_vm7 = vcmp.eq.s32.totalorder %v1222_v59, 2  ;;  %v1529_v25 = vsel %vm4496_vm10, 0, %v1527_v38  ;;  %vm1223_vm4 = vcmp.lt.s32.totalorder %v1222_v59, 2 }
 0x269   : > { %v1226_v29 = vsel %vm1224_vm1, %v4579_v62, %v1225_v50  ;;  %v1229_v27 = vsel %vm1227_vm7, %v1228_v28, %v4586_v14  ;;  %v1734_v7 = vsub.s32 4, %v5464_v48  ;;  %vm1328_vm2 = vcmp.eq.s32.totalorder %v1326_v60, 0  ;;  %v3312_v37 = vpop.eup %3311 }
 0x26a   : > { %vm1331_vm9 = vcmp.eq.s32.totalorder %v1326_v60, 2  ;;  %v1430_v6 = vand.u32 3, %v1429_v52  ;;  %vm5465_vm0 = vcmp.lt.s32.totalorder %v4039_v61, 0  ;;  %v1330_v5 = vsel %vm1328_vm2, %v5463_v21, %v1329_v9  ;;  %v3314_v62 = vpop.eup %3313 }
 0x26b   : > { %v1631_v23 = vsel %vm5465_vm0, %v1630_v13, %v5461_v19  ;;  %v1333_v56 = vsel %vm1331_vm9, %v1332_v32, %v5462_v43  ;;  %v1433_v35 = vxor.u32 2147483648, %v4773_v42  ;;  %v1533_v40 = vadd.s32 3, %v1529_v25 }
 0x26c   : > { %v604_v47 = vxor.u32 2147483648, %v3312_v37  ;;  %v1230_v14 = vsel %vm1223_vm4, %v1226_v29, %v1229_v27  ;;  %vm1324_vm10 = vweird.f32 %v5450_v0  ;;  %v1436_v49 = vxor.u32 2147483648, %v4768_v12  ;;  %v3321_v0 = vld [vmem:[%s5187_s3] sm:$0xf] }
 0x26d   : > { %v601_v58 = vxor.u32 2147483648, %v3314_v62  ;;  %vm1327_vm1 = vcmp.lt.s32.totalorder %v1326_v60, 2  ;;  %v1633_v10 = vsel %vm4670_vm3, 0, %v1631_v23  ;;  %vm5466_vm7 = vcmp.lt.s32.totalorder %v4035_v36, 0 }
 0x26e   : > { %v1735_v11 = vsel %vm5466_vm7, %v1734_v7, %v5464_v48  ;;  %v605_v59 = vsel %vm603_vm11, %v604_v47, %v3314_v62  ;;  %v1334_v54 = vsel %vm1327_vm1, %v1330_v5, %v1333_v56  ;;  %vm1432_vm9 = vcmp.eq.s32.totalorder %v1430_v6, 0  ;;  %v4968_v46 = vpop.eup %3315 }
 0x26f   : > { %v1838_v50 = vsub.s32 4, %v4469_v2  ;;  %v602_v28 = vsel %vm600_vm8, %v3312_v37, %v601_v58  ;;  %v1434_v38 = vsel %vm1432_vm9, %v4768_v12, %v1433_v35  ;;  %vm1435_vm4 = vcmp.eq.s32.totalorder %v1430_v6, 2  ;;  %v5480_v58 = vld [vmem:[#allocation38_spill] sm:$0xff] }
 0x270   : > { %v1534_v60 = vand.u32 3, %v1533_v40  ;;  %v606_v52 = vsel %vm599_vm5, %v602_v28, %v605_v59  ;;  %v1437_v19 = vsel %vm1435_vm4, %v1436_v49, %v4773_v42  ;;  %v1637_v13 = vadd.s32 3, %v1633_v10  ;;  %v4975_v9 = vpop.eup %3317  ;;  %v5479_v40 = vld [vmem:[#allocation10_spill] sm:$0xff]  ;;  %v2553_v10 = vld [vmem:[%s5190_s6 + $0x8] sm:$0xff] }
 0x271   : > { %v1737_v43 = vsel %vm4653_vm6, 0, %v1735_v11  ;;  %v607_v21 = vsel %vm596_vm12, nan, %v606_v52  ;;  %v1231_v12 = vsel %vm1220_vm13, nan, %v1230_v14  ;;  %vm1428_vm3 = vweird.f32 %v3887_v41  ;;  %v5476_v41 = vld [vmem:[#allocation41_spill] sm:$0xff] }
 0x272   : > { %v1537_v32 = vxor.u32 2147483648, %v4757_v53  ;;  %vm5467_vm11 = vcmask 130048   ;;  %v4986_v42 = vsel %vm1324_vm10, nan, %v1334_v54  ;;  %vm1431_vm8 = vcmp.lt.s32.totalorder %v1430_v6, 2  ;;  %v5483_v11 = vld [vmem:[#allocation9_spill] sm:$0xff]  ;;  %v5484_v54 = vld [vmem:[#allocation2_spill] sm:$0xff] }
 0x273   : > { %3067 = vmatprep.mubr.msk.f32.mxu1 %vm5467_vm11, %v607_v21  ;;  %v1540_v1 = vxor.u32 2147483648, %v4740_v55  ;;  %vm5468_vm6 = vcmp.lt.s32.totalorder %v4275_v39, 0  ;;  %vm5469_vm5 = vmmov %vm5467_vm11  ;;  %v1438_v18 = vsel %vm1431_vm8, %v1434_v38, %v1437_v19  ;;  %v1741_v3 = vadd.s32 3, %v1737_v43 }
 0x274   : > { %v1839_v26 = vsel %vm5468_vm6, %v1838_v50, %v4469_v2  ;;  %3068 = vmatmul.mubr.msk.f32.vlgmr.msra.gmra.mrb[0].mxu1 %vm5469_vm5, %v4862_v16  ;;  %v1942_v29 = vsub.s32 4, %v4405_v45  ;;  %vm5470_vm12 = vcmask 1043456   ;;  %vm5471_vm13 = vmmov %vm5469_vm5  ;;  %vm1535_vm2 = vcmp.lt.s32.totalorder %v1534_v60, 2 }
 0x275   : > { %v1841_v25 = vsel %vm4751_vm14, 0, %v1839_v26  ;;  %3092 = vmatpush3.msk.msra.mxu1 %vm5470_vm12, %v3321_v0  ;;  %3070 = vmatprep.mubr.msk.f32.mxu1 %vm5471_vm13, %v4881_v31  ;;  %v1638_v2 = vand.u32 3, %v1637_v13  ;;  %v1641_v16 = vxor.u32 2147483648, %v4812_v33  ;;  %v1644_v27 = vxor.u32 2147483648, %v4801_v63  ;;  %vm5473_vm1 = vmmov %vm5469_vm5  ;;  %v5491_v0 = vld [vmem:[#allocation15_spill] sm:$0xff] }
 0x276   : > { %vm1536_vm0 = vcmp.eq.s32.totalorder %v1534_v60, 0  ;;  %vm1539_vm10 = vcmp.eq.s32.totalorder %v1534_v60, 2  ;;  %vm5472_vm14 = vcmp.lt.s32.totalorder %v4207_v44, 0  ;;  %v2046_v48 = vsub.s32 4, %v4660_v57  ;;  %v5486_v60 = vld [vmem:[#allocation11_spill] sm:$0xff] }
 0x277   : > { %v1943_v51 = vsel %vm5472_vm14, %v1942_v29, %v4405_v45  ;;  %v1439_v7 = vsel %vm1428_vm3, nan, %v1438_v18  ;;  %v1538_v6 = vsel %vm1536_vm0, %v4740_v55, %v1537_v32  ;;  %v1541_v31 = vsel %vm1539_vm10, %v1540_v1, %v4757_v53  ;;  %vm5477_vm3 = vmmov %vm5473_vm1  ;;  %v5478_v55 = vld [vmem:[#allocation20_spill] sm:$0xff] }
 0x278   : > { %v1845_v23 = vadd.s32 3, %v1841_v25  ;;  %3071 = vmatmul.mubr.msk.f32.gmra.mrb[2].mxu1 %vm5473_vm1, %v4918_v24  ;;  %vm1532_vm7 = vweird.f32 %v3828_v4  ;;  %v1742_v37 = vand.u32 3, %v1741_v3  ;;  %vm5474_vm9 = vnez %v5403_v22  ;;  %v5490_v25 = vld [vmem:[#allocation5_spill] sm:$0xff] }
 0x279   : > { %v1945_v5 = vsel %vm5474_vm9, 0, %v1943_v51  ;;  %vm5475_vm4 = vcmp.lt.s32.totalorder %v4443_v20, 0  ;;  %v2150_v56 = vsub.s32 4, %v5476_v41  ;;  %3073 = vmatprep.mubr.msk.f32.mxu1 %vm5477_vm3, %v4934_v8  ;;  %vm1636_vm11 = vweird.f32 %v4039_v61  ;;  %v2552_v8 = vld [vmem:[%s5190_s6] sm:$0xff] }
 0x27a   : > { %v2047_v45 = vsel %vm5475_vm4, %v2046_v48, %v4660_v57  ;;  %vm1640_vm8 = vcmp.eq.s32.totalorder %v1638_v2, 0  ;;  %vm1643_vm6 = vcmp.eq.s32.totalorder %v1638_v2, 2  ;;  %v1745_v53 = vxor.u32 2147483648, %v5478_v55 }
 0x27b   : > { %v2049_v24 = vsel %vm4870_vm15, 0, %v2047_v45  ;;  %v1542_v22 = vsel %vm1535_vm2, %v1538_v6, %v1541_v31  ;;  %v1642_v35 = vsel %vm1640_vm8, %v4801_v63, %v1641_v16  ;;  %v1645_v57 = vsel %vm1643_vm6, %v1644_v27, %v4812_v33  ;;  %v2554_v63 = vld [vmem:[%s5190_s6 + $0x10] sm:$0xff]  ;;  %v2555_v33 = vld [vmem:[%s5190_s6 + $0x18] sm:$0xff]  ;;  %vm5482_vm15 = vmmov %vm5473_vm1 }
 0x27c   : > { %v1748_v62 = vxor.u32 2147483648, %v5479_v40  ;;  %v1846_v47 = vand.u32 3, %v1845_v23  ;;  %v1949_v14 = vadd.s32 3, %v1945_v5  ;;  %v2053_v49 = vadd.s32 3, %v2049_v24  ;;  %3074 = vmatmul.mubr.msk.f32.gmra.mrb[4].mxu1 %vm5482_vm15, %v4941_v34  ;;  %vm5485_vm2 = vmmov %vm5473_vm1  ;;  %v3328_v24 = vld [vmem:[%s3413_s9 + $0x30] sm:$0xff] }
 0x27d   : > { %vm5481_vm5 = vcmp.lt.s32.totalorder %v5480_v58, 0  ;;  %vm1639_vm12 = vcmp.lt.s32.totalorder %v1638_v2, 2  ;;  %vm1744_vm13 = vcmp.eq.s32.totalorder %v1742_v37, 0  ;;  %v1849_v59 = vxor.u32 2147483648, %v5483_v11  ;;  %3076 = vmatprep.mubr.msk.f32.mxu1 %vm5485_vm2, %v1231_v12  ;;  %vm5488_vm9 = vmmov %vm5485_vm2 }
 0x27e   : > { %v2151_v30 = vsel %vm5481_vm5, %v2150_v56, %v5476_v41  ;;  %v1852_v50 = vxor.u32 2147483648, %v5484_v54  ;;  %v1646_v28 = vsel %vm1639_vm12, %v1642_v35, %v1645_v57  ;;  %v1746_v38 = vsel %vm1744_vm13, %v5479_v40, %v1745_v53  ;;  %vm5489_vm4 = vmmov %vm5485_vm2  ;;  %v3325_v56 = vld [vmem:[%s3413_s9 + $0x18] sm:$0xff]  ;;  %v3327_v53 = vld [vmem:[%s3413_s9 + $0x28] sm:$0xff] }
 0x27f   : > { %vm1747_vm0 = vcmp.eq.s32.totalorder %v1742_v37, 2  ;;  %vm5487_vm10 = vnez %v5486_v60  ;;  %v2057_v13 = vxor.u32 2147483648, %v4975_v9  ;;  %v3153_v34 = vpack.c.bf16 %v2553_v10, %v2552_v8  ;;  %vm5492_vm13 = vmmov %vm5485_vm2  ;;  %v3330_v35 = vld [vmem:[%s3413_s9 + $0x40] sm:$0xff]  ;;  %v3331_v57 = vld [vmem:[%s3413_s9 + $0x48] sm:$0xff] }
 0x280   : > { %v2153_v52 = vsel %vm5487_vm10, 0, %v2151_v30  ;;  %v1749_v19 = vsel %vm1747_vm0, %v1748_v62, %v5478_v55  ;;  %v3157_v43 = vpack.c.bf16 %v2555_v33, %v2554_v63  ;;  %vm1848_vm14 = vcmp.eq.s32.totalorder %v1846_v47, 0  ;;  %3077 = vmatmul.mubr.msk.f32.gmra.mrb[6].mxu1 %vm5488_vm9, %v4986_v42  ;;  %v3326_v55 = vld [vmem:[%s3413_s9 + $0x20] sm:$0xff]  ;;  %v3332_v40 = vld [vmem:[%s3413_s9 + $0x50] sm:$0xff]  ;;  %v3333_v62 = vld [vmem:[%s3413_s9 + $0x58] sm:$0xff] }
 0x281   : > { %vm1851_vm1 = vcmp.eq.s32.totalorder %v1846_v47, 2  ;;  %v1950_v21 = vand.u32 3, %v1949_v14  ;;  %v2054_v32 = vand.u32 3, %v2053_v49  ;;  %v1850_v12 = vsel %vm1848_vm14, %v5484_v54, %v1849_v59  ;;  %3154 = vmatprep.subr.bf16.mxu0 %v3153_v34  ;;  %3079 = vmatprep.mubr.msk.f32.mxu1 %vm5489_vm4, %v1439_v7  ;;  %vm5493_vm14 = vmmov %vm5485_vm2  ;;  %v3334_v8 = vld [vmem:[%s3413_s9 + $0x60] sm:$0xff]  ;;  %v3336_v14 = vld [vmem:[%s3413_s9 + $0x70] sm:$0xff] }
 0x282   : > { %v1853_v1 = vsel %vm1851_vm1, %v1852_v50, %v5483_v11  ;;  %v2060_v26 = vxor.u32 2147483648, %v4968_v46  ;;  %v2157_v18 = vadd.s32 3, %v2153_v52  ;;  %v1543_v3 = vsel %vm1532_vm7, nan, %v1542_v22  ;;  %3156 = vmatpush3.bf16.msra.mxu0 %v3153_v34  ;;  %vm5494_vm4 = vmmov %vm5485_vm2  ;;  %v3329_v22 = vld [vmem:[%s3413_s9 + $0x38] sm:$0xff] }
 0x283   : > { %vm1743_vm3 = vcmp.lt.s32.totalorder %v1742_v37, 2  ;;  %v1953_v29 = vxor.u32 2147483648, %v5490_v25  ;;  %v1956_v2 = vxor.u32 2147483648, %v5491_v0  ;;  %v1647_v42 = vsel %vm1636_vm11, nan, %v1646_v28  ;;  %3158 = vmatprep.subr.bf16.mxu0 %v3157_v43  ;;  %v3337_v49 = vld [vmem:[%s3413_s9 + $0x78] sm:$0xff] }
 0x284   : > { %v1750_v16 = vsel %vm1743_vm3, %v1746_v38, %v1749_v19  ;;  %vm1844_vm8 = vweird.f32 %v4275_v39  ;;  %vm1847_vm6 = vcmp.lt.s32.totalorder %v1846_v47, 2  ;;  %vm1952_vm5 = vcmp.eq.s32.totalorder %v1950_v21, 0  ;;  %3080 = vmatmul.mubr.msk.f32.gmra.mrb[8].mxu1 %vm5492_vm13, %v1543_v3  ;;  %vm5497_vm13 = vmmov %vm5485_vm2  ;;  %v3335_v47 = vld [vmem:[%s3413_s9 + $0x68] sm:$0xff] }
 0x285   : > { %v1854_v27 = vsel %vm1847_vm6, %v1850_v12, %v1853_v1  ;;  %vm2056_vm15 = vcmp.eq.s32.totalorder %v2054_v32, 0  ;;  %vm2059_vm12 = vcmp.eq.s32.totalorder %v2054_v32, 2  ;;  %vm1955_vm7 = vcmp.eq.s32.totalorder %v1950_v21, 2  ;;  %3082 = vmatprep.mubr.msk.f32.mxu1 %vm5485_vm2, %v1647_v42 }
 0x286   : > { %v2058_v4 = vsel %vm2056_vm15, %v4968_v46, %v2057_v13  ;;  %v2061_v51 = vsel %vm2059_vm12, %v2060_v26, %v4975_v9  ;;  %v2158_v48 = vand.u32 3, %v2157_v18  ;;  %v1954_v61 = vsel %vm1952_vm5, %v5491_v0, %v1953_v29  ;;  %3160 = vmatpush3.bf16.msra.mxu0 %v3157_v43  ;;  %vm5495_vm5 = vmmov %vm5485_vm2 }
 0x287   : > { %v1957_v7 = vsel %vm1955_vm7, %v1956_v2, %v5490_v25  ;;  %v2161_v6 = vxor.u32 2147483648, %v4866_v17  ;;  %v2164_v31 = vxor.u32 2147483648, %v4855_v15  ;;  %vm1740_vm11 = vweird.f32 %v4035_v36  ;;  %vm5496_vm15 = vmmov %vm5485_vm2 }
 0x288   : > { %v1855_v23 = vsel %vm1844_vm8, nan, %v1854_v27  ;;  %vm2055_vm0 = vcmp.lt.s32.totalorder %v2054_v32, 2  ;;  %v1751_v46 = vsel %vm1740_vm11, nan, %v1750_v16  ;;  %vm1951_vm10 = vcmp.lt.s32.totalorder %v1950_v21, 2 }
 0x289   : > { %v2062_v9 = vsel %vm2055_vm0, %v2058_v4, %v2061_v51  ;;  %3083 = vmatmul.mubr.msk.f32.gmra.mrb[10].mxu1 %vm5493_vm14, %v1751_v46  ;;  %v1958_v37 = vsel %vm1951_vm10, %v1954_v61, %v1957_v7  ;;  %vm2160_vm1 = vcmp.eq.s32.totalorder %v2158_v48, 0  ;;  %vm2163_vm9 = vcmp.eq.s32.totalorder %v2158_v48, 2 }
 0x28a   : > { %3085 = vmatprep.mubr.msk.f32.mxu1 %vm5494_vm4, %v1855_v23  ;;  %vm2052_vm3 = vweird.f32 %v4443_v20  ;;  %v2162_v36 = vsel %vm2160_vm1, %v4855_v15, %v2161_v6  ;;  %v2165_v39 = vsel %vm2163_vm9, %v2164_v31, %v4866_v17  ;;  %vm1948_vm8 = vweird.f32 %v4207_v44  ;;  %v3322_v15 = vld [vmem:[%s3413_s9] sm:$0xff]  ;;  %v3323_v44 = vld [vmem:[%s3413_s9 + $0x8] sm:$0xff]  ;;  %v3324_v17 = vld [vmem:[%s3413_s9 + $0x10] sm:$0xff] }
 0x28b   : > { %v2063_v5 = vsel %vm2052_vm3, nan, %v2062_v9  ;;  %v1959_v45 = vsel %vm1948_vm8, nan, %v1958_v37  ;;  %vm2159_vm6 = vcmp.lt.s32.totalorder %v2158_v48, 2  ;;  %vm2156_vm12 = vweird.f32 %v5480_v58  ;;  %v2946_v58 = vld [vmem:[%s5189_s5] ss:$0 sm:$0xff] }
 0x28c   : > { %v2166_v41 = vsel %vm2159_vm6, %v2162_v36, %v2165_v39  ;;  %vm5498_vm7 = vcmask 31744  }
 0x28d   : > { %3086 = vmatmul.mubr.msk.f32.gmra.mrb[12].mxu1 %vm5495_vm5, %v1959_v45  ;;  %v2167_v20 = vsel %vm2156_vm12, nan, %v2166_v41  ;;  %vm5499_vm2 = vmmov %vm5498_vm7 }
 0x28e   : > { %3088 = vmatprep.mubr.msk.f32.mxu1 %vm5496_vm15, %v2063_v5  ;;  %vm5500_vm11 = vmmov %vm5499_vm2 }
 0x28f   : > { %vm5501_vm0 = vmmov %vm5499_vm2 }
 0x290   : > { %vm5502_vm10 = vmmov %vm5501_vm0 }
 0x291   : > { %3089 = vmatmul.mubr.msk.f32.gmra.mrb[14].mxu1 %vm5497_vm13, %v2167_v20  ;;  %vm5503_vm14 = vmmov %vm5501_vm0 }
 0x292   : > { %3093 = vmatprep.mubr.msk.f32.mxu1 %vm5498_vm7, %v3322_v15  ;;  %vm5504_vm1 = vmmov %vm5501_vm0  ;;  %vm2556_vm7 = vcmask 261120  }
 0x293   : > { %vm5505_vm9 = vmmov %vm5501_vm0 }
 0x294   : > { %vm5506_vm4 = vmmov %vm5501_vm0 }
 0x295   : > { %3094 = vmatmul.mubr.msk.f32.vlgmr.msra.gmra.mrb[0].mxu1 %vm5499_vm2, %v3323_v44  ;;  %vm5507_vm3 = vmmov %vm5501_vm0  ;;  %vm5514_vm2 = vcmask 130048  }
 0x296   : > { %3096 = vmatprep.mubr.msk.f32.mxu1 %vm5500_vm11, %v3324_v17  ;;  %vm5508_vm8 = vmmov %vm5501_vm0 }
 0x297   : > { %vm5509_vm6 = vmmov %vm5501_vm0 }
 0x298   : > { %vm5510_vm5 = vmmov %vm5501_vm0 }
 0x299   : > { %3097 = vmatmul.mubr.msk.f32.gmra.mrb[2].mxu1 %vm5501_vm0, %v3325_v56  ;;  %vm5511_vm15 = vmmov %vm5501_vm0 }
 0x29a   : > { %3099 = vmatprep.mubr.msk.f32.mxu1 %vm5502_vm10, %v3326_v55  ;;  %vm5512_vm12 = vmmov %vm5501_vm0 }
 0x29b   : > { %vm5513_vm13 = vmmov %vm5501_vm0 }
 0x29c   : > { %vm5515_vm11 = vmmov %vm5514_vm2 }
 0x29d   : > { %3100 = vmatmul.mubr.msk.f32.gmra.mrb[4].mxu1 %vm5503_vm14, %v3327_v53  ;;  %vm5516_vm0 = vmmov %vm5514_vm2 }
 0x29e   : > { %3102 = vmatprep.mubr.msk.f32.mxu1 %vm5504_vm1, %v3328_v24  ;;  %vm5517_vm10 = vmmov %vm5516_vm0 }
 0x29f   : > { %vm5518_vm14 = vmmov %vm5516_vm0 }
 0x2a0   : > { %vm5519_vm1 = vmmov %vm5516_vm0 }
 0x2a1   : > { %3103 = vmatmul.mubr.msk.f32.gmra.mrb[6].mxu1 %vm5505_vm9, %v3329_v22  ;;  %vm5520_vm9 = vmmov %vm5516_vm0 }
 0x2a2   : > { %3105 = vmatprep.mubr.msk.f32.mxu1 %vm5506_vm4, %v3330_v35  ;;  %vm5521_vm4 = vmmov %vm5516_vm0 }
 0x2a5   : > { %3106 = vmatmul.mubr.msk.f32.gmra.mrb[8].mxu1 %vm5507_vm3, %v3331_v57  ;;  %vm5522_vm3 = vmmov %vm5516_vm0 }
 0x2a6   : > { %3108 = vmatprep.mubr.msk.f32.mxu1 %vm5508_vm8, %v3332_v40  ;;  %vm5523_vm8 = vmmov %vm5516_vm0 }
 0x2a9   : > { %3109 = vmatmul.mubr.msk.f32.gmra.mrb[10].mxu1 %vm5509_vm6, %v3333_v62  ;;  %vm5524_vm6 = vmmov %vm5516_vm0 }
 0x2aa   : > { %3111 = vmatprep.mubr.msk.f32.mxu1 %vm5510_vm5, %v3334_v8  ;;  %vm5525_vm5 = vmmov %vm5516_vm0 }
 0x2ad   : > { %3112 = vmatmul.mubr.msk.f32.gmra.mrb[12].mxu1 %vm5511_vm15, %v3335_v47  ;;  %vm5526_vm15 = vmmov %vm5516_vm0 }
 0x2ae   : > { %3114 = vmatprep.mubr.msk.f32.mxu1 %vm5512_vm12, %v3336_v14  ;;  %vm5527_vm12 = vmmov %vm5516_vm0 }
 0x2b1   : > { %3115 = vmatmul.mubr.msk.f32.gmra.mrb[14].mxu1 %vm5513_vm13, %v3337_v49  ;;  %vm5528_vm13 = vmmov %vm5516_vm0 }
 0x368   : > { %v3095_v30 = vpop.f32.mrb[0].mxu1 }
 0x369   : > { %v2521_v10 = vadd.f32 %v3095_v30, %v2946_v58  ;;  %v2434_v63 = vpop.f32.mrb[1].mxu1 }
 0x36a   : > { %v2520_v33 = vadd.f32 %v2946_v58, %v2434_v63 }
 0x36b   : > { %v2537_v54 = vmax.f32 %v2521_v10, 0.0 }
 0x36c   : > { %v2536_v11 = vmax.f32 %v2520_v33, 0.0  ;;  %v3098_v59 = vpop.f32.mrb[2].mxu1 }
 0x36d   : > { %v2523_v50 = vadd.f32 %v3098_v59, %v2946_v58  ;;  %v2444_v28 = vpop.f32.mrb[3].mxu1 }
 0x36e   : > { %v2522_v38 = vadd.f32 %v2946_v58, %v2444_v28  ;;  %3125 = vmatprep.mubr.msk.f32.mxu0 %vm2556_vm7, %v2536_v11 }
 0x36f   : > { %3126 = vmatmul.mubr.msk.f32.vlgmr.msra.gmra.mrb[16].mxu0 %vm2556_vm7, %v2537_v54  ;;  %v2539_v19 = vmax.f32 %v2523_v50, 0.0 }
 0x370   : > { %v2538_v60 = vmax.f32 %v2522_v38, 0.0  ;;  %v3101_v52 = vpop.f32.mrb[4].mxu1 }
 0x371   : > { %v2525_v13 = vadd.f32 %v3101_v52, %v2946_v58  ;;  %v2454_v34 = vpop.f32.mrb[5].mxu1 }
 0x372   : > { %v2524_v43 = vadd.f32 %v2946_v58, %v2454_v34  ;;  %3128 = vmatprep.mubr.msk.f32.mxu0 %vm2556_vm7, %v2538_v60 }
 0x373   : > { %3129 = vmatmul.mubr.msk.f32.gmra.mrb[18].mxu0 %vm2556_vm7, %v2539_v19  ;;  %v2541_v12 = vmax.f32 %v2525_v13, 0.0 }
 0x374   : > { %v2540_v21 = vmax.f32 %v2524_v43, 0.0  ;;  %v3104_v32 = vpop.f32.mrb[6].mxu1 }
 0x375   : > { %v2527_v1 = vadd.f32 %v3104_v32, %v2946_v58  ;;  %v2464_v26 = vpop.f32.mrb[7].mxu1 }
 0x376   : > { %v2526_v18 = vadd.f32 %v2946_v58, %v2464_v26  ;;  %3131 = vmatprep.mubr.msk.f32.mxu0 %vm2556_vm7, %v2540_v21 }
 0x377   : > { %3132 = vmatmul.mubr.msk.f32.gmra.mrb[20].mxu0 %vm2556_vm7, %v2541_v12  ;;  %v2543_v29 = vmax.f32 %v2527_v1, 0.0 }
 0x378   : > { %v2542_v3 = vmax.f32 %v2526_v18, 0.0  ;;  %v3107_v25 = vpop.f32.mrb[8].mxu1 }
 0x379   : > { %v2529_v0 = vadd.f32 %v3107_v25, %v2946_v58  ;;  %v2474_v2 = vpop.f32.mrb[9].mxu1 }
 0x37a   : > { %v2528_v42 = vadd.f32 %v2946_v58, %v2474_v2  ;;  %3134 = vmatprep.mubr.msk.f32.mxu0 %vm2556_vm7, %v2542_v3 }
 0x37b   : > { %3135 = vmatmul.mubr.msk.f32.gmra.mrb[22].mxu0 %vm2556_vm7, %v2543_v29  ;;  %v2545_v4 = vmax.f32 %v2529_v0, 0.0 }
 0x37c   : > { %v2544_v16 = vmax.f32 %v2528_v42, 0.0  ;;  %v3110_v27 = vpop.f32.mrb[10].mxu1 }
 0x37d   : > { %v2531_v51 = vadd.f32 %v3110_v27, %v2946_v58  ;;  %v2484_v48 = vpop.f32.mrb[11].mxu1 }
 0x37e   : > { %v2530_v61 = vadd.f32 %v2946_v58, %v2484_v48  ;;  %3137 = vmatprep.mubr.msk.f32.mxu0 %vm2556_vm7, %v2544_v16 }
 0x37f   : > { %3138 = vmatmul.mubr.msk.f32.gmra.mrb[24].mxu0 %vm2556_vm7, %v2545_v4  ;;  %v2547_v31 = vmax.f32 %v2531_v51, 0.0 }
 0x380   : > { %v2546_v7 = vmax.f32 %v2530_v61, 0.0  ;;  %v3113_v6 = vpop.f32.mrb[12].mxu1 }
 0x381   : > { %v2533_v23 = vadd.f32 %v3113_v6, %v2946_v58  ;;  %v2494_v46 = vpop.f32.mrb[13].mxu1 }
 0x382   : > { %v2532_v9 = vadd.f32 %v2946_v58, %v2494_v46  ;;  %3140 = vmatprep.mubr.msk.f32.mxu0 %vm2556_vm7, %v2546_v7 }
 0x383   : > { %3141 = vmatmul.mubr.msk.f32.gmra.mrb[26].mxu0 %vm2556_vm7, %v2547_v31  ;;  %v2549_v39 = vmax.f32 %v2533_v23, 0.0 }
 0x384   : > { %v2548_v37 = vmax.f32 %v2532_v9, 0.0  ;;  %v3116_v36 = vpop.f32.mrb[14].mxu1 }
 0x385   : > { %v2535_v5 = vadd.f32 %v3116_v36, %v2946_v58  ;;  %v2504_v45 = vpop.f32.mrb[15].mxu1 }
 0x386   : > { %v2534_v41 = vadd.f32 %v2946_v58, %v2504_v45  ;;  %3143 = vmatprep.mubr.msk.f32.mxu0 %vm2556_vm7, %v2548_v37 }
 0x387   : > { %3144 = vmatmul.mubr.msk.f32.gmra.mrb[28].mxu0 %vm2556_vm7, %v2549_v39  ;;  %v2551_v15 = vmax.f32 %v2535_v5, 0.0 }
 0x388   : > { %v2550_v20 = vmax.f32 %v2534_v41, 0.0 }
 0x38a   : > { %3146 = vmatprep.mubr.msk.f32.mxu0 %vm2556_vm7, %v2550_v20 }
 0x38b   : > { %3147 = vmatmul.mubr.msk.f32.gmra.mrb[30].mxu0 %vm2556_vm7, %v2551_v15  ;;  %vm5529_vm7 = vmmov %vm5516_vm0 }
 0x442   : > { %v3127_v44 = vpop.f32.mrb[16].mxu0 }
 0x443   : > { %2751 = vst.msk [vmem:[%s5147_s16 + $0x8] sm:$0xff] %vm5514_vm2, %v3127_v44  ;;  %v2671_v17 = vpop.f32.mrb[17].mxu0 }
 0x444   : > { %2750 = vst.msk [vmem:[%s5147_s16] sm:$0xff] %vm5515_vm11, %v2671_v17 }
 0x446   : > { %v3130_v56 = vpop.f32.mrb[18].mxu0 }
 0x447   : > { %2753 = vst.msk [vmem:[%s5147_s16 + $0x18] sm:$0xff] %vm5516_vm0, %v3130_v56  ;;  %v2681_v55 = vpop.f32.mrb[19].mxu0 }
 0x448   : > { %2752 = vst.msk [vmem:[%s5147_s16 + $0x10] sm:$0xff] %vm5517_vm10, %v2681_v55 }
 0x44a   : > { %v3133_v53 = vpop.f32.mrb[20].mxu0 }
 0x44b   : > { %2755 = vst.msk [vmem:[%s5147_s16 + $0x28] sm:$0xff] %vm5518_vm14, %v3133_v53  ;;  %v2691_v24 = vpop.f32.mrb[21].mxu0 }
 0x44c   : > { %2754 = vst.msk [vmem:[%s5147_s16 + $0x20] sm:$0xff] %vm5519_vm1, %v2691_v24 }
 0x44e   : > { %v3136_v22 = vpop.f32.mrb[22].mxu0 }
 0x44f   : > { %2757 = vst.msk [vmem:[%s5147_s16 + $0x38] sm:$0xff] %vm5520_vm9, %v3136_v22  ;;  %v2701_v35 = vpop.f32.mrb[23].mxu0 }
 0x450   : > { %2756 = vst.msk [vmem:[%s5147_s16 + $0x30] sm:$0xff] %vm5521_vm4, %v2701_v35 }
 0x452   : > { %v3139_v57 = vpop.f32.mrb[24].mxu0 }
 0x453   : > { %2759 = vst.msk [vmem:[%s5147_s16 + $0x48] sm:$0xff] %vm5522_vm3, %v3139_v57  ;;  %v2711_v40 = vpop.f32.mrb[25].mxu0 }
 0x454   : > { %2758 = vst.msk [vmem:[%s5147_s16 + $0x40] sm:$0xff] %vm5523_vm8, %v2711_v40 }
 0x456   : > { %v3142_v62 = vpop.f32.mrb[26].mxu0 }
 0x457   : > { %2761 = vst.msk [vmem:[%s5147_s16 + $0x58] sm:$0xff] %vm5524_vm6, %v3142_v62  ;;  %v2721_v8 = vpop.f32.mrb[27].mxu0 }
 0x458   : > { %2760 = vst.msk [vmem:[%s5147_s16 + $0x50] sm:$0xff] %vm5525_vm5, %v2721_v8 }
 0x45a   : > { %v3145_v47 = vpop.f32.mrb[28].mxu0 }
 0x45b   : > { %2763 = vst.msk [vmem:[%s5147_s16 + $0x68] sm:$0xff] %vm5526_vm15, %v3145_v47  ;;  %v2731_v14 = vpop.f32.mrb[29].mxu0 }
 0x45c   : > { %2762 = vst.msk [vmem:[%s5147_s16 + $0x60] sm:$0xff] %vm5527_vm12, %v2731_v14 }
 0x45e   : > { %v3148_v49 = vpop.f32.mrb[30].mxu0 }
 0x45f   : > { %2765 = vst.msk [vmem:[%s5147_s16 + $0x78] sm:$0xff] %vm5528_vm13, %v3148_v49  ;;  %v2741_v58 = vpop.f32.mrb[31].mxu0 }
 0x460   : > { %2764 = vst.msk [vmem:[%s5147_s16 + $0x70] sm:$0xff] %vm5529_vm7, %v2741_v58 }
 0x461 PF: > { %s17_s24 = sadd.s32 1, %s3344_s24  }
 0x462   : > { %p14_p4 = scmp.ge.s32.totalorder %s17_s24, 4  }
 0x464   :  { %16 = sbr.rel (!%p14_p4) target bundleno = 1 (0x1), region = 78 }

</bundles_post_ra>
